<compile_context>
chip_gen: v7x
topology: tpu7x:2x2x1
jax: 0.10.0
libtpu: 0.0.40
codegen_flags: <defaults>
</compile_context>

<pallas_src>
import functools
import math

import jax
import jax.numpy as jnp
from jax.experimental import pallas as pl
from jax.experimental.pallas import tpu as pltpu


MXU_DTYPE = jnp.bfloat16   # matmul operand / stored-weight dtype (f32 accumulation)
ACT_DTYPE = jnp.bfloat16   # inter-kernel activation dtype (halves HBM traffic)
_LN_EPS = 1e-5
_BN_EPS = 1e-5


# ----------------------------------------------------------------------------
# helpers
# ----------------------------------------------------------------------------
def _ln(x, g, b, eps=_LN_EPS):
    # single-pass moments (one fewer cross-lane reduction per LN than two-pass)
    m = jnp.mean(x, axis=-1, keepdims=True)
    m2 = jnp.mean(x * x, axis=-1, keepdims=True)
    var = jnp.maximum(m2 - m * m, 0.0)
    return (x - m) * jax.lax.rsqrt(var + eps) * g + b


def _mm(a, w):
    # MXU matmul: bf16 operands (weights already bf16), f32 accumulation.
    return jnp.dot(a.astype(MXU_DTYPE), w, preferred_element_type=jnp.float32)


@functools.lru_cache(maxsize=None)
def _row_target():
    # 512-row tiles on 128 MiB-VMEM parts (v5e/v6e), 256 on v7x (64 MiB).
    try:
        vmem = pltpu.get_tpu_info().vmem_capacity_bytes
        return 512 if vmem >= (100 << 20) else 256
    except Exception:
        return 256


def _pick_row_tile(n, target):
    """Largest divisor of n that is <= target (prefers multiples of 8)."""
    if n <= target:
        return n
    best = 1
    for t in range(target, 0, -1):
        if n % t == 0:
            if t % 8 == 0:
                return t
            if best == 1:
                best = t
    return best


def _const_spec(shape):
    """BlockSpec for a grid-invariant operand: same block every step, single buffer."""
    idx = lambda *_: (0,) * len(shape)
    try:
        return pl.BlockSpec(shape, idx, pipeline_mode=pl.Buffered(1))
    except Exception:           # older jax without pipeline_mode: fall back gracefully
        return pl.BlockSpec(shape, idx)


def _nbytes(*shapes_dtypes):
    total = 0
    for shape, dt in shapes_dtypes:
        total += math.prod(shape) * jnp.dtype(dt).itemsize
    return total


def _cparams(semantics, block_bytes):
    # explicit scoped-VMEM budget: 2x (double-buffer worst case) + slack,
    # clamped to stay under v7x's 64 MiB physical VMEM.
    vmem = int(2 * block_bytes) + (4 << 20)
    vmem = max(16 << 20, min(vmem, 64 << 20))
    return pltpu.CompilerParams(dimension_semantics=semantics,
                                vmem_limit_bytes=vmem)


# ----------------------------------------------------------------------------
# Pallas kernels
# ----------------------------------------------------------------------------
def _linear_kernel(x_ref, w_ref, b_ref, o_ref):
    y = _mm(x_ref[...], w_ref[...]) + b_ref[...]
    o_ref[...] = y.astype(o_ref.dtype)


def _ff_fused_kernel(x_ref, vp_ref, w1_ref, b1_ref, w2_ref, o_ref, *, apply_final_ln):
    # y = x + 0.5 * (SiLU(LN_in(LN_out(x)) @ W1 + b1) @ W2 + b2)   [+ final LN]
    x = x_ref[...].astype(jnp.float32)
    vp = vp_ref[...]                              # (7,D): og, ob, ig, ib, b2, fg, fb
    h = _ln(x, vp[0:1], vp[1:2])                  # block-level pre-norm (norm_ff1/2)
    h = _ln(h, vp[2:3], vp[3:4])                  # FeedForwardModule's own LayerNorm
    h = _mm(h, w1_ref[...]) + b1_ref[...]
    h = h * jax.nn.sigmoid(h)                     # SiLU in f32 (VPU/EUP)
    h = _mm(h, w2_ref[...]) + vp[4:5]
    y = x + 0.5 * h                               # dropout == identity (eval)
    if apply_final_ln:
        y = _ln(y, vp[5:6], vp[6:7])
    o_ref[...] = y.astype(o_ref.dtype)


def _ln_qkv_kernel(x_ref, lnp_ref, w_ref, b_ref, o_ref):
    x = x_ref[...].astype(jnp.float32)
    lnp = lnp_ref[...]                            # (2, D): gain, bias
    h = _ln(x, lnp[0:1], lnp[1:2])
    o_ref[...] = (_mm(h, w_ref[...]) + b_ref[...]).astype(o_ref.dtype)


def _mha_core_kernel(q_ref, k_ref, v_ref, res_ref, wo_ref, bo_ref, o_ref, acc_ref,
                     *, scale, heads):
    # grid = (batch, q-tile, head).  Output block stays resident across the head
    # axis; each head's softmax(QK^T)V goes through its (dh, D) slice of the
    # out-projection and is accumulated together with the residual + bias, so
    # out_proj + residual never round-trip HBM.
    h = pl.program_id(2)

    @pl.when(h == 0)
    def _():
        acc_ref[...] = res_ref[...].astype(jnp.float32) + bo_ref[...]

    s = jax.lax.dot_general(q_ref[...], k_ref[...], (((1,), (1,)), ((), ())),
                            preferred_element_type=jnp.float32) * scale
    s = s - jnp.max(s, axis=-1, keepdims=True)
    p = jnp.exp(s)
    p = p * pl.reciprocal(jnp.sum(p, axis=-1, keepdims=True), approx=True)
    head_out = _mm(p, v_ref[...])                    # (tq, dh)
    acc_ref[...] += _mm(head_out, wo_ref[...])       # (tq, D)

    @pl.when(h == heads - 1)
    def _():
        o_ref[...] = acc_ref[...].astype(o_ref.dtype)
    # TODO(synk): for very long S, add a KV-block grid axis with online softmax
    # so the score tile becomes (tq, tk) instead of (tq, S).


def _conv_module_kernel(x_ref, dpk_ref, cpk_ref, pw1w_ref, dww_ref, pw2w_ref,
                        o_ref, hpad_ref, *, K):
    # out = x + pw2(SiLU(BN(dwconv(pw1(LN(x))))))      (dropout == identity)
    pad = K // 2
    lead = ((pad + 7) // 8) * 8                       # 8-aligned halo stripe
    x = x_ref[...].astype(jnp.float32)                # (S, D)
    S = x.shape[0]
    dpk = dpk_ref[...]                                # (3,D): ln_g, ln_b, pw2_b
    cpk = cpk_ref[...]                                # (4,C): pw1_b, dw_b, bn_scale, bn_shift
    C = cpk.shape[1]

    h = _ln(x, dpk[0:1], dpk[1:2])
    h = _mm(h, pw1w_ref[...]) + cpk[0:1]              # pointwise conv1 -> (S, C)

    # Depthwise conv: halo lives in a VMEM scratch ref so every tap is a shifted
    # ref read (no jnp.concatenate copy, no per-tap value relayout).
    zeros = jnp.zeros((lead, C), jnp.float32)
    hpad_ref[pl.ds(0, lead), :] = zeros               # zeroed every step (megacore-safe)
    hpad_ref[pl.ds(lead + S, lead), :] = zeros
    hpad_ref[pl.ds(lead, S), :] = h                   # aligned store

    w = dww_ref[...]                                  # (K, C) f32
    acc = cpk[1:2] + jnp.zeros((S, C), jnp.float32)   # start from depthwise bias
    for k in range(K):                                # static unroll over taps (VPU)
        acc = acc + hpad_ref[pl.ds(lead - pad + k, S), :] * w[k:k + 1, :]
    # TODO(synk): on v6e/v7x the tap MACs could run in bf16 for 2x VPU lane
    # throughput; kept f32 here so the same kernel is optimal-ish on v5e too.
    acc = acc * cpk[2:3] + cpk[3:4]                   # BatchNorm (eval, running stats)
    acc = acc * jax.nn.sigmoid(acc)                   # SiLU
    y = _mm(acc, pw2w_ref[...]) + dpk[2:3]            # pointwise conv2 -> (S, D)
    o_ref[...] = (x + y).astype(o_ref.dtype)


# ----------------------------------------------------------------------------
# pallas_call wrappers
# ----------------------------------------------------------------------------
def linear(x2d, w, b):
    N, Din = x2d.shape
    Dout = w.shape[1]
    tm = _pick_row_tile(N, _row_target())
    bb = _nbytes(((tm, Din), x2d.dtype), ((Din, Dout), MXU_DTYPE),
                 ((1, Dout), jnp.float32), ((tm, Dout), ACT_DTYPE))
    return pl.pallas_call(
        _linear_kernel,
        out_shape=jax.ShapeDtypeStruct((N, Dout), ACT_DTYPE),
        grid=(N // tm,),
        in_specs=[pl.BlockSpec((tm, Din), lambda i: (i, 0)),
                  _const_spec((Din, Dout)),
                  _const_spec((1, Dout))],
        out_specs=pl.BlockSpec((tm, Dout), lambda i: (i, 0)),
        compiler_params=_cparams(("parallel",), bb),
    )(x2d, w, b)


def ff_half_step(x2d, ffp, *, apply_final_ln, out_dtype):
    N, D = x2d.shape
    H = ffp["w1"].shape[1]
    tm = _pick_row_tile(N, _row_target())
    bb = _nbytes(((tm, D), x2d.dtype), ((7, D), jnp.float32),
                 ((D, H), MXU_DTYPE), ((1, H), jnp.float32), ((H, D), MXU_DTYPE),
                 ((tm, H), jnp.float32), ((tm, D), jnp.float32),
                 ((tm, D), out_dtype))
    kern = functools.partial(_ff_fused_kernel, apply_final_ln=apply_final_ln)
    return pl.pallas_call(
        kern,
        out_shape=jax.ShapeDtypeStruct((N, D), out_dtype),
        grid=(N // tm,),
        in_specs=[pl.BlockSpec((tm, D), lambda i: (i, 0)),
                  _const_spec((7, D)),
                  _const_spec((D, H)),
                  _const_spec((1, H)),
                  _const_spec((H, D))],
        out_specs=pl.BlockSpec((tm, D), lambda i: (i, 0)),
        compiler_params=_cparams(("parallel",), bb),
    )(x2d, ffp["vpack"], ffp["w1"], ffp["b1"], ffp["w2"])


def ln_qkv(x2d, mp):
    N, D = x2d.shape
    Dout = mp["in_proj_w"].shape[1]
    tm = _pick_row_tile(N, _row_target())
    bb = _nbytes(((tm, D), x2d.dtype), ((2, D), jnp.float32),
                 ((D, Dout), MXU_DTYPE), ((1, Dout), jnp.float32),
                 ((tm, Dout), ACT_DTYPE))
    return pl.pallas_call(
        _ln_qkv_kernel,
        out_shape=jax.ShapeDtypeStruct((N, Dout), ACT_DTYPE),
        grid=(N // tm,),
        in_specs=[pl.BlockSpec((tm, D), lambda i: (i, 0)),
                  _const_spec((2, D)),
                  _const_spec((D, Dout)),
                  _const_spec((1, Dout))],
        out_specs=pl.BlockSpec((tm, Dout), lambda i: (i, 0)),
        compiler_params=_cparams(("parallel",), bb),
    )(x2d, mp["ln_pack"], mp["in_proj_w"], mp["in_proj_b"])


def mha_block(x3, mp, heads):
    """LayerNorm + QKV projection (fused kernel), then attention on a
    (batch, q-tile, head) grid with out_proj + residual accumulated in-kernel."""
    B, S, D = x3.shape
    dh = D // heads
    qkv = ln_qkv(x3.reshape(B * S, D), mp)                       # (N, 3D) bf16
    # head-major layout for clean, aligned BlockSpecs (one bf16 XLA transpose)
    qkv = qkv.reshape(B, S, 3, heads, dh).transpose(2, 0, 3, 1, 4)   # (3,B,H,S,dh)
    q, k, v = qkv[0], qkv[1], qkv[2]                             # (B,H,S,dh) each

    tq = _pick_row_tile(S, min(_row_target(), 256))
    scale = 1.0 / math.sqrt(dh)
    grid = (B, S // tq, heads)

    bb = _nbytes(((tq, dh), ACT_DTYPE), ((S, dh), ACT_DTYPE), ((S, dh), ACT_DTYPE),
                 ((tq, D), ACT_DTYPE), ((dh, D), MXU_DTYPE), ((1, D), jnp.float32),
                 ((tq, D), ACT_DTYPE), ((tq, D), jnp.float32), ((tq, S), jnp.float32))
    kern = functools.partial(_mha_core_kernel, scale=scale, heads=heads)
    return pl.pallas_call(
        kern,
        out_shape=jax.ShapeDtypeStruct((B, S, D), ACT_DTYPE),
        grid=grid,
        in_specs=[
            pl.BlockSpec((None, None, tq, dh), lambda b, qi, h: (b, h, qi, 0)),  # q
            pl.BlockSpec((None, None, S, dh), lambda b, qi, h: (b, h, 0, 0)),    # k
            pl.BlockSpec((None, None, S, dh), lambda b, qi, h: (b, h, 0, 0)),    # v
            pl.BlockSpec((None, tq, D), lambda b, qi, h: (b, qi, 0)),            # residual
            pl.BlockSpec((None, dh, D), lambda b, qi, h: (h, 0, 0)),             # out_proj slice
            _const_spec((1, D)),                                                 # out_proj bias
        ],
        out_specs=pl.BlockSpec((None, tq, D), lambda b, qi, h: (b, qi, 0)),
        scratch_shapes=[pltpu.VMEM((tq, D), jnp.float32)],
        compiler_params=_cparams(("parallel", "parallel", "arbitrary"), bb),
    )(q, k, v, x3, mp["out_proj_w"], mp["out_proj_b"])


def conv_module(x3, cp, K):
    B, S, D = x3.shape
    C = cp["pw1_w"].shape[1]
    lead = ((K // 2 + 7) // 8) * 8
    # fold eval-mode BatchNorm (real running stats) into a scale/shift
    bn_scale = cp["bn_g"] * jax.lax.rsqrt(cp["bn_var"] + _BN_EPS)
    bn_shift = cp["bn_b"] - cp["bn_mean"] * bn_scale
    cpack = jnp.concatenate([cp["pw1_b"], cp["dw_b"], bn_scale, bn_shift], axis=0)  # (4, C)

    bb = _nbytes(((S, D), x3.dtype), ((3, D), jnp.float32), ((4, C), jnp.float32),
                 ((D, C), MXU_DTYPE), ((K, C), jnp.float32), ((C, D), MXU_DTYPE),
                 ((S, D), ACT_DTYPE), ((S + 2 * lead, C), jnp.float32),
                 ((S, C), jnp.float32))
    kern = functools.partial(_conv_module_kernel, K=K)
    # TODO(synk): for very long sequences, add an S-tile grid axis with a
    # (K//2)-row halo so the (S, C) activation need not be resident per step.
    return pl.pallas_call(
        kern,
        out_shape=jax.ShapeDtypeStruct((B, S, D), ACT_DTYPE),
        grid=(B,),
        in_specs=[pl.BlockSpec((None, S, D), lambda b: (b, 0, 0)),
                  _const_spec((3, D)),
                  _const_spec((4, C)),
                  _const_spec((D, C)),
                  _const_spec((K, C)),
                  _const_spec((C, D))],
        out_specs=pl.BlockSpec((None, S, D), lambda b: (b, 0, 0)),
        scratch_shapes=[pltpu.VMEM((S + 2 * lead, C), jnp.float32)],
        compiler_params=_cparams(("parallel",), bb),
    )(x3, cp["dpack"], cpack, cp["pw1_w"], cp["dw_w"], cp["pw2_w"])


# ----------------------------------------------------------------------------
# Parameter init (deterministic synthetic weights; stored pre-transposed,
# matmul weights in bf16, small vectors packed into single operands)
# ----------------------------------------------------------------------------
def _rand(key, shape, scale=0.05, dtype=jnp.float32):
    return (jax.random.normal(key, shape, jnp.float32) * scale).astype(dtype)


def _ln_params(dim):
    return jnp.ones((dim,), jnp.float32), jnp.zeros((dim,), jnp.float32)


def init_conformer_params(key, input_dim, D, heads, ff_mult, conv_exp, K, num_layers):
    dh = D // heads
    params = {}
    key, k1, k2 = jax.random.split(key, 3)
    params["in_proj_w"] = _rand(k1, (input_dim, D), dtype=MXU_DTYPE)
    params["in_proj_b"] = _rand(k2, (1, D))

    def make_ff(k, outer_g, outer_b, fin_g, fin_b):
        H = D * ff_mult
        k1, k2, k3, k4 = jax.random.split(k, 4)
        lg, lb = _ln_params(D)
        w1 = _rand(k1, (D, H), dtype=MXU_DTYPE)
        b1 = _rand(k2, (1, H))
        w2 = _rand(k3, (H, D), dtype=MXU_DTYPE)
        b2 = _rand(k4, (1, D))
        vpack = jnp.concatenate(
            [outer_g.reshape(1, D), outer_b.reshape(1, D),
             lg.reshape(1, D), lb.reshape(1, D), b2,
             fin_g.reshape(1, D), fin_b.reshape(1, D)], axis=0)      # (7, D)
        return dict(vpack=vpack, w1=w1, b1=b1, w2=w2)

    layers = []
    for _ in range(num_layers):
        lp = {}
        ng1, nb1 = _ln_params(D)            # norm_ff1
        ng2, nb2 = _ln_params(D)            # norm_ff2
        nfg, nfb = _ln_params(D)            # norm_final (fused into ff2 kernel)
        idg, idb = _ln_params(D)            # unused slot for ff1 (no final LN)

        key, kf1, kf2 = jax.random.split(key, 3)
        lp["ff1"] = make_ff(kf1, ng1, nb1, idg, idb)
        lp["ff2"] = make_ff(kf2, ng2, nb2, nfg, nfb)

        key, k1, k2, k3, k4 = jax.random.split(key, 5)
        mg, mb = _ln_params(D)
        lp["mha"] = dict(
            ln_pack=jnp.stack([mg, mb], axis=0),                       # (2, D)
            in_proj_w=_rand(k1, (D, 3 * D), dtype=MXU_DTYPE),          # pre-transposed
            in_proj_b=_rand(k2, (1, 3 * D)),
            out_proj_w=_rand(k3, (D, D), dtype=MXU_DTYPE).reshape(heads, dh, D),
            out_proj_b=_rand(k4, (1, D)),
        )

        key, k1, k2, k3, k4, k5 = jax.random.split(key, 6)
        C = D * conv_exp
        cg, cb = _ln_params(D)
        pw2_b = _rand(k5, (1, D))
        lp["conv"] = dict(
            dpack=jnp.concatenate([cg.reshape(1, D), cb.reshape(1, D), pw2_b], axis=0),
            pw1_w=_rand(k1, (D, C), dtype=MXU_DTYPE),
            pw1_b=_rand(k2, (1, C)),
            dw_w=_rand(k3, (K, C)),                                    # (K, C) f32 taps
            dw_b=jnp.zeros((1, C), jnp.float32),
            bn_g=jnp.ones((1, C), jnp.float32),
            bn_b=jnp.zeros((1, C), jnp.float32),
            bn_mean=jnp.zeros((1, C), jnp.float32),                    # running stats
            bn_var=jnp.ones((1, C), jnp.float32),
            pw2_w=_rand(k4, (C, D), dtype=MXU_DTYPE),
        )
        layers.append(lp)
    params["layers"] = layers
    return params


# ----------------------------------------------------------------------------
# Forward pass
# ----------------------------------------------------------------------------
def conformer_block(x3, p, heads, K, out_dtype):
    B, S, D = x3.shape
    N = B * S
    # FF1 half-step residual (fully fused)
    h = ff_half_step(x3.reshape(N, D), p["ff1"], apply_final_ln=False,
                     out_dtype=ACT_DTYPE).reshape(B, S, D)
    # Multi-head self-attention (LN+QKV fused; attention + out_proj + residual fused)
    h = mha_block(h, p["mha"], heads)
    # Conv module (LN + pw1 + depthwise + BN + SiLU + pw2 + residual fused)
    h = conv_module(h, p["conv"], K)
    # FF2 half-step residual with the block's final LayerNorm fused in
    h = ff_half_step(h.reshape(N, D), p["ff2"], apply_final_ln=True,
                     out_dtype=out_dtype).reshape(B, S, D)
    return h


def conformer_encoder(x, params, heads, K):
    B, S, _ = x.shape
    h = linear(x.reshape(B * S, -1), params["in_proj_w"], params["in_proj_b"])
    h = h.reshape(B, S, -1)
    n = len(params["layers"])
    for i, lp in enumerate(params["layers"]):
        out_dtype = jnp.float32 if i == n - 1 else ACT_DTYPE
        h = conformer_block(h, lp, heads, K, out_dtype)
    return h


@functools.partial(jax.jit, static_argnames=("heads", "kernel_size"))
def conformer_forward(x, params, heads, kernel_size):
    return conformer_encoder(x, params, heads, kernel_size)


# ----------------------------------------------------------------------------
# Main
# ----------------------------------------------------------------------------
if __name__ == "__main__":
    B, S = 2, 8
    INPUT_DIM, ENCODER_DIM = 16, 32
    HEADS = 4
    FF_MULT = 4
    CONV_EXP = 2
    CONV_KERNEL = 31      # ConformerBlock default
    NUM_LAYERS = 2

    key = jax.random.PRNGKey(0)
    kx, kp = jax.random.split(key)
    x = jax.random.normal(kx, (B, S, INPUT_DIM), jnp.float32)
    params = init_conformer_params(kp, INPUT_DIM, ENCODER_DIM, HEADS,
                                   FF_MULT, CONV_EXP, CONV_KERNEL, NUM_LAYERS)

    out = conformer_forward(x, params, HEADS, CONV_KERNEL)
    out = jax.block_until_ready(out)

    assert out.shape == (B, S, ENCODER_DIM), out.shape
    assert out.dtype == jnp.float32, out.dtype
    assert bool(jnp.all(jnp.isfinite(out)))
    print("KERNEL_OK")
</pallas_src>

<mosaic_0001>
module attributes {stable_mosaic.version = 11 : i64} {
  func.func @_ln_qkv_kernel(%arg0: i32, %arg1: memref<16x32xbf16, #tpu.memory_space<vmem>>, %arg2: memref<2x32xf32, #tpu.memory_space<vmem>>, %arg3: memref<32x96xbf16, #tpu.memory_space<vmem>>, %arg4: memref<1x96xf32, #tpu.memory_space<vmem>>, %arg5: memref<16x96xbf16, #tpu.memory_space<vmem>>) attributes {dimension_semantics = [#tpu.dimension_semantics<parallel>], iteration_bounds = array<i64: 1>, scalar_prefetch = 0 : i64, scratch_operands = 0 : i64, tpu.core_type = #tpu.core_type<tc>, window_params = [{transform_indices = @transform_0, window_bounds = array<i64: 16, 32>}, {pipeline_mode = #tpu.pipeline_mode<synchronous>, transform_indices = @transform_1, window_bounds = array<i64: 2, 32>}, {pipeline_mode = #tpu.pipeline_mode<synchronous>, transform_indices = @transform_2, window_bounds = array<i64: 32, 96>}, {pipeline_mode = #tpu.pipeline_mode<synchronous>, transform_indices = @transform_3, window_bounds = array<i64: 1, 96>}, {transform_indices = @transform_4, window_bounds = array<i64: 16, 96>}]} {
    %c0 = arith.constant 0 : index
    %c0_0 = arith.constant 0 : index
    %0 = vector.load %arg1[%c0, %c0_0] : memref<16x32xbf16, #tpu.memory_space<vmem>>, vector<16x32xbf16>
    %1 = arith.extf %0 : vector<16x32xbf16> to vector<16x32xf32>
    %c0_1 = arith.constant 0 : index
    %c0_2 = arith.constant 0 : index
    %2 = vector.load %arg2[%c0_1, %c0_2] : memref<2x32xf32, #tpu.memory_space<vmem>>, vector<2x32xf32>
    %3 = vector.extract_strided_slice %2 {offsets = [0, 0], sizes = [1, 32], strides = [1, 1]} : vector<2x32xf32> to vector<1x32xf32>
    %4 = vector.extract_strided_slice %2 {offsets = [1, 0], sizes = [1, 32], strides = [1, 1]} : vector<2x32xf32> to vector<1x32xf32>
    %cst = arith.constant dense<0.000000e+00> : vector<16xf32>
    %5 = vector.multi_reduction <add>, %1, %cst [1] : vector<16x32xf32> to vector<16xf32>
    %6 = vector.shape_cast %5 : vector<16xf32> to vector<16x1xf32>
    %cst_3 = arith.constant 3.200000e+01 : f32
    %7 = vector.broadcast %cst_3 : f32 to vector<16x1xf32>
    %8 = arith.divf %6, %7 : vector<16x1xf32>
    %9 = arith.mulf %1, %1 : vector<16x32xf32>
    %cst_4 = arith.constant dense<0.000000e+00> : vector<16xf32>
    %10 = vector.multi_reduction <add>, %9, %cst_4 [1] : vector<16x32xf32> to vector<16xf32>
    %11 = vector.shape_cast %10 : vector<16xf32> to vector<16x1xf32>
    %cst_5 = arith.constant 3.200000e+01 : f32
    %12 = vector.broadcast %cst_5 : f32 to vector<16x1xf32>
    %13 = arith.divf %11, %12 : vector<16x1xf32>
    %14 = arith.mulf %8, %8 : vector<16x1xf32>
    %15 = arith.subf %13, %14 : vector<16x1xf32>
    %cst_6 = arith.constant 0.000000e+00 : f32
    %16 = vector.broadcast %cst_6 : f32 to vector<16x1xf32>
    %17 = arith.maximumf %15, %16 : vector<16x1xf32>
    %18 = vector.broadcast %8 : vector<16x1xf32> to vector<16x32xf32>
    %19 = arith.subf %1, %18 : vector<16x32xf32>
    %cst_7 = arith.constant 9.99999974E-6 : f32
    %20 = vector.broadcast %cst_7 : f32 to vector<16x1xf32>
    %21 = arith.addf %17, %20 : vector<16x1xf32>
    %22 = math.rsqrt %21 : vector<16x1xf32>
    %23 = vector.broadcast %22 : vector<16x1xf32> to vector<16x32xf32>
    %24 = arith.mulf %19, %23 : vector<16x32xf32>
    %25 = vector.broadcast %3 : vector<1x32xf32> to vector<16x32xf32>
    %26 = arith.mulf %24, %25 : vector<16x32xf32>
    %27 = vector.broadcast %4 : vector<1x32xf32> to vector<16x32xf32>
    %28 = arith.addf %26, %27 : vector<16x32xf32>
    %c0_8 = arith.constant 0 : index
    %c0_9 = arith.constant 0 : index
    %29 = vector.load %arg3[%c0_8, %c0_9] : memref<32x96xbf16, #tpu.memory_space<vmem>>, vector<32x96xbf16>
    %30 = arith.truncf %28 : vector<16x32xf32> to vector<16x32xbf16>
    %cst_10 = arith.constant dense<0.000000e+00> : vector<16x96xf32>
    %31 = tpu.matmul %30, %29, %cst_10 {dimension_numbers = #tpu.dot_dimension_numbers<[1], [0], [0], [1], [0, 0, 1, 1], [], []>} : vector<16x32xbf16>, vector<32x96xbf16>, vector<16x96xf32> -> vector<16x96xf32>
    %c0_11 = arith.constant 0 : index
    %c0_12 = arith.constant 0 : index
    %32 = vector.load %arg4[%c0_11, %c0_12] : memref<1x96xf32, #tpu.memory_space<vmem>>, vector<1x96xf32>
    %33 = vector.broadcast %32 : vector<1x96xf32> to vector<16x96xf32>
    %34 = arith.addf %31, %33 : vector<16x96xf32>
    %35 = arith.truncf %34 : vector<16x96xf32> to vector<16x96xbf16>
    %c0_13 = arith.constant 0 : index
    %c0_14 = arith.constant 0 : index
    %36 = vector.load %arg5[%c0_13, %c0_14] : memref<16x96xbf16, #tpu.memory_space<vmem>>, vector<16x96xbf16>
    tpu.vector_store %arg5[%c0_13, %c0_14], %35 {strides = array<i32>} : memref<16x96xbf16, #tpu.memory_space<vmem>>, vector<16x96xbf16>,
    return
  }
  func.func @transform_0(%arg0: i32) -> (i32, i32) {
    %c0_i32 = arith.constant 0 : i32
    %c0_i32_0 = arith.constant 0 : i32
    return %arg0, %c0_i32 : i32, i32
  }
  func.func @transform_1(%arg0: i32) -> (i32, i32) {
    %c0_i32 = arith.constant 0 : i32
    %c0_i32_0 = arith.constant 0 : i32
    %c0_i32_1 = arith.constant 0 : i32
    return %c0_i32, %c0_i32_0 : i32, i32
  }
  func.func @transform_2(%arg0: i32) -> (i32, i32) {
    %c0_i32 = arith.constant 0 : i32
    %c0_i32_0 = arith.constant 0 : i32
    %c0_i32_1 = arith.constant 0 : i32
    return %c0_i32, %c0_i32_0 : i32, i32
  }
  func.func @transform_3(%arg0: i32) -> (i32, i32) {
    %c0_i32 = arith.constant 0 : i32
    %c0_i32_0 = arith.constant 0 : i32
    %c0_i32_1 = arith.constant 0 : i32
    return %c0_i32, %c0_i32_0 : i32, i32
  }
  func.func @transform_4(%arg0: i32) -> (i32, i32) {
    %c0_i32 = arith.constant 0 : i32
    %c0_i32_0 = arith.constant 0 : i32
    return %arg0, %c0_i32 : i32, i32
  }
}

module attributes {stable_mosaic.version = 11 : i64} {
  func.func @_ff_fused_kernel(%arg0: i32, %arg1: memref<16x32xbf16, #tpu.memory_space<vmem>>, %arg2: memref<7x32xf32, #tpu.memory_space<vmem>>, %arg3: memref<32x128xbf16, #tpu.memory_space<vmem>>, %arg4: memref<1x128xf32, #tpu.memory_space<vmem>>, %arg5: memref<128x32xbf16, #tpu.memory_space<vmem>>, %arg6: memref<16x32xbf16, #tpu.memory_space<vmem>>) attributes {dimension_semantics = [#tpu.dimension_semantics<parallel>], iteration_bounds = array<i64: 1>, scalar_prefetch = 0 : i64, scratch_operands = 0 : i64, tpu.core_type = #tpu.core_type<tc>, window_params = [{transform_indices = @transform_0, window_bounds = array<i64: 16, 32>}, {pipeline_mode = #tpu.pipeline_mode<synchronous>, transform_indices = @transform_1, window_bounds = array<i64: 7, 32>}, {pipeline_mode = #tpu.pipeline_mode<synchronous>, transform_indices = @transform_2, window_bounds = array<i64: 32, 128>}, {pipeline_mode = #tpu.pipeline_mode<synchronous>, transform_indices = @transform_3, window_bounds = array<i64: 1, 128>}, {pipeline_mode = #tpu.pipeline_mode<synchronous>, transform_indices = @transform_4, window_bounds = array<i64: 128, 32>}, {transform_indices = @transform_5, window_bounds = array<i64: 16, 32>}]} {
    %c0 = arith.constant 0 : index
    %c0_0 = arith.constant 0 : index
    %0 = vector.load %arg1[%c0, %c0_0] : memref<16x32xbf16, #tpu.memory_space<vmem>>, vector<16x32xbf16>
    %1 = arith.extf %0 : vector<16x32xbf16> to vector<16x32xf32>
    %c0_1 = arith.constant 0 : index
    %c0_2 = arith.constant 0 : index
    %2 = vector.load %arg2[%c0_1, %c0_2] : memref<7x32xf32, #tpu.memory_space<vmem>>, vector<7x32xf32>
    %3 = vector.extract_strided_slice %2 {offsets = [0, 0], sizes = [1, 32], strides = [1, 1]} : vector<7x32xf32> to vector<1x32xf32>
    %4 = vector.extract_strided_slice %2 {offsets = [1, 0], sizes = [1, 32], strides = [1, 1]} : vector<7x32xf32> to vector<1x32xf32>
    %cst = arith.constant dense<0.000000e+00> : vector<16xf32>
    %5 = vector.multi_reduction <add>, %1, %cst [1] : vector<16x32xf32> to vector<16xf32>
    %6 = vector.shape_cast %5 : vector<16xf32> to vector<16x1xf32>
    %cst_3 = arith.constant 3.200000e+01 : f32
    %7 = vector.broadcast %cst_3 : f32 to vector<16x1xf32>
    %8 = arith.divf %6, %7 : vector<16x1xf32>
    %9 = arith.mulf %1, %1 : vector<16x32xf32>
    %cst_4 = arith.constant dense<0.000000e+00> : vector<16xf32>
    %10 = vector.multi_reduction <add>, %9, %cst_4 [1] : vector<16x32xf32> to vector<16xf32>
    %11 = vector.shape_cast %10 : vector<16xf32> to vector<16x1xf32>
    %cst_5 = arith.constant 3.200000e+01 : f32
    %12 = vector.broadcast %cst_5 : f32 to vector<16x1xf32>
    %13 = arith.divf %11, %12 : vector<16x1xf32>
    %14 = arith.mulf %8, %8 : vector<16x1xf32>
    %15 = arith.subf %13, %14 : vector<16x1xf32>
    %cst_6 = arith.constant 0.000000e+00 : f32
    %16 = vector.broadcast %cst_6 : f32 to vector<16x1xf32>
    %17 = arith.maximumf %15, %16 : vector<16x1xf32>
    %18 = vector.broadcast %8 : vector<16x1xf32> to vector<16x32xf32>
    %19 = arith.subf %1, %18 : vector<16x32xf32>
    %cst_7 = arith.constant 9.99999974E-6 : f32
    %20 = vector.broadcast %cst_7 : f32 to vector<16x1xf32>
    %21 = arith.addf %17, %20 : vector<16x1xf32>
    %22 = math.rsqrt %21 : vector<16x1xf32>
    %23 = vector.broadcast %22 : vector<16x1xf32> to vector<16x32xf32>
    %24 = arith.mulf %19, %23 : vector<16x32xf32>
    %25 = vector.broadcast %3 : vector<1x32xf32> to vector<16x32xf32>
    %26 = arith.mulf %24, %25 : vector<16x32xf32>
    %27 = vector.broadcast %4 : vector<1x32xf32> to vector<16x32xf32>
    %28 = arith.addf %26, %27 : vector<16x32xf32>
    %29 = vector.extract_strided_slice %2 {offsets = [2, 0], sizes = [1, 32], strides = [1, 1]} : vector<7x32xf32> to vector<1x32xf32>
    %30 = vector.extract_strided_slice %2 {offsets = [3, 0], sizes = [1, 32], strides = [1, 1]} : vector<7x32xf32> to vector<1x32xf32>
    %cst_8 = arith.constant dense<0.000000e+00> : vector<16xf32>
    %31 = vector.multi_reduction <add>, %28, %cst_8 [1] : vector<16x32xf32> to vector<16xf32>
    %32 = vector.shape_cast %31 : vector<16xf32> to vector<16x1xf32>
    %cst_9 = arith.constant 3.200000e+01 : f32
    %33 = vector.broadcast %cst_9 : f32 to vector<16x1xf32>
    %34 = arith.divf %32, %33 : vector<16x1xf32>
    %35 = arith.mulf %28, %28 : vector<16x32xf32>
    %cst_10 = arith.constant dense<0.000000e+00> : vector<16xf32>
    %36 = vector.multi_reduction <add>, %35, %cst_10 [1] : vector<16x32xf32> to vector<16xf32>
    %37 = vector.shape_cast %36 : vector<16xf32> to vector<16x1xf32>
    %cst_11 = arith.constant 3.200000e+01 : f32
    %38 = vector.broadcast %cst_11 : f32 to vector<16x1xf32>
    %39 = arith.divf %37, %38 : vector<16x1xf32>
    %40 = arith.mulf %34, %34 : vector<16x1xf32>
    %41 = arith.subf %39, %40 : vector<16x1xf32>
    %cst_12 = arith.constant 0.000000e+00 : f32
    %42 = vector.broadcast %cst_12 : f32 to vector<16x1xf32>
    %43 = arith.maximumf %41, %42 : vector<16x1xf32>
    %44 = vector.broadcast %34 : vector<16x1xf32> to vector<16x32xf32>
    %45 = arith.subf %28, %44 : vector<16x32xf32>
    %cst_13 = arith.constant 9.99999974E-6 : f32
    %46 = vector.broadcast %cst_13 : f32 to vector<16x1xf32>
    %47 = arith.addf %43, %46 : vector<16x1xf32>
    %48 = math.rsqrt %47 : vector<16x1xf32>
    %49 = vector.broadcast %48 : vector<16x1xf32> to vector<16x32xf32>
    %50 = arith.mulf %45, %49 : vector<16x32xf32>
    %51 = vector.broadcast %29 : vector<1x32xf32> to vector<16x32xf32>
    %52 = arith.mulf %50, %51 : vector<16x32xf32>
    %53 = vector.broadcast %30 : vector<1x32xf32> to vector<16x32xf32>
    %54 = arith.addf %52, %53 : vector<16x32xf32>
    %c0_14 = arith.constant 0 : index
    %c0_15 = arith.constant 0 : index
    %55 = vector.load %arg3[%c0_14, %c0_15] : memref<32x128xbf16, #tpu.memory_space<vmem>>, vector<32x128xbf16>
    %56 = arith.truncf %54 : vector<16x32xf32> to vector<16x32xbf16>
    %cst_16 = arith.constant dense<0.000000e+00> : vector<16x128xf32>
    %57 = tpu.matmul %56, %55, %cst_16 {dimension_numbers = #tpu.dot_dimension_numbers<[1], [0], [0], [1], [0, 0, 1, 1], [], []>} : vector<16x32xbf16>, vector<32x128xbf16>, vector<16x128xf32> -> vector<16x128xf32>
    %c0_17 = arith.constant 0 : index
    %c0_18 = arith.constant 0 : index
    %58 = vector.load %arg4[%c0_17, %c0_18] : memref<1x128xf32, #tpu.memory_space<vmem>>, vector<1x128xf32>
    %59 = vector.broadcast %58 : vector<1x128xf32> to vector<16x128xf32>
    %60 = arith.addf %57, %59 : vector<16x128xf32>
    %61 = arith.negf %60 : vector<16x128xf32>
    %62 = math.exp %61 : vector<16x128xf32>
    %cst_19 = arith.constant 1.000000e+00 : f32
    %63 = vector.broadcast %cst_19 : f32 to vector<16x128xf32>
    %64 = arith.addf %63, %62 : vector<16x128xf32>
    %65 = arith.divf %63, %64 : vector<16x128xf32>
    %66 = arith.mulf %60, %65 : vector<16x128xf32>
    %c0_20 = arith.constant 0 : index
    %c0_21 = arith.constant 0 : index
    %67 = vector.load %arg5[%c0_20, %c0_21] : memref<128x32xbf16, #tpu.memory_space<vmem>>, vector<128x32xbf16>
    %68 = arith.truncf %66 : vector<16x128xf32> to vector<16x128xbf16>
    %cst_22 = arith.constant dense<0.000000e+00> : vector<16x32xf32>
    %69 = tpu.matmul %68, %67, %cst_22 {dimension_numbers = #tpu.dot_dimension_numbers<[1], [0], [0], [1], [0, 0, 1, 1], [], []>} : vector<16x128xbf16>, vector<128x32xbf16>, vector<16x32xf32> -> vector<16x32xf32>
    %70 = vector.extract_strided_slice %2 {offsets = [4, 0], sizes = [1, 32], strides = [1, 1]} : vector<7x32xf32> to vector<1x32xf32>
    %71 = vector.broadcast %70 : vector<1x32xf32> to vector<16x32xf32>
    %72 = arith.addf %69, %71 : vector<16x32xf32>
    %cst_23 = arith.constant 5.000000e-01 : f32
    %73 = vector.broadcast %cst_23 : f32 to vector<16x32xf32>
    %74 = arith.mulf %73, %72 : vector<16x32xf32>
    %75 = arith.addf %1, %74 : vector<16x32xf32>
    %76 = arith.truncf %75 : vector<16x32xf32> to vector<16x32xbf16>
    %c0_24 = arith.constant 0 : index
    %c0_25 = arith.constant 0 : index
    %77 = vector.load %arg6[%c0_24, %c0_25] : memref<16x32xbf16, #tpu.memory_space<vmem>>, vector<16x32xbf16>
    tpu.vector_store %arg6[%c0_24, %c0_25], %76 {strides = array<i32>} : memref<16x32xbf16, #tpu.memory_space<vmem>>, vector<16x32xbf16>,
    return
  }
  func.func @transform_0(%arg0: i32) -> (i32, i32) {
    %c0_i32 = arith.constant 0 : i32
    %c0_i32_0 = arith.constant 0 : i32
    return %arg0, %c0_i32 : i32, i32
  }
  func.func @transform_1(%arg0: i32) -> (i32, i32) {
    %c0_i32 = arith.constant 0 : i32
    %c0_i32_0 = arith.constant 0 : i32
    %c0_i32_1 = arith.constant 0 : i32
    return %c0_i32, %c0_i32_0 : i32, i32
  }
  func.func @transform_2(%arg0: i32) -> (i32, i32) {
    %c0_i32 = arith.constant 0 : i32
    %c0_i32_0 = arith.constant 0 : i32
    %c0_i32_1 = arith.constant 0 : i32
    return %c0_i32, %c0_i32_0 : i32, i32
  }
  func.func @transform_3(%arg0: i32) -> (i32, i32) {
    %c0_i32 = arith.constant 0 : i32
    %c0_i32_0 = arith.constant 0 : i32
    %c0_i32_1 = arith.constant 0 : i32
    return %c0_i32, %c0_i32_0 : i32, i32
  }
  func.func @transform_4(%arg0: i32) -> (i32, i32) {
    %c0_i32 = arith.constant 0 : i32
    %c0_i32_0 = arith.constant 0 : i32
    %c0_i32_1 = arith.constant 0 : i32
    return %c0_i32, %c0_i32_0 : i32, i32
  }
  func.func @transform_5(%arg0: i32) -> (i32, i32) {
    %c0_i32 = arith.constant 0 : i32
    %c0_i32_0 = arith.constant 0 : i32
    return %arg0, %c0_i32 : i32, i32
  }
}

module attributes {stable_mosaic.version = 11 : i64} {
  func.func @_linear_kernel(%arg0: i32, %arg1: memref<16x16xf32, #tpu.memory_space<vmem>>, %arg2: memref<16x32xbf16, #tpu.memory_space<vmem>>, %arg3: memref<1x32xf32, #tpu.memory_space<vmem>>, %arg4: memref<16x32xbf16, #tpu.memory_space<vmem>>) attributes {dimension_semantics = [#tpu.dimension_semantics<parallel>], iteration_bounds = array<i64: 1>, scalar_prefetch = 0 : i64, scratch_operands = 0 : i64, tpu.core_type = #tpu.core_type<tc>, window_params = [{transform_indices = @transform_0, window_bounds = array<i64: 16, 16>}, {pipeline_mode = #tpu.pipeline_mode<synchronous>, transform_indices = @transform_1, window_bounds = array<i64: 16, 32>}, {pipeline_mode = #tpu.pipeline_mode<synchronous>, transform_indices = @transform_2, window_bounds = array<i64: 1, 32>}, {transform_indices = @transform_3, window_bounds = array<i64: 16, 32>}]} {
    %c0 = arith.constant 0 : index
    %c0_0 = arith.constant 0 : index
    %0 = vector.load %arg1[%c0, %c0_0] : memref<16x16xf32, #tpu.memory_space<vmem>>, vector<16x16xf32>
    %c0_1 = arith.constant 0 : index
    %c0_2 = arith.constant 0 : index
    %1 = vector.load %arg2[%c0_1, %c0_2] : memref<16x32xbf16, #tpu.memory_space<vmem>>, vector<16x32xbf16>
    %2 = arith.truncf %0 : vector<16x16xf32> to vector<16x16xbf16>
    %cst = arith.constant dense<0.000000e+00> : vector<16x32xf32>
    %3 = tpu.matmul %2, %1, %cst {dimension_numbers = #tpu.dot_dimension_numbers<[1], [0], [0], [1], [0, 0, 1, 1], [], []>} : vector<16x16xbf16>, vector<16x32xbf16>, vector<16x32xf32> -> vector<16x32xf32>
    %c0_3 = arith.constant 0 : index
    %c0_4 = arith.constant 0 : index
    %4 = vector.load %arg3[%c0_3, %c0_4] : memref<1x32xf32, #tpu.memory_space<vmem>>, vector<1x32xf32>
    %5 = vector.broadcast %4 : vector<1x32xf32> to vector<16x32xf32>
    %6 = arith.addf %3, %5 : vector<16x32xf32>
    %7 = arith.truncf %6 : vector<16x32xf32> to vector<16x32xbf16>
    %c0_5 = arith.constant 0 : index
    %c0_6 = arith.constant 0 : index
    %8 = vector.load %arg4[%c0_5, %c0_6] : memref<16x32xbf16, #tpu.memory_space<vmem>>, vector<16x32xbf16>
    tpu.vector_store %arg4[%c0_5, %c0_6], %7 {strides = array<i32>} : memref<16x32xbf16, #tpu.memory_space<vmem>>, vector<16x32xbf16>,
    return
  }
  func.func @transform_0(%arg0: i32) -> (i32, i32) {
    %c0_i32 = arith.constant 0 : i32
    %c0_i32_0 = arith.constant 0 : i32
    return %arg0, %c0_i32 : i32, i32
  }
  func.func @transform_1(%arg0: i32) -> (i32, i32) {
    %c0_i32 = arith.constant 0 : i32
    %c0_i32_0 = arith.constant 0 : i32
    %c0_i32_1 = arith.constant 0 : i32
    return %c0_i32, %c0_i32_0 : i32, i32
  }
  func.func @transform_2(%arg0: i32) -> (i32, i32) {
    %c0_i32 = arith.constant 0 : i32
    %c0_i32_0 = arith.constant 0 : i32
    %c0_i32_1 = arith.constant 0 : i32
    return %c0_i32, %c0_i32_0 : i32, i32
  }
  func.func @transform_3(%arg0: i32) -> (i32, i32) {
    %c0_i32 = arith.constant 0 : i32
    %c0_i32_0 = arith.constant 0 : i32
    return %arg0, %c0_i32 : i32, i32
  }
}

module attributes {stable_mosaic.version = 11 : i64} {
  func.func @_mha_core_kernel(%arg0: i32, %arg1: i32, %arg2: i32, %arg3: memref<1x1x8x8xbf16, #tpu.memory_space<vmem>>, %arg4: memref<1x1x8x8xbf16, #tpu.memory_space<vmem>>, %arg5: memref<1x1x8x8xbf16, #tpu.memory_space<vmem>>, %arg6: memref<1x8x32xbf16, #tpu.memory_space<vmem>>, %arg7: memref<1x8x32xbf16, #tpu.memory_space<vmem>>, %arg8: memref<1x32xf32, #tpu.memory_space<vmem>>, %arg9: memref<1x8x32xbf16, #tpu.memory_space<vmem>>, %arg10: memref<8x32xf32, #tpu.memory_space<vmem>>) attributes {dimension_semantics = [#tpu.dimension_semantics<parallel>, #tpu.dimension_semantics<parallel>, #tpu.dimension_semantics<arbitrary>], iteration_bounds = array<i64: 2, 1, 4>, scalar_prefetch = 0 : i64, scratch_operands = 1 : i64, tpu.core_type = #tpu.core_type<tc>, window_params = [{transform_indices = @transform_0, window_bounds = array<i64: 1, 1, 8, 8>}, {transform_indices = @transform_1, window_bounds = array<i64: 1, 1, 8, 8>}, {transform_indices = @transform_2, window_bounds = array<i64: 1, 1, 8, 8>}, {transform_indices = @transform_3, window_bounds = array<i64: 1, 8, 32>}, {transform_indices = @transform_4, window_bounds = array<i64: 1, 8, 32>}, {pipeline_mode = #tpu.pipeline_mode<synchronous>, transform_indices = @transform_5, window_bounds = array<i64: 1, 32>}, {transform_indices = @transform_6, window_bounds = array<i64: 1, 8, 32>}]} {
    %c0_i32 = arith.constant 0 : i32
    %0 = arith.cmpi eq, %arg2, %c0_i32 : i32
    %1 = arith.extui %0 : i1 to i32
    %c0_i32_0 = arith.constant 0 : i32
    %2 = arith.cmpi ne, %1, %c0_i32_0 : i32
    scf.if %2 {
      %c0_25 = arith.constant 0 : index
      %c0_26 = arith.constant 0 : index
      %c0_27 = arith.constant 0 : index
      %34 = vector.load %arg6[%c0_25, %c0_26, %c0_27] : memref<1x8x32xbf16, #tpu.memory_space<vmem>>, vector<1x8x32xbf16>
      %35 = vector.shape_cast %34 : vector<1x8x32xbf16> to vector<8x32xbf16>
      %36 = arith.extf %35 : vector<8x32xbf16> to vector<8x32xf32>
      %c0_28 = arith.constant 0 : index
      %c0_29 = arith.constant 0 : index
      %37 = vector.load %arg8[%c0_28, %c0_29] : memref<1x32xf32, #tpu.memory_space<vmem>>, vector<1x32xf32>
      %38 = vector.broadcast %37 : vector<1x32xf32> to vector<8x32xf32>
      %39 = arith.addf %36, %38 : vector<8x32xf32>
      %c0_30 = arith.constant 0 : index
      %c0_31 = arith.constant 0 : index
      %40 = vector.load %arg10[%c0_30, %c0_31] : memref<8x32xf32, #tpu.memory_space<vmem>>, vector<8x32xf32>
      tpu.vector_store %arg10[%c0_30, %c0_31], %39 {strides = array<i32>} : memref<8x32xf32, #tpu.memory_space<vmem>>, vector<8x32xf32>,
    } else {
    }
    %c0 = arith.constant 0 : index
    %c0_1 = arith.constant 0 : index
    %c0_2 = arith.constant 0 : index
    %c0_3 = arith.constant 0 : index
    %3 = vector.load %arg3[%c0, %c0_1, %c0_2, %c0_3] : memref<1x1x8x8xbf16, #tpu.memory_space<vmem>>, vector<1x1x8x8xbf16>
    %4 = vector.shape_cast %3 : vector<1x1x8x8xbf16> to vector<8x8xbf16>
    %c0_4 = arith.constant 0 : index
    %c0_5 = arith.constant 0 : index
    %c0_6 = arith.constant 0 : index
    %c0_7 = arith.constant 0 : index
    %5 = vector.load %arg4[%c0_4, %c0_5, %c0_6, %c0_7] : memref<1x1x8x8xbf16, #tpu.memory_space<vmem>>, vector<1x1x8x8xbf16>
    %6 = vector.shape_cast %5 : vector<1x1x8x8xbf16> to vector<8x8xbf16>
    %cst = arith.constant dense<0.000000e+00> : vector<8x8xf32>
    %7 = tpu.matmul %4, %6, %cst {dimension_numbers = #tpu.dot_dimension_numbers<[1], [1], [0], [0], [0, 0, 1, 0], [], []>} : vector<8x8xbf16>, vector<8x8xbf16>, vector<8x8xf32> -> vector<8x8xf32>
    %cst_8 = arith.constant 0.353553385 : f32
    %8 = vector.broadcast %cst_8 : f32 to vector<8x8xf32>
    %9 = arith.mulf %7, %8 : vector<8x8xf32>
    %cst_9 = arith.constant dense<0xFF800000> : vector<8xf32>
    %10 = vector.multi_reduction <maximumf>, %9, %cst_9 [1] : vector<8x8xf32> to vector<8xf32>
    %11 = vector.shape_cast %10 : vector<8xf32> to vector<8x1xf32>
    %12 = vector.broadcast %11 : vector<8x1xf32> to vector<8x8xf32>
    %13 = arith.subf %9, %12 : vector<8x8xf32>
    %14 = math.exp %13 : vector<8x8xf32>
    %cst_10 = arith.constant dense<0.000000e+00> : vector<8xf32>
    %15 = vector.multi_reduction <add>, %14, %cst_10 [1] : vector<8x8xf32> to vector<8xf32>
    %16 = vector.shape_cast %15 : vector<8xf32> to vector<8x1xf32>
    %17 = tpu.reciprocal %16 {approx = true} : vector<8x1xf32> -> vector<8x1xf32>
    %18 = vector.broadcast %17 : vector<8x1xf32> to vector<8x8xf32>
    %19 = arith.mulf %14, %18 : vector<8x8xf32>
    %c0_11 = arith.constant 0 : index
    %c0_12 = arith.constant 0 : index
    %c0_13 = arith.constant 0 : index
    %c0_14 = arith.constant 0 : index
    %20 = vector.load %arg5[%c0_11, %c0_12, %c0_13, %c0_14] : memref<1x1x8x8xbf16, #tpu.memory_space<vmem>>, vector<1x1x8x8xbf16>
    %21 = vector.shape_cast %20 : vector<1x1x8x8xbf16> to vector<8x8xbf16>
    %22 = arith.truncf %19 : vector<8x8xf32> to vector<8x8xbf16>
    %cst_15 = arith.constant dense<0.000000e+00> : vector<8x8xf32>
    %23 = tpu.matmul %22, %21, %cst_15 {dimension_numbers = #tpu.dot_dimension_numbers<[1], [0], [0], [1], [0, 0, 1, 1], [], []>} : vector<8x8xbf16>, vector<8x8xbf16>, vector<8x8xf32> -> vector<8x8xf32>
    %c0_16 = arith.constant 0 : index
    %c0_17 = arith.constant 0 : index
    %24 = vector.load %arg10[%c0_16, %c0_17] : memref<8x32xf32, #tpu.memory_space<vmem>>, vector<8x32xf32>
    %c0_18 = arith.constant 0 : index
    %c0_19 = arith.constant 0 : index
    %c0_20 = arith.constant 0 : index
    %25 = vector.load %arg7[%c0_18, %c0_19, %c0_20] : memref<1x8x32xbf16, #tpu.memory_space<vmem>>, vector<1x8x32xbf16>
    %26 = vector.shape_cast %25 : vector<1x8x32xbf16> to vector<8x32xbf16>
    %27 = arith.truncf %23 : vector<8x8xf32> to vector<8x8xbf16>
    %cst_21 = arith.constant dense<0.000000e+00> : vector<8x32xf32>
    %28 = tpu.matmul %27, %26, %cst_21 {dimension_numbers = #tpu.dot_dimension_numbers<[1], [0], [0], [1], [0, 0, 1, 1], [], []>} : vector<8x8xbf16>, vector<8x32xbf16>, vector<8x32xf32> -> vector<8x32xf32>
    %29 = arith.addf %24, %28 : vector<8x32xf32>
    %c0_22 = arith.constant 0 : index
    %c0_23 = arith.constant 0 : index
    %30 = vector.load %arg10[%c0_22, %c0_23] : memref<8x32xf32, #tpu.memory_space<vmem>>, vector<8x32xf32>
    tpu.vector_store %arg10[%c0_22, %c0_23], %29 {strides = array<i32>} : memref<8x32xf32, #tpu.memory_space<vmem>>, vector<8x32xf32>,
    %c3_i32 = arith.constant 3 : i32
    %31 = arith.cmpi eq, %arg2, %c3_i32 : i32
    %32 = arith.extui %31 : i1 to i32
    %c0_i32_24 = arith.constant 0 : i32
    %33 = arith.cmpi ne, %32, %c0_i32_24 : i32
    scf.if %33 {
      %c0_25 = arith.constant 0 : index
      %c0_26 = arith.constant 0 : index
      %34 = vector.load %arg10[%c0_25, %c0_26] : memref<8x32xf32, #tpu.memory_space<vmem>>, vector<8x32xf32>
      %35 = arith.truncf %34 : vector<8x32xf32> to vector<8x32xbf16>
      %c0_27 = arith.constant 0 : index
      %c0_28 = arith.constant 0 : index
      %c0_29 = arith.constant 0 : index
      %36 = vector.load %arg9[%c0_27, %c0_28, %c0_29] : memref<1x8x32xbf16, #tpu.memory_space<vmem>>, vector<1x8x32xbf16>
      %37 = vector.shape_cast %36 : vector<1x8x32xbf16> to vector<8x32xbf16>
      %38 = vector.shape_cast %35 : vector<8x32xbf16> to vector<1x8x32xbf16>
      tpu.vector_store %arg9[%c0_27, %c0_28, %c0_29], %38 {strides = array<i32>} : memref<1x8x32xbf16, #tpu.memory_space<vmem>>, vector<1x8x32xbf16>,
    } else {
    }
    return
  }
  func.func @transform_0(%arg0: i32, %arg1: i32, %arg2: i32) -> (i32, i32, i32, i32) {
    %c0_i32 = arith.constant 0 : i32
    %c0_i32_0 = arith.constant 0 : i32
    return %arg0, %arg2, %arg1, %c0_i32 : i32, i32, i32, i32
  }
  func.func @transform_1(%arg0: i32, %arg1: i32, %arg2: i32) -> (i32, i32, i32, i32) {
    %c0_i32 = arith.constant 0 : i32
    %c0_i32_0 = arith.constant 0 : i32
    %c0_i32_1 = arith.constant 0 : i32
    return %arg0, %arg2, %c0_i32, %c0_i32_0 : i32, i32, i32, i32
  }
  func.func @transform_2(%arg0: i32, %arg1: i32, %arg2: i32) -> (i32, i32, i32, i32) {
    %c0_i32 = arith.constant 0 : i32
    %c0_i32_0 = arith.constant 0 : i32
    %c0_i32_1 = arith.constant 0 : i32
    return %arg0, %arg2, %c0_i32, %c0_i32_0 : i32, i32, i32, i32
  }
  func.func @transform_3(%arg0: i32, %arg1: i32, %arg2: i32) -> (i32, i32, i32) {
    %c0_i32 = arith.constant 0 : i32
    %c0_i32_0 = arith.constant 0 : i32
    return %arg0, %arg1, %c0_i32 : i32, i32, i32
  }
  func.func @transform_4(%arg0: i32, %arg1: i32, %arg2: i32) -> (i32, i32, i32) {
    %c0_i32 = arith.constant 0 : i32
    %c0_i32_0 = arith.constant 0 : i32
    %c0_i32_1 = arith.constant 0 : i32
    return %arg2, %c0_i32, %c0_i32_0 : i32, i32, i32
  }
  func.func @transform_5(%arg0: i32, %arg1: i32, %arg2: i32) -> (i32, i32) {
    %c0_i32 = arith.constant 0 : i32
    %c0_i32_0 = arith.constant 0 : i32
    %c0_i32_1 = arith.constant 0 : i32
    return %c0_i32, %c0_i32_0 : i32, i32
  }
  func.func @transform_6(%arg0: i32, %arg1: i32, %arg2: i32) -> (i32, i32, i32) {
    %c0_i32 = arith.constant 0 : i32
    %c0_i32_0 = arith.constant 0 : i32
    return %arg0, %arg1, %c0_i32 : i32, i32, i32
  }
}

module attributes {stable_mosaic.version = 11 : i64} {
  func.func @_conv_module_kernel(%arg0: i32, %arg1: memref<1x8x32xbf16, #tpu.memory_space<vmem>>, %arg2: memref<3x32xf32, #tpu.memory_space<vmem>>, %arg3: memref<4x64xf32, #tpu.memory_space<vmem>>, %arg4: memref<32x64xbf16, #tpu.memory_space<vmem>>, %arg5: memref<31x64xf32, #tpu.memory_space<vmem>>, %arg6: memref<64x32xbf16, #tpu.memory_space<vmem>>, %arg7: memref<1x8x32xbf16, #tpu.memory_space<vmem>>, %arg8: memref<40x64xf32, #tpu.memory_space<vmem>>) attributes {dimension_semantics = [#tpu.dimension_semantics<parallel>], iteration_bounds = array<i64: 2>, scalar_prefetch = 0 : i64, scratch_operands = 1 : i64, tpu.core_type = #tpu.core_type<tc>, window_params = [{transform_indices = @transform_0, window_bounds = array<i64: 1, 8, 32>}, {pipeline_mode = #tpu.pipeline_mode<synchronous>, transform_indices = @transform_1, window_bounds = array<i64: 3, 32>}, {pipeline_mode = #tpu.pipeline_mode<synchronous>, transform_indices = @transform_2, window_bounds = array<i64: 4, 64>}, {pipeline_mode = #tpu.pipeline_mode<synchronous>, transform_indices = @transform_3, window_bounds = array<i64: 32, 64>}, {pipeline_mode = #tpu.pipeline_mode<synchronous>, transform_indices = @transform_4, window_bounds = array<i64: 31, 64>}, {pipeline_mode = #tpu.pipeline_mode<synchronous>, transform_indices = @transform_5, window_bounds = array<i64: 64, 32>}, {transform_indices = @transform_6, window_bounds = array<i64: 1, 8, 32>}]} {
    %c0 = arith.constant 0 : index
    %c0_0 = arith.constant 0 : index
    %c0_1 = arith.constant 0 : index
    %0 = vector.load %arg1[%c0, %c0_0, %c0_1] : memref<1x8x32xbf16, #tpu.memory_space<vmem>>, vector<1x8x32xbf16>
    %1 = vector.shape_cast %0 : vector<1x8x32xbf16> to vector<8x32xbf16>
    %2 = arith.extf %1 : vector<8x32xbf16> to vector<8x32xf32>
    %c0_2 = arith.constant 0 : index
    %c0_3 = arith.constant 0 : index
    %3 = vector.load %arg2[%c0_2, %c0_3] : memref<3x32xf32, #tpu.memory_space<vmem>>, vector<3x32xf32>
    %c0_4 = arith.constant 0 : index
    %c0_5 = arith.constant 0 : index
    %4 = vector.load %arg3[%c0_4, %c0_5] : memref<4x64xf32, #tpu.memory_space<vmem>>, vector<4x64xf32>
    %5 = vector.extract_strided_slice %3 {offsets = [0, 0], sizes = [1, 32], strides = [1, 1]} : vector<3x32xf32> to vector<1x32xf32>
    %6 = vector.extract_strided_slice %3 {offsets = [1, 0], sizes = [1, 32], strides = [1, 1]} : vector<3x32xf32> to vector<1x32xf32>
    %cst = arith.constant dense<0.000000e+00> : vector<8xf32>
    %7 = vector.multi_reduction <add>, %2, %cst [1] : vector<8x32xf32> to vector<8xf32>
    %8 = vector.shape_cast %7 : vector<8xf32> to vector<8x1xf32>
    %cst_6 = arith.constant 3.200000e+01 : f32
    %9 = vector.broadcast %cst_6 : f32 to vector<8x1xf32>
    %10 = arith.divf %8, %9 : vector<8x1xf32>
    %11 = arith.mulf %2, %2 : vector<8x32xf32>
    %cst_7 = arith.constant dense<0.000000e+00> : vector<8xf32>
    %12 = vector.multi_reduction <add>, %11, %cst_7 [1] : vector<8x32xf32> to vector<8xf32>
    %13 = vector.shape_cast %12 : vector<8xf32> to vector<8x1xf32>
    %cst_8 = arith.constant 3.200000e+01 : f32
    %14 = vector.broadcast %cst_8 : f32 to vector<8x1xf32>
    %15 = arith.divf %13, %14 : vector<8x1xf32>
    %16 = arith.mulf %10, %10 : vector<8x1xf32>
    %17 = arith.subf %15, %16 : vector<8x1xf32>
    %cst_9 = arith.constant 0.000000e+00 : f32
    %18 = vector.broadcast %cst_9 : f32 to vector<8x1xf32>
    %19 = arith.maximumf %17, %18 : vector<8x1xf32>
    %20 = vector.broadcast %10 : vector<8x1xf32> to vector<8x32xf32>
    %21 = arith.subf %2, %20 : vector<8x32xf32>
    %cst_10 = arith.constant 9.99999974E-6 : f32
    %22 = vector.broadcast %cst_10 : f32 to vector<8x1xf32>
    %23 = arith.addf %19, %22 : vector<8x1xf32>
    %24 = math.rsqrt %23 : vector<8x1xf32>
    %25 = vector.broadcast %24 : vector<8x1xf32> to vector<8x32xf32>
    %26 = arith.mulf %21, %25 : vector<8x32xf32>
    %27 = vector.broadcast %5 : vector<1x32xf32> to vector<8x32xf32>
    %28 = arith.mulf %26, %27 : vector<8x32xf32>
    %29 = vector.broadcast %6 : vector<1x32xf32> to vector<8x32xf32>
    %30 = arith.addf %28, %29 : vector<8x32xf32>
    %c0_11 = arith.constant 0 : index
    %c0_12 = arith.constant 0 : index
    %31 = vector.load %arg4[%c0_11, %c0_12] : memref<32x64xbf16, #tpu.memory_space<vmem>>, vector<32x64xbf16>
    %32 = arith.truncf %30 : vector<8x32xf32> to vector<8x32xbf16>
    %cst_13 = arith.constant dense<0.000000e+00> : vector<8x64xf32>
    %33 = tpu.matmul %32, %31, %cst_13 {dimension_numbers = #tpu.dot_dimension_numbers<[1], [0], [0], [1], [0, 0, 1, 1], [], []>} : vector<8x32xbf16>, vector<32x64xbf16>, vector<8x64xf32> -> vector<8x64xf32>
    %34 = vector.extract_strided_slice %4 {offsets = [0, 0], sizes = [1, 64], strides = [1, 1]} : vector<4x64xf32> to vector<1x64xf32>
    %35 = vector.broadcast %34 : vector<1x64xf32> to vector<8x64xf32>
    %36 = arith.addf %33, %35 : vector<8x64xf32>
    %cst_14 = arith.constant 0.000000e+00 : f32
    %37 = vector.broadcast %cst_14 : f32 to vector<16x64xf32>
    %c0_15 = arith.constant 0 : index
    %c0_16 = arith.constant 0 : index
    %38 = vector.load %arg8[%c0_15, %c0_16] : memref<40x64xf32, #tpu.memory_space<vmem>>, vector<16x64xf32>
    tpu.vector_store %arg8[%c0_15, %c0_16], %37 {strides = array<i32>} : memref<40x64xf32, #tpu.memory_space<vmem>>, vector<16x64xf32>,
    %c24 = arith.constant 24 : index
    %c0_17 = arith.constant 0 : index
    %39 = vector.load %arg8[%c24, %c0_17] : memref<40x64xf32, #tpu.memory_space<vmem>>, vector<16x64xf32>
    tpu.vector_store %arg8[%c24, %c0_17], %37 {strides = array<i32>} : memref<40x64xf32, #tpu.memory_space<vmem>>, vector<16x64xf32>,
    %c16 = arith.constant 16 : index
    %c0_18 = arith.constant 0 : index
    %40 = vector.load %arg8[%c16, %c0_18] : memref<40x64xf32, #tpu.memory_space<vmem>>, vector<8x64xf32>
    tpu.vector_store %arg8[%c16, %c0_18], %36 {strides = array<i32>} : memref<40x64xf32, #tpu.memory_space<vmem>>, vector<8x64xf32>,
    %c0_19 = arith.constant 0 : index
    %c0_20 = arith.constant 0 : index
    %41 = vector.load %arg5[%c0_19, %c0_20] : memref<31x64xf32, #tpu.memory_space<vmem>>, vector<31x64xf32>
    %42 = vector.extract_strided_slice %4 {offsets = [1, 0], sizes = [1, 64], strides = [1, 1]} : vector<4x64xf32> to vector<1x64xf32>
    %cst_21 = arith.constant 0.000000e+00 : f32
    %43 = vector.broadcast %cst_21 : f32 to vector<8x64xf32>
    %44 = vector.broadcast %42 : vector<1x64xf32> to vector<8x64xf32>
    %45 = arith.addf %44, %43 : vector<8x64xf32>
    %c1 = arith.constant 1 : index
    %c0_22 = arith.constant 0 : index
    %46 = vector.load %arg8[%c1, %c0_22] : memref<40x64xf32, #tpu.memory_space<vmem>>, vector<8x64xf32>
    %47 = vector.extract_strided_slice %41 {offsets = [0, 0], sizes = [1, 64], strides = [1, 1]} : vector<31x64xf32> to vector<1x64xf32>
    %48 = vector.broadcast %47 : vector<1x64xf32> to vector<8x64xf32>
    %49 = arith.mulf %46, %48 : vector<8x64xf32>
    %50 = arith.addf %45, %49 : vector<8x64xf32>
    %c2 = arith.constant 2 : index
    %c0_23 = arith.constant 0 : index
    %51 = vector.load %arg8[%c2, %c0_23] : memref<40x64xf32, #tpu.memory_space<vmem>>, vector<8x64xf32>
    %52 = vector.extract_strided_slice %41 {offsets = [1, 0], sizes = [1, 64], strides = [1, 1]} : vector<31x64xf32> to vector<1x64xf32>
    %53 = vector.broadcast %52 : vector<1x64xf32> to vector<8x64xf32>
    %54 = arith.mulf %51, %53 : vector<8x64xf32>
    %55 = arith.addf %50, %54 : vector<8x64xf32>
    %c3 = arith.constant 3 : index
    %c0_24 = arith.constant 0 : index
    %56 = vector.load %arg8[%c3, %c0_24] : memref<40x64xf32, #tpu.memory_space<vmem>>, vector<8x64xf32>
    %57 = vector.extract_strided_slice %41 {offsets = [2, 0], sizes = [1, 64], strides = [1, 1]} : vector<31x64xf32> to vector<1x64xf32>
    %58 = vector.broadcast %57 : vector<1x64xf32> to vector<8x64xf32>
    %59 = arith.mulf %56, %58 : vector<8x64xf32>
    %60 = arith.addf %55, %59 : vector<8x64xf32>
    %c4 = arith.constant 4 : index
    %c0_25 = arith.constant 0 : index
    %61 = vector.load %arg8[%c4, %c0_25] : memref<40x64xf32, #tpu.memory_space<vmem>>, vector<8x64xf32>
    %62 = vector.extract_strided_slice %41 {offsets = [3, 0], sizes = [1, 64], strides = [1, 1]} : vector<31x64xf32> to vector<1x64xf32>
    %63 = vector.broadcast %62 : vector<1x64xf32> to vector<8x64xf32>
    %64 = arith.mulf %61, %63 : vector<8x64xf32>
    %65 = arith.addf %60, %64 : vector<8x64xf32>
    %c5 = arith.constant 5 : index
    %c0_26 = arith.constant 0 : index
    %66 = vector.load %arg8[%c5, %c0_26] : memref<40x64xf32, #tpu.memory_space<vmem>>, vector<8x64xf32>
    %67 = vector.extract_strided_slice %41 {offsets = [4, 0], sizes = [1, 64], strides = [1, 1]} : vector<31x64xf32> to vector<1x64xf32>
    %68 = vector.broadcast %67 : vector<1x64xf32> to vector<8x64xf32>
    %69 = arith.mulf %66, %68 : vector<8x64xf32>
    %70 = arith.addf %65, %69 : vector<8x64xf32>
    %c6 = arith.constant 6 : index
    %c0_27 = arith.constant 0 : index
    %71 = vector.load %arg8[%c6, %c0_27] : memref<40x64xf32, #tpu.memory_space<vmem>>, vector<8x64xf32>
    %72 = vector.extract_strided_slice %41 {offsets = [5, 0], sizes = [1, 64], strides = [1, 1]} : vector<31x64xf32> to vector<1x64xf32>
    %73 = vector.broadcast %72 : vector<1x64xf32> to vector<8x64xf32>
    %74 = arith.mulf %71, %73 : vector<8x64xf32>
    %75 = arith.addf %70, %74 : vector<8x64xf32>
    %c7 = arith.constant 7 : index
    %c0_28 = arith.constant 0 : index
    %76 = vector.load %arg8[%c7, %c0_28] : memref<40x64xf32, #tpu.memory_space<vmem>>, vector<8x64xf32>
    %77 = vector.extract_strided_slice %41 {offsets = [6, 0], sizes = [1, 64], strides = [1, 1]} : vector<31x64xf32> to vector<1x64xf32>
    %78 = vector.broadcast %77 : vector<1x64xf32> to vector<8x64xf32>
    %79 = arith.mulf %76, %78 : vector<8x64xf32>
    %80 = arith.addf %75, %79 : vector<8x64xf32>
    %c8 = arith.constant 8 : index
    %c0_29 = arith.constant 0 : index
    %81 = vector.load %arg8[%c8, %c0_29] : memref<40x64xf32, #tpu.memory_space<vmem>>, vector<8x64xf32>
    %82 = vector.extract_strided_slice %41 {offsets = [7, 0], sizes = [1, 64], strides = [1, 1]} : vector<31x64xf32> to vector<1x64xf32>
    %83 = vector.broadcast %82 : vector<1x64xf32> to vector<8x64xf32>
    %84 = arith.mulf %81, %83 : vector<8x64xf32>
    %85 = arith.addf %80, %84 : vector<8x64xf32>
    %c9 = arith.constant 9 : index
    %c0_30 = arith.constant 0 : index
    %86 = vector.load %arg8[%c9, %c0_30] : memref<40x64xf32, #tpu.memory_space<vmem>>, vector<8x64xf32>
    %87 = vector.extract_strided_slice %41 {offsets = [8, 0], sizes = [1, 64], strides = [1, 1]} : vector<31x64xf32> to vector<1x64xf32>
    %88 = vector.broadcast %87 : vector<1x64xf32> to vector<8x64xf32>
    %89 = arith.mulf %86, %88 : vector<8x64xf32>
    %90 = arith.addf %85, %89 : vector<8x64xf32>
    %c10 = arith.constant 10 : index
    %c0_31 = arith.constant 0 : index
    %91 = vector.load %arg8[%c10, %c0_31] : memref<40x64xf32, #tpu.memory_space<vmem>>, vector<8x64xf32>
    %92 = vector.extract_strided_slice %41 {offsets = [9, 0], sizes = [1, 64], strides = [1, 1]} : vector<31x64xf32> to vector<1x64xf32>
    %93 = vector.broadcast %92 : vector<1x64xf32> to vector<8x64xf32>
    %94 = arith.mulf %91, %93 : vector<8x64xf32>
    %95 = arith.addf %90, %94 : vector<8x64xf32>
    %c11 = arith.constant 11 : index
    %c0_32 = arith.constant 0 : index
    %96 = vector.load %arg8[%c11, %c0_32] : memref<40x64xf32, #tpu.memory_space<vmem>>, vector<8x64xf32>
    %97 = vector.extract_strided_slice %41 {offsets = [10, 0], sizes = [1, 64], strides = [1, 1]} : vector<31x64xf32> to vector<1x64xf32>
    %98 = vector.broadcast %97 : vector<1x64xf32> to vector<8x64xf32>
    %99 = arith.mulf %96, %98 : vector<8x64xf32>
    %100 = arith.addf %95, %99 : vector<8x64xf32>
    %c12 = arith.constant 12 : index
    %c0_33 = arith.constant 0 : index
    %101 = vector.load %arg8[%c12, %c0_33] : memref<40x64xf32, #tpu.memory_space<vmem>>, vector<8x64xf32>
    %102 = vector.extract_strided_slice %41 {offsets = [11, 0], sizes = [1, 64], strides = [1, 1]} : vector<31x64xf32> to vector<1x64xf32>
    %103 = vector.broadcast %102 : vector<1x64xf32> to vector<8x64xf32>
    %104 = arith.mulf %101, %103 : vector<8x64xf32>
    %105 = arith.addf %100, %104 : vector<8x64xf32>
    %c13 = arith.constant 13 : index
    %c0_34 = arith.constant 0 : index
    %106 = vector.load %arg8[%c13, %c0_34] : memref<40x64xf32, #tpu.memory_space<vmem>>, vector<8x64xf32>
    %107 = vector.extract_strided_slice %41 {offsets = [12, 0], sizes = [1, 64], strides = [1, 1]} : vector<31x64xf32> to vector<1x64xf32>
    %108 = vector.broadcast %107 : vector<1x64xf32> to vector<8x64xf32>
    %109 = arith.mulf %106, %108 : vector<8x64xf32>
    %110 = arith.addf %105, %109 : vector<8x64xf32>
    %c14 = arith.constant 14 : index
    %c0_35 = arith.constant 0 : index
    %111 = vector.load %arg8[%c14, %c0_35] : memref<40x64xf32, #tpu.memory_space<vmem>>, vector<8x64xf32>
    %112 = vector.extract_strided_slice %41 {offsets = [13, 0], sizes = [1, 64], strides = [1, 1]} : vector<31x64xf32> to vector<1x64xf32>
    %113 = vector.broadcast %112 : vector<1x64xf32> to vector<8x64xf32>
    %114 = arith.mulf %111, %113 : vector<8x64xf32>
    %115 = arith.addf %110, %114 : vector<8x64xf32>
    %c15 = arith.constant 15 : index
    %c0_36 = arith.constant 0 : index
    %116 = vector.load %arg8[%c15, %c0_36] : memref<40x64xf32, #tpu.memory_space<vmem>>, vector<8x64xf32>
    %117 = vector.extract_strided_slice %41 {offsets = [14, 0], sizes = [1, 64], strides = [1, 1]} : vector<31x64xf32> to vector<1x64xf32>
    %118 = vector.broadcast %117 : vector<1x64xf32> to vector<8x64xf32>
    %119 = arith.mulf %116, %118 : vector<8x64xf32>
    %120 = arith.addf %115, %119 : vector<8x64xf32>
    %c16_37 = arith.constant 16 : index
    %c0_38 = arith.constant 0 : index
    %121 = vector.load %arg8[%c16_37, %c0_38] : memref<40x64xf32, #tpu.memory_space<vmem>>, vector<8x64xf32>
    %122 = vector.extract_strided_slice %41 {offsets = [15, 0], sizes = [1, 64], strides = [1, 1]} : vector<31x64xf32> to vector<1x64xf32>
    %123 = vector.broadcast %122 : vector<1x64xf32> to vector<8x64xf32>
    %124 = arith.mulf %121, %123 : vector<8x64xf32>
    %125 = arith.addf %120, %124 : vector<8x64xf32>
    %c17 = arith.constant 17 : index
    %c0_39 = arith.constant 0 : index
    %126 = vector.load %arg8[%c17, %c0_39] : memref<40x64xf32, #tpu.memory_space<vmem>>, vector<8x64xf32>
    %127 = vector.extract_strided_slice %41 {offsets = [16, 0], sizes = [1, 64], strides = [1, 1]} : vector<31x64xf32> to vector<1x64xf32>
    %128 = vector.broadcast %127 : vector<1x64xf32> to vector<8x64xf32>
    %129 = arith.mulf %126, %128 : vector<8x64xf32>
    %130 = arith.addf %125, %129 : vector<8x64xf32>
    %c18 = arith.constant 18 : index
    %c0_40 = arith.constant 0 : index
    %131 = vector.load %arg8[%c18, %c0_40] : memref<40x64xf32, #tpu.memory_space<vmem>>, vector<8x64xf32>
    %132 = vector.extract_strided_slice %41 {offsets = [17, 0], sizes = [1, 64], strides = [1, 1]} : vector<31x64xf32> to vector<1x64xf32>
    %133 = vector.broadcast %132 : vector<1x64xf32> to vector<8x64xf32>
    %134 = arith.mulf %131, %133 : vector<8x64xf32>
    %135 = arith.addf %130, %134 : vector<8x64xf32>
    %c19 = arith.constant 19 : index
    %c0_41 = arith.constant 0 : index
    %136 = vector.load %arg8[%c19, %c0_41] : memref<40x64xf32, #tpu.memory_space<vmem>>, vector<8x64xf32>
    %137 = vector.extract_strided_slice %41 {offsets = [18, 0], sizes = [1, 64], strides = [1, 1]} : vector<31x64xf32> to vector<1x64xf32>
    %138 = vector.broadcast %137 : vector<1x64xf32> to vector<8x64xf32>
    %139 = arith.mulf %136, %138 : vector<8x64xf32>
    %140 = arith.addf %135, %139 : vector<8x64xf32>
    %c20 = arith.constant 20 : index
    %c0_42 = arith.constant 0 : index
    %141 = vector.load %arg8[%c20, %c0_42] : memref<40x64xf32, #tpu.memory_space<vmem>>, vector<8x64xf32>
    %142 = vector.extract_strided_slice %41 {offsets = [19, 0], sizes = [1, 64], strides = [1, 1]} : vector<31x64xf32> to vector<1x64xf32>
    %143 = vector.broadcast %142 : vector<1x64xf32> to vector<8x64xf32>
    %144 = arith.mulf %141, %143 : vector<8x64xf32>
    %145 = arith.addf %140, %144 : vector<8x64xf32>
    %c21 = arith.constant 21 : index
    %c0_43 = arith.constant 0 : index
    %146 = vector.load %arg8[%c21, %c0_43] : memref<40x64xf32, #tpu.memory_space<vmem>>, vector<8x64xf32>
    %147 = vector.extract_strided_slice %41 {offsets = [20, 0], sizes = [1, 64], strides = [1, 1]} : vector<31x64xf32> to vector<1x64xf32>
    %148 = vector.broadcast %147 : vector<1x64xf32> to vector<8x64xf32>
    %149 = arith.mulf %146, %148 : vector<8x64xf32>
    %150 = arith.addf %145, %149 : vector<8x64xf32>
    %c22 = arith.constant 22 : index
    %c0_44 = arith.constant 0 : index
    %151 = vector.load %arg8[%c22, %c0_44] : memref<40x64xf32, #tpu.memory_space<vmem>>, vector<8x64xf32>
    %152 = vector.extract_strided_slice %41 {offsets = [21, 0], sizes = [1, 64], strides = [1, 1]} : vector<31x64xf32> to vector<1x64xf32>
    %153 = vector.broadcast %152 : vector<1x64xf32> to vector<8x64xf32>
    %154 = arith.mulf %151, %153 : vector<8x64xf32>
    %155 = arith.addf %150, %154 : vector<8x64xf32>
    %c23 = arith.constant 23 : index
    %c0_45 = arith.constant 0 : index
    %156 = vector.load %arg8[%c23, %c0_45] : memref<40x64xf32, #tpu.memory_space<vmem>>, vector<8x64xf32>
    %157 = vector.extract_strided_slice %41 {offsets = [22, 0], sizes = [1, 64], strides = [1, 1]} : vector<31x64xf32> to vector<1x64xf32>
    %158 = vector.broadcast %157 : vector<1x64xf32> to vector<8x64xf32>
    %159 = arith.mulf %156, %158 : vector<8x64xf32>
    %160 = arith.addf %155, %159 : vector<8x64xf32>
    %c24_46 = arith.constant 24 : index
    %c0_47 = arith.constant 0 : index
    %161 = vector.load %arg8[%c24_46, %c0_47] : memref<40x64xf32, #tpu.memory_space<vmem>>, vector<8x64xf32>
    %162 = vector.extract_strided_slice %41 {offsets = [23, 0], sizes = [1, 64], strides = [1, 1]} : vector<31x64xf32> to vector<1x64xf32>
    %163 = vector.broadcast %162 : vector<1x64xf32> to vector<8x64xf32>
    %164 = arith.mulf %161, %163 : vector<8x64xf32>
    %165 = arith.addf %160, %164 : vector<8x64xf32>
    %c25 = arith.constant 25 : index
    %c0_48 = arith.constant 0 : index
    %166 = vector.load %arg8[%c25, %c0_48] : memref<40x64xf32, #tpu.memory_space<vmem>>, vector<8x64xf32>
    %167 = vector.extract_strided_slice %41 {offsets = [24, 0], sizes = [1, 64], strides = [1, 1]} : vector<31x64xf32> to vector<1x64xf32>
    %168 = vector.broadcast %167 : vector<1x64xf32> to vector<8x64xf32>
    %169 = arith.mulf %166, %168 : vector<8x64xf32>
    %170 = arith.addf %165, %169 : vector<8x64xf32>
    %c26 = arith.constant 26 : index
    %c0_49 = arith.constant 0 : index
    %171 = vector.load %arg8[%c26, %c0_49] : memref<40x64xf32, #tpu.memory_space<vmem>>, vector<8x64xf32>
    %172 = vector.extract_strided_slice %41 {offsets = [25, 0], sizes = [1, 64], strides = [1, 1]} : vector<31x64xf32> to vector<1x64xf32>
    %173 = vector.broadcast %172 : vector<1x64xf32> to vector<8x64xf32>
    %174 = arith.mulf %171, %173 : vector<8x64xf32>
    %175 = arith.addf %170, %174 : vector<8x64xf32>
    %c27 = arith.constant 27 : index
    %c0_50 = arith.constant 0 : index
    %176 = vector.load %arg8[%c27, %c0_50] : memref<40x64xf32, #tpu.memory_space<vmem>>, vector<8x64xf32>
    %177 = vector.extract_strided_slice %41 {offsets = [26, 0], sizes = [1, 64], strides = [1, 1]} : vector<31x64xf32> to vector<1x64xf32>
    %178 = vector.broadcast %177 : vector<1x64xf32> to vector<8x64xf32>
    %179 = arith.mulf %176, %178 : vector<8x64xf32>
    %180 = arith.addf %175, %179 : vector<8x64xf32>
    %c28 = arith.constant 28 : index
    %c0_51 = arith.constant 0 : index
    %181 = vector.load %arg8[%c28, %c0_51] : memref<40x64xf32, #tpu.memory_space<vmem>>, vector<8x64xf32>
    %182 = vector.extract_strided_slice %41 {offsets = [27, 0], sizes = [1, 64], strides = [1, 1]} : vector<31x64xf32> to vector<1x64xf32>
    %183 = vector.broadcast %182 : vector<1x64xf32> to vector<8x64xf32>
    %184 = arith.mulf %181, %183 : vector<8x64xf32>
    %185 = arith.addf %180, %184 : vector<8x64xf32>
    %c29 = arith.constant 29 : index
    %c0_52 = arith.constant 0 : index
    %186 = vector.load %arg8[%c29, %c0_52] : memref<40x64xf32, #tpu.memory_space<vmem>>, vector<8x64xf32>
    %187 = vector.extract_strided_slice %41 {offsets = [28, 0], sizes = [1, 64], strides = [1, 1]} : vector<31x64xf32> to vector<1x64xf32>
    %188 = vector.broadcast %187 : vector<1x64xf32> to vector<8x64xf32>
    %189 = arith.mulf %186, %188 : vector<8x64xf32>
    %190 = arith.addf %185, %189 : vector<8x64xf32>
    %c30 = arith.constant 30 : index
    %c0_53 = arith.constant 0 : index
    %191 = vector.load %arg8[%c30, %c0_53] : memref<40x64xf32, #tpu.memory_space<vmem>>, vector<8x64xf32>
    %192 = vector.extract_strided_slice %41 {offsets = [29, 0], sizes = [1, 64], strides = [1, 1]} : vector<31x64xf32> to vector<1x64xf32>
    %193 = vector.broadcast %192 : vector<1x64xf32> to vector<8x64xf32>
    %194 = arith.mulf %191, %193 : vector<8x64xf32>
    %195 = arith.addf %190, %194 : vector<8x64xf32>
    %c31 = arith.constant 31 : index
    %c0_54 = arith.constant 0 : index
    %196 = vector.load %arg8[%c31, %c0_54] : memref<40x64xf32, #tpu.memory_space<vmem>>, vector<8x64xf32>
    %197 = vector.extract_strided_slice %41 {offsets = [30, 0], sizes = [1, 64], strides = [1, 1]} : vector<31x64xf32> to vector<1x64xf32>
    %198 = vector.broadcast %197 : vector<1x64xf32> to vector<8x64xf32>
    %199 = arith.mulf %196, %198 : vector<8x64xf32>
    %200 = arith.addf %195, %199 : vector<8x64xf32>
    %201 = vector.extract_strided_slice %4 {offsets = [2, 0], sizes = [1, 64], strides = [1, 1]} : vector<4x64xf32> to vector<1x64xf32>
    %202 = vector.broadcast %201 : vector<1x64xf32> to vector<8x64xf32>
    %203 = arith.mulf %200, %202 : vector<8x64xf32>
    %204 = vector.extract_strided_slice %4 {offsets = [3, 0], sizes = [1, 64], strides = [1, 1]} : vector<4x64xf32> to vector<1x64xf32>
    %205 = vector.broadcast %204 : vector<1x64xf32> to vector<8x64xf32>
    %206 = arith.addf %203, %205 : vector<8x64xf32>
    %207 = arith.negf %206 : vector<8x64xf32>
    %208 = math.exp %207 : vector<8x64xf32>
    %cst_55 = arith.constant 1.000000e+00 : f32
    %209 = vector.broadcast %cst_55 : f32 to vector<8x64xf32>
    %210 = arith.addf %209, %208 : vector<8x64xf32>
    %211 = arith.divf %209, %210 : vector<8x64xf32>
    %212 = arith.mulf %206, %211 : vector<8x64xf32>
    %c0_56 = arith.constant 0 : index
    %c0_57 = arith.constant 0 : index
    %213 = vector.load %arg6[%c0_56, %c0_57] : memref<64x32xbf16, #tpu.memory_space<vmem>>, vector<64x32xbf16>
    %214 = arith.truncf %212 : vector<8x64xf32> to vector<8x64xbf16>
    %cst_58 = arith.constant dense<0.000000e+00> : vector<8x32xf32>
    %215 = tpu.matmul %214, %213, %cst_58 {dimension_numbers = #tpu.dot_dimension_numbers<[1], [0], [0], [1], [0, 0, 1, 1], [], []>} : vector<8x64xbf16>, vector<64x32xbf16>, vector<8x32xf32> -> vector<8x32xf32>
    %216 = vector.extract_strided_slice %3 {offsets = [2, 0], sizes = [1, 32], strides = [1, 1]} : vector<3x32xf32> to vector<1x32xf32>
    %217 = vector.broadcast %216 : vector<1x32xf32> to vector<8x32xf32>
    %218 = arith.addf %215, %217 : vector<8x32xf32>
    %219 = arith.addf %2, %218 : vector<8x32xf32>
    %220 = arith.truncf %219 : vector<8x32xf32> to vector<8x32xbf16>
    %c0_59 = arith.constant 0 : index
    %c0_60 = arith.constant 0 : index
    %c0_61 = arith.constant 0 : index
    %221 = vector.load %arg7[%c0_59, %c0_60, %c0_61] : memref<1x8x32xbf16, #tpu.memory_space<vmem>>, vector<1x8x32xbf16>
    %222 = vector.shape_cast %221 : vector<1x8x32xbf16> to vector<8x32xbf16>
    %223 = vector.shape_cast %220 : vector<8x32xbf16> to vector<1x8x32xbf16>
    tpu.vector_store %arg7[%c0_59, %c0_60, %c0_61], %223 {strides = array<i32>} : memref<1x8x32xbf16, #tpu.memory_space<vmem>>, vector<1x8x32xbf16>,
    return
  }
  func.func @transform_0(%arg0: i32) -> (i32, i32, i32) {
    %c0_i32 = arith.constant 0 : i32
    %c0_i32_0 = arith.constant 0 : i32
    %c0_i32_1 = arith.constant 0 : i32
    return %arg0, %c0_i32, %c0_i32_0 : i32, i32, i32
  }
  func.func @transform_1(%arg0: i32) -> (i32, i32) {
    %c0_i32 = arith.constant 0 : i32
    %c0_i32_0 = arith.constant 0 : i32
    %c0_i32_1 = arith.constant 0 : i32
    return %c0_i32, %c0_i32_0 : i32, i32
  }
  func.func @transform_2(%arg0: i32) -> (i32, i32) {
    %c0_i32 = arith.constant 0 : i32
    %c0_i32_0 = arith.constant 0 : i32
    %c0_i32_1 = arith.constant 0 : i32
    return %c0_i32, %c0_i32_0 : i32, i32
  }
  func.func @transform_3(%arg0: i32) -> (i32, i32) {
    %c0_i32 = arith.constant 0 : i32
    %c0_i32_0 = arith.constant 0 : i32
    %c0_i32_1 = arith.constant 0 : i32
    return %c0_i32, %c0_i32_0 : i32, i32
  }
  func.func @transform_4(%arg0: i32) -> (i32, i32) {
    %c0_i32 = arith.constant 0 : i32
    %c0_i32_0 = arith.constant 0 : i32
    %c0_i32_1 = arith.constant 0 : i32
    return %c0_i32, %c0_i32_0 : i32, i32
  }
  func.func @transform_5(%arg0: i32) -> (i32, i32) {
    %c0_i32 = arith.constant 0 : i32
    %c0_i32_0 = arith.constant 0 : i32
    %c0_i32_1 = arith.constant 0 : i32
    return %c0_i32, %c0_i32_0 : i32, i32
  }
  func.func @transform_6(%arg0: i32) -> (i32, i32, i32) {
    %c0_i32 = arith.constant 0 : i32
    %c0_i32_0 = arith.constant 0 : i32
    %c0_i32_1 = arith.constant 0 : i32
    return %arg0, %c0_i32, %c0_i32_0 : i32, i32, i32
  }
}

module attributes {stable_mosaic.version = 11 : i64} {
  func.func @_ff_fused_kernel(%arg0: i32, %arg1: memref<16x32xbf16, #tpu.memory_space<vmem>>, %arg2: memref<7x32xf32, #tpu.memory_space<vmem>>, %arg3: memref<32x128xbf16, #tpu.memory_space<vmem>>, %arg4: memref<1x128xf32, #tpu.memory_space<vmem>>, %arg5: memref<128x32xbf16, #tpu.memory_space<vmem>>, %arg6: memref<16x32xbf16, #tpu.memory_space<vmem>>) attributes {dimension_semantics = [#tpu.dimension_semantics<parallel>], iteration_bounds = array<i64: 1>, scalar_prefetch = 0 : i64, scratch_operands = 0 : i64, tpu.core_type = #tpu.core_type<tc>, window_params = [{transform_indices = @transform_0, window_bounds = array<i64: 16, 32>}, {pipeline_mode = #tpu.pipeline_mode<synchronous>, transform_indices = @transform_1, window_bounds = array<i64: 7, 32>}, {pipeline_mode = #tpu.pipeline_mode<synchronous>, transform_indices = @transform_2, window_bounds = array<i64: 32, 128>}, {pipeline_mode = #tpu.pipeline_mode<synchronous>, transform_indices = @transform_3, window_bounds = array<i64: 1, 128>}, {pipeline_mode = #tpu.pipeline_mode<synchronous>, transform_indices = @transform_4, window_bounds = array<i64: 128, 32>}, {transform_indices = @transform_5, window_bounds = array<i64: 16, 32>}]} {
    %c0 = arith.constant 0 : index
    %c0_0 = arith.constant 0 : index
    %0 = vector.load %arg1[%c0, %c0_0] : memref<16x32xbf16, #tpu.memory_space<vmem>>, vector<16x32xbf16>
    %1 = arith.extf %0 : vector<16x32xbf16> to vector<16x32xf32>
    %c0_1 = arith.constant 0 : index
    %c0_2 = arith.constant 0 : index
    %2 = vector.load %arg2[%c0_1, %c0_2] : memref<7x32xf32, #tpu.memory_space<vmem>>, vector<7x32xf32>
    %3 = vector.extract_strided_slice %2 {offsets = [0, 0], sizes = [1, 32], strides = [1, 1]} : vector<7x32xf32> to vector<1x32xf32>
    %4 = vector.extract_strided_slice %2 {offsets = [1, 0], sizes = [1, 32], strides = [1, 1]} : vector<7x32xf32> to vector<1x32xf32>
    %cst = arith.constant dense<0.000000e+00> : vector<16xf32>
    %5 = vector.multi_reduction <add>, %1, %cst [1] : vector<16x32xf32> to vector<16xf32>
    %6 = vector.shape_cast %5 : vector<16xf32> to vector<16x1xf32>
    %cst_3 = arith.constant 3.200000e+01 : f32
    %7 = vector.broadcast %cst_3 : f32 to vector<16x1xf32>
    %8 = arith.divf %6, %7 : vector<16x1xf32>
    %9 = arith.mulf %1, %1 : vector<16x32xf32>
    %cst_4 = arith.constant dense<0.000000e+00> : vector<16xf32>
    %10 = vector.multi_reduction <add>, %9, %cst_4 [1] : vector<16x32xf32> to vector<16xf32>
    %11 = vector.shape_cast %10 : vector<16xf32> to vector<16x1xf32>
    %cst_5 = arith.constant 3.200000e+01 : f32
    %12 = vector.broadcast %cst_5 : f32 to vector<16x1xf32>
    %13 = arith.divf %11, %12 : vector<16x1xf32>
    %14 = arith.mulf %8, %8 : vector<16x1xf32>
    %15 = arith.subf %13, %14 : vector<16x1xf32>
    %cst_6 = arith.constant 0.000000e+00 : f32
    %16 = vector.broadcast %cst_6 : f32 to vector<16x1xf32>
    %17 = arith.maximumf %15, %16 : vector<16x1xf32>
    %18 = vector.broadcast %8 : vector<16x1xf32> to vector<16x32xf32>
    %19 = arith.subf %1, %18 : vector<16x32xf32>
    %cst_7 = arith.constant 9.99999974E-6 : f32
    %20 = vector.broadcast %cst_7 : f32 to vector<16x1xf32>
    %21 = arith.addf %17, %20 : vector<16x1xf32>
    %22 = math.rsqrt %21 : vector<16x1xf32>
    %23 = vector.broadcast %22 : vector<16x1xf32> to vector<16x32xf32>
    %24 = arith.mulf %19, %23 : vector<16x32xf32>
    %25 = vector.broadcast %3 : vector<1x32xf32> to vector<16x32xf32>
    %26 = arith.mulf %24, %25 : vector<16x32xf32>
    %27 = vector.broadcast %4 : vector<1x32xf32> to vector<16x32xf32>
    %28 = arith.addf %26, %27 : vector<16x32xf32>
    %29 = vector.extract_strided_slice %2 {offsets = [2, 0], sizes = [1, 32], strides = [1, 1]} : vector<7x32xf32> to vector<1x32xf32>
    %30 = vector.extract_strided_slice %2 {offsets = [3, 0], sizes = [1, 32], strides = [1, 1]} : vector<7x32xf32> to vector<1x32xf32>
    %cst_8 = arith.constant dense<0.000000e+00> : vector<16xf32>
    %31 = vector.multi_reduction <add>, %28, %cst_8 [1] : vector<16x32xf32> to vector<16xf32>
    %32 = vector.shape_cast %31 : vector<16xf32> to vector<16x1xf32>
    %cst_9 = arith.constant 3.200000e+01 : f32
    %33 = vector.broadcast %cst_9 : f32 to vector<16x1xf32>
    %34 = arith.divf %32, %33 : vector<16x1xf32>
    %35 = arith.mulf %28, %28 : vector<16x32xf32>
    %cst_10 = arith.constant dense<0.000000e+00> : vector<16xf32>
    %36 = vector.multi_reduction <add>, %35, %cst_10 [1] : vector<16x32xf32> to vector<16xf32>
    %37 = vector.shape_cast %36 : vector<16xf32> to vector<16x1xf32>
    %cst_11 = arith.constant 3.200000e+01 : f32
    %38 = vector.broadcast %cst_11 : f32 to vector<16x1xf32>
    %39 = arith.divf %37, %38 : vector<16x1xf32>
    %40 = arith.mulf %34, %34 : vector<16x1xf32>
    %41 = arith.subf %39, %40 : vector<16x1xf32>
    %cst_12 = arith.constant 0.000000e+00 : f32
    %42 = vector.broadcast %cst_12 : f32 to vector<16x1xf32>
    %43 = arith.maximumf %41, %42 : vector<16x1xf32>
    %44 = vector.broadcast %34 : vector<16x1xf32> to vector<16x32xf32>
    %45 = arith.subf %28, %44 : vector<16x32xf32>
    %cst_13 = arith.constant 9.99999974E-6 : f32
    %46 = vector.broadcast %cst_13 : f32 to vector<16x1xf32>
    %47 = arith.addf %43, %46 : vector<16x1xf32>
    %48 = math.rsqrt %47 : vector<16x1xf32>
    %49 = vector.broadcast %48 : vector<16x1xf32> to vector<16x32xf32>
    %50 = arith.mulf %45, %49 : vector<16x32xf32>
    %51 = vector.broadcast %29 : vector<1x32xf32> to vector<16x32xf32>
    %52 = arith.mulf %50, %51 : vector<16x32xf32>
    %53 = vector.broadcast %30 : vector<1x32xf32> to vector<16x32xf32>
    %54 = arith.addf %52, %53 : vector<16x32xf32>
    %c0_14 = arith.constant 0 : index
    %c0_15 = arith.constant 0 : index
    %55 = vector.load %arg3[%c0_14, %c0_15] : memref<32x128xbf16, #tpu.memory_space<vmem>>, vector<32x128xbf16>
    %56 = arith.truncf %54 : vector<16x32xf32> to vector<16x32xbf16>
    %cst_16 = arith.constant dense<0.000000e+00> : vector<16x128xf32>
    %57 = tpu.matmul %56, %55, %cst_16 {dimension_numbers = #tpu.dot_dimension_numbers<[1], [0], [0], [1], [0, 0, 1, 1], [], []>} : vector<16x32xbf16>, vector<32x128xbf16>, vector<16x128xf32> -> vector<16x128xf32>
    %c0_17 = arith.constant 0 : index
    %c0_18 = arith.constant 0 : index
    %58 = vector.load %arg4[%c0_17, %c0_18] : memref<1x128xf32, #tpu.memory_space<vmem>>, vector<1x128xf32>
    %59 = vector.broadcast %58 : vector<1x128xf32> to vector<16x128xf32>
    %60 = arith.addf %57, %59 : vector<16x128xf32>
    %61 = arith.negf %60 : vector<16x128xf32>
    %62 = math.exp %61 : vector<16x128xf32>
    %cst_19 = arith.constant 1.000000e+00 : f32
    %63 = vector.broadcast %cst_19 : f32 to vector<16x128xf32>
    %64 = arith.addf %63, %62 : vector<16x128xf32>
    %65 = arith.divf %63, %64 : vector<16x128xf32>
    %66 = arith.mulf %60, %65 : vector<16x128xf32>
    %c0_20 = arith.constant 0 : index
    %c0_21 = arith.constant 0 : index
    %67 = vector.load %arg5[%c0_20, %c0_21] : memref<128x32xbf16, #tpu.memory_space<vmem>>, vector<128x32xbf16>
    %68 = arith.truncf %66 : vector<16x128xf32> to vector<16x128xbf16>
    %cst_22 = arith.constant dense<0.000000e+00> : vector<16x32xf32>
    %69 = tpu.matmul %68, %67, %cst_22 {dimension_numbers = #tpu.dot_dimension_numbers<[1], [0], [0], [1], [0, 0, 1, 1], [], []>} : vector<16x128xbf16>, vector<128x32xbf16>, vector<16x32xf32> -> vector<16x32xf32>
    %70 = vector.extract_strided_slice %2 {offsets = [4, 0], sizes = [1, 32], strides = [1, 1]} : vector<7x32xf32> to vector<1x32xf32>
    %71 = vector.broadcast %70 : vector<1x32xf32> to vector<16x32xf32>
    %72 = arith.addf %69, %71 : vector<16x32xf32>
    %cst_23 = arith.constant 5.000000e-01 : f32
    %73 = vector.broadcast %cst_23 : f32 to vector<16x32xf32>
    %74 = arith.mulf %73, %72 : vector<16x32xf32>
    %75 = arith.addf %1, %74 : vector<16x32xf32>
    %76 = vector.extract_strided_slice %2 {offsets = [5, 0], sizes = [1, 32], strides = [1, 1]} : vector<7x32xf32> to vector<1x32xf32>
    %77 = vector.extract_strided_slice %2 {offsets = [6, 0], sizes = [1, 32], strides = [1, 1]} : vector<7x32xf32> to vector<1x32xf32>
    %cst_24 = arith.constant dense<0.000000e+00> : vector<16xf32>
    %78 = vector.multi_reduction <add>, %75, %cst_24 [1] : vector<16x32xf32> to vector<16xf32>
    %79 = vector.shape_cast %78 : vector<16xf32> to vector<16x1xf32>
    %cst_25 = arith.constant 3.200000e+01 : f32
    %80 = vector.broadcast %cst_25 : f32 to vector<16x1xf32>
    %81 = arith.divf %79, %80 : vector<16x1xf32>
    %82 = arith.mulf %75, %75 : vector<16x32xf32>
    %cst_26 = arith.constant dense<0.000000e+00> : vector<16xf32>
    %83 = vector.multi_reduction <add>, %82, %cst_26 [1] : vector<16x32xf32> to vector<16xf32>
    %84 = vector.shape_cast %83 : vector<16xf32> to vector<16x1xf32>
    %cst_27 = arith.constant 3.200000e+01 : f32
    %85 = vector.broadcast %cst_27 : f32 to vector<16x1xf32>
    %86 = arith.divf %84, %85 : vector<16x1xf32>
    %87 = arith.mulf %81, %81 : vector<16x1xf32>
    %88 = arith.subf %86, %87 : vector<16x1xf32>
    %cst_28 = arith.constant 0.000000e+00 : f32
    %89 = vector.broadcast %cst_28 : f32 to vector<16x1xf32>
    %90 = arith.maximumf %88, %89 : vector<16x1xf32>
    %91 = vector.broadcast %81 : vector<16x1xf32> to vector<16x32xf32>
    %92 = arith.subf %75, %91 : vector<16x32xf32>
    %cst_29 = arith.constant 9.99999974E-6 : f32
    %93 = vector.broadcast %cst_29 : f32 to vector<16x1xf32>
    %94 = arith.addf %90, %93 : vector<16x1xf32>
    %95 = math.rsqrt %94 : vector<16x1xf32>
    %96 = vector.broadcast %95 : vector<16x1xf32> to vector<16x32xf32>
    %97 = arith.mulf %92, %96 : vector<16x32xf32>
    %98 = vector.broadcast %76 : vector<1x32xf32> to vector<16x32xf32>
    %99 = arith.mulf %97, %98 : vector<16x32xf32>
    %100 = vector.broadcast %77 : vector<1x32xf32> to vector<16x32xf32>
    %101 = arith.addf %99, %100 : vector<16x32xf32>
    %102 = arith.truncf %101 : vector<16x32xf32> to vector<16x32xbf16>
    %c0_30 = arith.constant 0 : index
    %c0_31 = arith.constant 0 : index
    %103 = vector.load %arg6[%c0_30, %c0_31] : memref<16x32xbf16, #tpu.memory_space<vmem>>, vector<16x32xbf16>
    tpu.vector_store %arg6[%c0_30, %c0_31], %102 {strides = array<i32>} : memref<16x32xbf16, #tpu.memory_space<vmem>>, vector<16x32xbf16>,
    return
  }
  func.func @transform_0(%arg0: i32) -> (i32, i32) {
    %c0_i32 = arith.constant 0 : i32
    %c0_i32_0 = arith.constant 0 : i32
    return %arg0, %c0_i32 : i32, i32
  }
  func.func @transform_1(%arg0: i32) -> (i32, i32) {
    %c0_i32 = arith.constant 0 : i32
    %c0_i32_0 = arith.constant 0 : i32
    %c0_i32_1 = arith.constant 0 : i32
    return %c0_i32, %c0_i32_0 : i32, i32
  }
  func.func @transform_2(%arg0: i32) -> (i32, i32) {
    %c0_i32 = arith.constant 0 : i32
    %c0_i32_0 = arith.constant 0 : i32
    %c0_i32_1 = arith.constant 0 : i32
    return %c0_i32, %c0_i32_0 : i32, i32
  }
  func.func @transform_3(%arg0: i32) -> (i32, i32) {
    %c0_i32 = arith.constant 0 : i32
    %c0_i32_0 = arith.constant 0 : i32
    %c0_i32_1 = arith.constant 0 : i32
    return %c0_i32, %c0_i32_0 : i32, i32
  }
  func.func @transform_4(%arg0: i32) -> (i32, i32) {
    %c0_i32 = arith.constant 0 : i32
    %c0_i32_0 = arith.constant 0 : i32
    %c0_i32_1 = arith.constant 0 : i32
    return %c0_i32, %c0_i32_0 : i32, i32
  }
  func.func @transform_5(%arg0: i32) -> (i32, i32) {
    %c0_i32 = arith.constant 0 : i32
    %c0_i32_0 = arith.constant 0 : i32
    return %arg0, %c0_i32 : i32, i32
  }
}

module attributes {stable_mosaic.version = 11 : i64} {
  func.func @_ff_fused_kernel(%arg0: i32, %arg1: memref<16x32xbf16, #tpu.memory_space<vmem>>, %arg2: memref<7x32xf32, #tpu.memory_space<vmem>>, %arg3: memref<32x128xbf16, #tpu.memory_space<vmem>>, %arg4: memref<1x128xf32, #tpu.memory_space<vmem>>, %arg5: memref<128x32xbf16, #tpu.memory_space<vmem>>, %arg6: memref<16x32xf32, #tpu.memory_space<vmem>>) attributes {dimension_semantics = [#tpu.dimension_semantics<parallel>], iteration_bounds = array<i64: 1>, scalar_prefetch = 0 : i64, scratch_operands = 0 : i64, tpu.core_type = #tpu.core_type<tc>, window_params = [{transform_indices = @transform_0, window_bounds = array<i64: 16, 32>}, {pipeline_mode = #tpu.pipeline_mode<synchronous>, transform_indices = @transform_1, window_bounds = array<i64: 7, 32>}, {pipeline_mode = #tpu.pipeline_mode<synchronous>, transform_indices = @transform_2, window_bounds = array<i64: 32, 128>}, {pipeline_mode = #tpu.pipeline_mode<synchronous>, transform_indices = @transform_3, window_bounds = array<i64: 1, 128>}, {pipeline_mode = #tpu.pipeline_mode<synchronous>, transform_indices = @transform_4, window_bounds = array<i64: 128, 32>}, {transform_indices = @transform_5, window_bounds = array<i64: 16, 32>}]} {
    %c0 = arith.constant 0 : index
    %c0_0 = arith.constant 0 : index
    %0 = vector.load %arg1[%c0, %c0_0] : memref<16x32xbf16, #tpu.memory_space<vmem>>, vector<16x32xbf16>
    %1 = arith.extf %0 : vector<16x32xbf16> to vector<16x32xf32>
    %c0_1 = arith.constant 0 : index
    %c0_2 = arith.constant 0 : index
    %2 = vector.load %arg2[%c0_1, %c0_2] : memref<7x32xf32, #tpu.memory_space<vmem>>, vector<7x32xf32>
    %3 = vector.extract_strided_slice %2 {offsets = [0, 0], sizes = [1, 32], strides = [1, 1]} : vector<7x32xf32> to vector<1x32xf32>
    %4 = vector.extract_strided_slice %2 {offsets = [1, 0], sizes = [1, 32], strides = [1, 1]} : vector<7x32xf32> to vector<1x32xf32>
    %cst = arith.constant dense<0.000000e+00> : vector<16xf32>
    %5 = vector.multi_reduction <add>, %1, %cst [1] : vector<16x32xf32> to vector<16xf32>
    %6 = vector.shape_cast %5 : vector<16xf32> to vector<16x1xf32>
    %cst_3 = arith.constant 3.200000e+01 : f32
    %7 = vector.broadcast %cst_3 : f32 to vector<16x1xf32>
    %8 = arith.divf %6, %7 : vector<16x1xf32>
    %9 = arith.mulf %1, %1 : vector<16x32xf32>
    %cst_4 = arith.constant dense<0.000000e+00> : vector<16xf32>
    %10 = vector.multi_reduction <add>, %9, %cst_4 [1] : vector<16x32xf32> to vector<16xf32>
    %11 = vector.shape_cast %10 : vector<16xf32> to vector<16x1xf32>
    %cst_5 = arith.constant 3.200000e+01 : f32
    %12 = vector.broadcast %cst_5 : f32 to vector<16x1xf32>
    %13 = arith.divf %11, %12 : vector<16x1xf32>
    %14 = arith.mulf %8, %8 : vector<16x1xf32>
    %15 = arith.subf %13, %14 : vector<16x1xf32>
    %cst_6 = arith.constant 0.000000e+00 : f32
    %16 = vector.broadcast %cst_6 : f32 to vector<16x1xf32>
    %17 = arith.maximumf %15, %16 : vector<16x1xf32>
    %18 = vector.broadcast %8 : vector<16x1xf32> to vector<16x32xf32>
    %19 = arith.subf %1, %18 : vector<16x32xf32>
    %cst_7 = arith.constant 9.99999974E-6 : f32
    %20 = vector.broadcast %cst_7 : f32 to vector<16x1xf32>
    %21 = arith.addf %17, %20 : vector<16x1xf32>
    %22 = math.rsqrt %21 : vector<16x1xf32>
    %23 = vector.broadcast %22 : vector<16x1xf32> to vector<16x32xf32>
    %24 = arith.mulf %19, %23 : vector<16x32xf32>
    %25 = vector.broadcast %3 : vector<1x32xf32> to vector<16x32xf32>
    %26 = arith.mulf %24, %25 : vector<16x32xf32>
    %27 = vector.broadcast %4 : vector<1x32xf32> to vector<16x32xf32>
    %28 = arith.addf %26, %27 : vector<16x32xf32>
    %29 = vector.extract_strided_slice %2 {offsets = [2, 0], sizes = [1, 32], strides = [1, 1]} : vector<7x32xf32> to vector<1x32xf32>
    %30 = vector.extract_strided_slice %2 {offsets = [3, 0], sizes = [1, 32], strides = [1, 1]} : vector<7x32xf32> to vector<1x32xf32>
    %cst_8 = arith.constant dense<0.000000e+00> : vector<16xf32>
    %31 = vector.multi_reduction <add>, %28, %cst_8 [1] : vector<16x32xf32> to vector<16xf32>
    %32 = vector.shape_cast %31 : vector<16xf32> to vector<16x1xf32>
    %cst_9 = arith.constant 3.200000e+01 : f32
    %33 = vector.broadcast %cst_9 : f32 to vector<16x1xf32>
    %34 = arith.divf %32, %33 : vector<16x1xf32>
    %35 = arith.mulf %28, %28 : vector<16x32xf32>
    %cst_10 = arith.constant dense<0.000000e+00> : vector<16xf32>
    %36 = vector.multi_reduction <add>, %35, %cst_10 [1] : vector<16x32xf32> to vector<16xf32>
    %37 = vector.shape_cast %36 : vector<16xf32> to vector<16x1xf32>
    %cst_11 = arith.constant 3.200000e+01 : f32
    %38 = vector.broadcast %cst_11 : f32 to vector<16x1xf32>
    %39 = arith.divf %37, %38 : vector<16x1xf32>
    %40 = arith.mulf %34, %34 : vector<16x1xf32>
    %41 = arith.subf %39, %40 : vector<16x1xf32>
    %cst_12 = arith.constant 0.000000e+00 : f32
    %42 = vector.broadcast %cst_12 : f32 to vector<16x1xf32>
    %43 = arith.maximumf %41, %42 : vector<16x1xf32>
    %44 = vector.broadcast %34 : vector<16x1xf32> to vector<16x32xf32>
    %45 = arith.subf %28, %44 : vector<16x32xf32>
    %cst_13 = arith.constant 9.99999974E-6 : f32
    %46 = vector.broadcast %cst_13 : f32 to vector<16x1xf32>
    %47 = arith.addf %43, %46 : vector<16x1xf32>
    %48 = math.rsqrt %47 : vector<16x1xf32>
    %49 = vector.broadcast %48 : vector<16x1xf32> to vector<16x32xf32>
    %50 = arith.mulf %45, %49 : vector<16x32xf32>
    %51 = vector.broadcast %29 : vector<1x32xf32> to vector<16x32xf32>
    %52 = arith.mulf %50, %51 : vector<16x32xf32>
    %53 = vector.broadcast %30 : vector<1x32xf32> to vector<16x32xf32>
    %54 = arith.addf %52, %53 : vector<16x32xf32>
    %c0_14 = arith.constant 0 : index
    %c0_15 = arith.constant 0 : index
    %55 = vector.load %arg3[%c0_14, %c0_15] : memref<32x128xbf16, #tpu.memory_space<vmem>>, vector<32x128xbf16>
    %56 = arith.truncf %54 : vector<16x32xf32> to vector<16x32xbf16>
    %cst_16 = arith.constant dense<0.000000e+00> : vector<16x128xf32>
    %57 = tpu.matmul %56, %55, %cst_16 {dimension_numbers = #tpu.dot_dimension_numbers<[1], [0], [0], [1], [0, 0, 1, 1], [], []>} : vector<16x32xbf16>, vector<32x128xbf16>, vector<16x128xf32> -> vector<16x128xf32>
    %c0_17 = arith.constant 0 : index
    %c0_18 = arith.constant 0 : index
    %58 = vector.load %arg4[%c0_17, %c0_18] : memref<1x128xf32, #tpu.memory_space<vmem>>, vector<1x128xf32>
    %59 = vector.broadcast %58 : vector<1x128xf32> to vector<16x128xf32>
    %60 = arith.addf %57, %59 : vector<16x128xf32>
    %61 = arith.negf %60 : vector<16x128xf32>
    %62 = math.exp %61 : vector<16x128xf32>
    %cst_19 = arith.constant 1.000000e+00 : f32
    %63 = vector.broadcast %cst_19 : f32 to vector<16x128xf32>
    %64 = arith.addf %63, %62 : vector<16x128xf32>
    %65 = arith.divf %63, %64 : vector<16x128xf32>
    %66 = arith.mulf %60, %65 : vector<16x128xf32>
    %c0_20 = arith.constant 0 : index
    %c0_21 = arith.constant 0 : index
    %67 = vector.load %arg5[%c0_20, %c0_21] : memref<128x32xbf16, #tpu.memory_space<vmem>>, vector<128x32xbf16>
    %68 = arith.truncf %66 : vector<16x128xf32> to vector<16x128xbf16>
    %cst_22 = arith.constant dense<0.000000e+00> : vector<16x32xf32>
    %69 = tpu.matmul %68, %67, %cst_22 {dimension_numbers = #tpu.dot_dimension_numbers<[1], [0], [0], [1], [0, 0, 1, 1], [], []>} : vector<16x128xbf16>, vector<128x32xbf16>, vector<16x32xf32> -> vector<16x32xf32>
    %70 = vector.extract_strided_slice %2 {offsets = [4, 0], sizes = [1, 32], strides = [1, 1]} : vector<7x32xf32> to vector<1x32xf32>
    %71 = vector.broadcast %70 : vector<1x32xf32> to vector<16x32xf32>
    %72 = arith.addf %69, %71 : vector<16x32xf32>
    %cst_23 = arith.constant 5.000000e-01 : f32
    %73 = vector.broadcast %cst_23 : f32 to vector<16x32xf32>
    %74 = arith.mulf %73, %72 : vector<16x32xf32>
    %75 = arith.addf %1, %74 : vector<16x32xf32>
    %76 = vector.extract_strided_slice %2 {offsets = [5, 0], sizes = [1, 32], strides = [1, 1]} : vector<7x32xf32> to vector<1x32xf32>
    %77 = vector.extract_strided_slice %2 {offsets = [6, 0], sizes = [1, 32], strides = [1, 1]} : vector<7x32xf32> to vector<1x32xf32>
    %cst_24 = arith.constant dense<0.000000e+00> : vector<16xf32>
    %78 = vector.multi_reduction <add>, %75, %cst_24 [1] : vector<16x32xf32> to vector<16xf32>
    %79 = vector.shape_cast %78 : vector<16xf32> to vector<16x1xf32>
    %cst_25 = arith.constant 3.200000e+01 : f32
    %80 = vector.broadcast %cst_25 : f32 to vector<16x1xf32>
    %81 = arith.divf %79, %80 : vector<16x1xf32>
    %82 = arith.mulf %75, %75 : vector<16x32xf32>
    %cst_26 = arith.constant dense<0.000000e+00> : vector<16xf32>
    %83 = vector.multi_reduction <add>, %82, %cst_26 [1] : vector<16x32xf32> to vector<16xf32>
    %84 = vector.shape_cast %83 : vector<16xf32> to vector<16x1xf32>
    %cst_27 = arith.constant 3.200000e+01 : f32
    %85 = vector.broadcast %cst_27 : f32 to vector<16x1xf32>
    %86 = arith.divf %84, %85 : vector<16x1xf32>
    %87 = arith.mulf %81, %81 : vector<16x1xf32>
    %88 = arith.subf %86, %87 : vector<16x1xf32>
    %cst_28 = arith.constant 0.000000e+00 : f32
    %89 = vector.broadcast %cst_28 : f32 to vector<16x1xf32>
    %90 = arith.maximumf %88, %89 : vector<16x1xf32>
    %91 = vector.broadcast %81 : vector<16x1xf32> to vector<16x32xf32>
    %92 = arith.subf %75, %91 : vector<16x32xf32>
    %cst_29 = arith.constant 9.99999974E-6 : f32
    %93 = vector.broadcast %cst_29 : f32 to vector<16x1xf32>
    %94 = arith.addf %90, %93 : vector<16x1xf32>
    %95 = math.rsqrt %94 : vector<16x1xf32>
    %96 = vector.broadcast %95 : vector<16x1xf32> to vector<16x32xf32>
    %97 = arith.mulf %92, %96 : vector<16x32xf32>
    %98 = vector.broadcast %76 : vector<1x32xf32> to vector<16x32xf32>
    %99 = arith.mulf %97, %98 : vector<16x32xf32>
    %100 = vector.broadcast %77 : vector<1x32xf32> to vector<16x32xf32>
    %101 = arith.addf %99, %100 : vector<16x32xf32>
    %c0_30 = arith.constant 0 : index
    %c0_31 = arith.constant 0 : index
    %102 = vector.load %arg6[%c0_30, %c0_31] : memref<16x32xf32, #tpu.memory_space<vmem>>, vector<16x32xf32>
    tpu.vector_store %arg6[%c0_30, %c0_31], %101 {strides = array<i32>} : memref<16x32xf32, #tpu.memory_space<vmem>>, vector<16x32xf32>,
    return
  }
  func.func @transform_0(%arg0: i32) -> (i32, i32) {
    %c0_i32 = arith.constant 0 : i32
    %c0_i32_0 = arith.constant 0 : i32
    return %arg0, %c0_i32 : i32, i32
  }
  func.func @transform_1(%arg0: i32) -> (i32, i32) {
    %c0_i32 = arith.constant 0 : i32
    %c0_i32_0 = arith.constant 0 : i32
    %c0_i32_1 = arith.constant 0 : i32
    return %c0_i32, %c0_i32_0 : i32, i32
  }
  func.func @transform_2(%arg0: i32) -> (i32, i32) {
    %c0_i32 = arith.constant 0 : i32
    %c0_i32_0 = arith.constant 0 : i32
    %c0_i32_1 = arith.constant 0 : i32
    return %c0_i32, %c0_i32_0 : i32, i32
  }
  func.func @transform_3(%arg0: i32) -> (i32, i32) {
    %c0_i32 = arith.constant 0 : i32
    %c0_i32_0 = arith.constant 0 : i32
    %c0_i32_1 = arith.constant 0 : i32
    return %c0_i32, %c0_i32_0 : i32, i32
  }
  func.func @transform_4(%arg0: i32) -> (i32, i32) {
    %c0_i32 = arith.constant 0 : i32
    %c0_i32_0 = arith.constant 0 : i32
    %c0_i32_1 = arith.constant 0 : i32
    return %c0_i32, %c0_i32_0 : i32, i32
  }
  func.func @transform_5(%arg0: i32) -> (i32, i32) {
    %c0_i32 = arith.constant 0 : i32
    %c0_i32_0 = arith.constant 0 : i32
    return %arg0, %c0_i32 : i32, i32
  }
}

</mosaic_0001>

<bundles_post_ra>
// kernel: conformer_forward.11
= control target key start
LH: loop header
LB: loop body
LE: loop exit
PB: predicated region body
PF: predicated region fallthrough
CT: control target
= control target key end

     0   :  { %v111_v0 = vmov 0.0   ;;  %vm112_vm0 = vmmov 0   ;;  %vm33_vm1 = vcmask 130048   ;;  %vm86_vm2 = vcmask 257024   ;;  %s151_s1 = inlined_call_operand.vmem [shape: bf16[16,32], index: 1, kind: input, shape index: {}]   ;;  %s152_s0 = inlined_call_operand.vmem [shape: f32[16,16], index: 0, kind: input, shape index: {}]   ;;  %s153_s2 = inlined_call_operand.vmem [shape: f32[1,32], index: 2, kind: input, shape index: {}]   ;;  %s154_s3 = inlined_call_operand.vmem [shape: bf16[16,32], index: 3, kind: output, shape index: {}]  }
   0x1   :  { %102 = vmatprep.subr.bf16.mxu0 %v111_v0  ;;  %v110_v1 = vld [vmem:[%s151_s1] sm:$0xff]   ;;  %104 = vmatprep.mubr.msk.bf16.mxu0 %vm112_vm0, %v111_v0  ;;  %v16_v3 = vld [vmem:[%s152_s0 + $0x8] sm:$0xff] }
   0x2   :  { %v15_v2 = vld [vmem:[%s152_s0] sm:$0xff]  ;;  %103 = vmatpush3.bf16.msra.mxu0 %v110_v1 }
   0x3   :  { %v19_v4 = vpack.c.bf16 %v16_v3, %v15_v2  ;;  %v93_v5 = vld [vmem:[%s153_s2] ss:$0 sm:$0xff] }
   0x5   :  { %105 = vmatmul.mubr.msk.bf16.vlgmr.msra.gmra.mrb[0].mxu0 %vm33_vm1, %v19_v4 }
  0xd8   :  { %v71_v6 = vpop.f32.mrb[0].mxu0 }
  0xd9   :  { %v72_v7 = vadd.f32 %v93_v5, %v71_v6  ;;  %v106_v8 = vpop.f32.mrb[1].mxu0 }
  0xda   :  { %v74_v9 = vpop.f32.mrb[2].mxu0 }
  0xdb   :  { %v98_v10 = vpack.c.bf16 %v72_v7, %v72_v7  ;;  %v75_v11 = vadd.f32 %v93_v5, %v74_v9  ;;  %v107_v12 = vpop.f32.mrb[3].mxu0 }
  0xdd   :  { %87 = vst.msk [vmem:[%s154_s3] sm:$0xf] %vm86_vm2, %v98_v10  ;;  %v99_v13 = vpack.c.bf16 %v75_v11, %v75_v11 }
  0xdf   :  { %88 = vst.msk [vmem:[%s154_s3 + $0x4] sm:$0xf] %vm86_vm2, %v99_v13 }

// kernel: conformer_forward.13
= control target key start
LH: loop header
LB: loop body
LE: loop exit
PB: predicated region body
PF: predicated region fallthrough
CT: control target
= control target key end

     0   :  { %vm23_vm0 = vcmask 261120   ;;  %v183_v9 = vmov 0.0   ;;  %vm184_vm1 = vmmov 0   ;;  %v57_v26 = vlaneseq  ;;  %s236_s0 = inlined_call_operand.vmem [shape: bf16[16,32], index: 0, kind: input, shape index: {}]   ;;  %s237_s2 = inlined_call_operand.vmem [shape: bf16[32,96], index: 2, kind: input, shape index: {}]   ;;  %s238_s1 = inlined_call_operand.vmem [shape: f32[2,32], index: 1, kind: input, shape index: {}]   ;;  %s239_s3 = inlined_call_operand.vmem [shape: f32[1,96], index: 3, kind: input, shape index: {}]   ;;  %s240_s4 = inlined_call_operand.vmem [shape: bf16[16,96], index: 4, kind: output, shape index: {}]  }
   0x1   :  { %v161_v0 = vld [vmem:[%s236_s0] sm:$0xff]   ;;  %167 = vmatprep.subr.bf16.mxu0 %v183_v9  ;;  %171 = vmatprep.mubr.msk.bf16.mxu0 %vm184_vm1, %v183_v9  ;;  %v178_v11 = vld [vmem:[%s237_s2 + $0x8] sm:$0xff]   ;;  %vm145_vm2 = vcmask 781312  }
   0x2   :  { %v162_v1 = vunpack.c.l.bf16 %v161_v0  ;;  %v163_v2 = vunpack.c.h.bf16 %v161_v0  ;;  %v177_v10 = vld [vmem:[%s237_s2] sm:$0xff]   ;;  %v58_v29 = vshrl.u32 %v57_v26, 7 }
   0x3   :  { %168 = vmatpush3.bf16.msra.mxu0 %v177_v10  ;;  %v22_v31 = vld [vmem:[%s238_s1] sm:$0x3] }
   0x4   :  { %v24_v3 = vsel %vm23_vm0, %v162_v1, 0.0  ;;  %v33_v4 = vmul.f32 %v162_v1, %v162_v1  ;;  %v34_v5 = vmul.f32 %v163_v2, %v163_v2  ;;  %v27_v7 = vsel %vm23_vm0, %v163_v2, 0.0  ;;  %169 = vmatprep.subr.bf16.mxu0 %v183_v9  ;;  %v152_v46 = vld [vmem:[%s239_s3] ss:$0 sm:$0xff] }
   0x5   :  { %25 = vadd.xlane.f32.xlu0 %v24_v3  ;;  %v59_v30 = vsub.s32 0, %v58_v29  ;;  %v65_v36 = vsub.s32 1, %v58_v29 }
   0x6   :  { %v35_v6 = vsel %vm23_vm0, %v33_v4, 0.0  ;;  %v38_v8 = vsel %vm23_vm0, %v34_v5, 0.0 }
   0x7   :  { %36 = vadd.xlane.f32.xlu1 %v35_v6  ;;  %170 = vmatpush3.bf16.msra.mxu0 %v178_v11  ;;  %v60_v35 = vrot.slane %v22_v31, %v59_v30  ;;  %v66_v41 = vrot.slane %v22_v31, %v65_v36 }
   0x9   :  { %28 = vadd.xlane.f32.xlu0 %v27_v7 }
   0xb   :  { %39 = vadd.xlane.f32.xlu1 %v38_v8 }
  0x92   :  { %v26_v12 = vpop.xlane.xlu0 %25 }
  0x93   :  { %v31_v13 = vmul.f32 0.03125, %v26_v12 }
  0x94   :  { %v37_v14 = vpop.xlane.xlu1 %36 }
  0x95   :  { %v43_v15 = vmul.f32 %v31_v13, %v31_v13  ;;  %v41_v16 = vmul.f32 0.03125, %v37_v14  ;;  %v49_v32 = vsub.f32 %v162_v1, %v31_v13 }
  0x96   :  { %v29_v17 = vpop.xlane.xlu0 %28 }
  0x97   :  { %v45_v18 = vsub.f32 %v41_v16, %v43_v15  ;;  %v32_v19 = vmul.f32 0.03125, %v29_v17 }
  0x98   :  { %v40_v20 = vpop.xlane.xlu1 %39 }
  0x99   :  { %v47_v21 = vmax.f32 %v45_v18, 0.0  ;;  %v44_v22 = vmul.f32 %v32_v19, %v32_v19  ;;  %v42_v23 = vmul.f32 0.03125, %v40_v20  ;;  %v50_v37 = vsub.f32 %v163_v2, %v32_v19 }
  0x9b   :  { %v51_v24 = vadd.f32 1e-05, %v47_v21  ;;  %v46_v25 = vsub.f32 %v42_v23, %v44_v22 }
  0x9d   :  { %179 = vrsqrt.f32 %v51_v24  ;;  %v48_v27 = vmax.f32 %v46_v25, 0.0 }
  0x9f   :  { %v52_v28 = vadd.f32 1e-05, %v48_v27 }
  0xa1   :  { %181 = vrsqrt.f32 %v52_v28 }
  0xa7   :  { %v180_v33 = vpop.eup %179 }
  0xa8   :  { %v55_v34 = vmul.f32 %v180_v33, %v49_v32 }
  0xaa   :  { %v61_v40 = vmul.f32 %v60_v35, %v55_v34 }
  0xab   :  { %v182_v38 = vpop.eup %181 }
  0xac   :  { %v56_v39 = vmul.f32 %v182_v38, %v50_v37  ;;  %v67_v43 = vadd.f32 %v66_v41, %v61_v40 }
  0xae   :  { %v62_v42 = vmul.f32 %v60_v35, %v56_v39 }
  0xb0   :  { %v68_v44 = vadd.f32 %v66_v41, %v62_v42 }
  0xb2   :  { %v73_v45 = vpack.c.bf16 %v68_v44, %v67_v43 }
  0xb4   :  { %172 = vmatmul.mubr.msk.bf16.vlgmr.msra.gmra.mrb[0].mxu0 %vm23_vm0, %v73_v45 }
 0x187   :  { %v130_v47 = vpop.f32.mrb[0].mxu0 }
 0x188   :  { %v131_v48 = vadd.f32 %v152_v46, %v130_v47  ;;  %v173_v49 = vpop.f32.mrb[1].mxu0 }
 0x189   :  { %v133_v50 = vpop.f32.mrb[2].mxu0 }
 0x18a   :  { %v158_v51 = vpack.c.bf16 %v131_v48, %v131_v48  ;;  %v134_v52 = vadd.f32 %v152_v46, %v133_v50  ;;  %v174_v53 = vpop.f32.mrb[3].mxu0 }
 0x18c   :  { %146 = vst.msk [vmem:[%s240_s4] sm:$0xf] %vm145_vm2, %v158_v51  ;;  %v159_v54 = vpack.c.bf16 %v134_v52, %v134_v52 }
 0x18e   :  { %147 = vst.msk [vmem:[%s240_s4 + $0x4] sm:$0xf] %vm145_vm2, %v159_v54 }

// kernel: conformer_forward.12
= control target key start
LH: loop header
LB: loop body
LE: loop exit
PB: predicated region body
PF: predicated region fallthrough
CT: control target
= control target key end

     0   :  { %vm26_vm0 = vcmask 261120   ;;  %v60_v21 = vlaneseq  ;;  %v417_v48 = vmov 0.0   ;;  %vm418_vm1 = vmmov 0   ;;  %s543_s0 = inlined_call_operand.vmem [shape: bf16[16,32], index: 0, kind: input, shape index: {}]   ;;  %s544_s1 = inlined_call_operand.vmem [shape: f32[7,32], index: 1, kind: input, shape index: {}]   ;;  %s545_s2 = inlined_call_operand.vmem [shape: bf16[32,128], index: 2, kind: input, shape index: {}]   ;;  %s546_s4 = inlined_call_operand.vmem [shape: bf16[128,32], index: 4, kind: input, shape index: {}]   ;;  %s547_s3 = inlined_call_operand.vmem [shape: f32[1,128], index: 3, kind: input, shape index: {}]   ;;  %s548_s5 = inlined_call_operand.vmem [shape: bf16[16,32], index: 5, kind: output, shape index: {}]  }
   0x1   :  { %v346_v0 = vld [vmem:[%s543_s0] sm:$0xff]   ;;  %361 = vmatprep.subr.bf16.mxu0 %v417_v48  ;;  %365 = vmatprep.mubr.msk.bf16.mxu0 %vm418_vm1, %v417_v48  ;;  %v392_v50 = vld [vmem:[%s545_s2 + $0x8] sm:$0xff]   ;;  %vm320_vm2 = vcmask 257024  }
   0x2   :  { %v452_v1 = vunpack.c.l.bf16 %v346_v0  ;;  %v454_v2 = vunpack.c.h.bf16 %v346_v0  ;;  %v466_v25 = vshrl.u32 %v60_v21, 7  ;;  %v472_v28 = vld [vmem:[%s544_s1] sm:$0x7f]  ;;  %369 = vmatprep.subr.bf16.mxu1 %v417_v48  ;;  %385 = vmatprep.mubr.msk.bf16.mxu1 %vm418_vm1, %v417_v48  ;;  %v394_v21 = vld [vmem:[%s546_s4 + $0x8] sm:$0xff]  }
   0x3   :  { %v391_v49 = vld [vmem:[%s545_s2] sm:$0xff]  }
   0x4   :  { %v27_v3 = vsel %vm26_vm0, %v452_v1, 0.0  ;;  %v36_v4 = vmul.f32 %v452_v1, %v452_v1  ;;  %v37_v5 = vmul.f32 %v454_v2, %v454_v2  ;;  %v30_v7 = vsel %vm26_vm0, %v454_v2, 0.0  ;;  %362 = vmatpush3.bf16.msra.mxu0 %v391_v49 }
   0x5   :  { %28 = vadd.xlane.f32.xlu0 %v27_v3  ;;  %v62_v27 = vsub.s32 0, %v466_v25  ;;  %v68_v29 = vsub.s32 1, %v466_v25  ;;  %363 = vmatprep.subr.bf16.mxu0 %v417_v48 }
   0x6   :  { %v38_v6 = vsel %vm26_vm0, %v36_v4, 0.0  ;;  %v41_v8 = vsel %vm26_vm0, %v37_v5, 0.0  ;;  %v106_v5 = vsub.s32 2, %v466_v25 }
   0x7   :  { %39 = vadd.xlane.f32.xlu1 %v38_v6  ;;  %v63_v31 = vrot.slane %v472_v28, %v62_v27  ;;  %v69_v34 = vrot.slane %v472_v28, %v68_v29  ;;  %v399_v27 = vld [vmem:[%s546_s4 + $0x30] sm:$0xff]   ;;  %v400_v29 = vld [vmem:[%s546_s4 + $0x38] sm:$0xff]  }
   0x8   :  { %364 = vmatpush3.bf16.msra.mxu0 %v392_v50 }
   0x9   :  { %31 = vadd.xlane.f32.xlu0 %v30_v7 }
   0xb   :  { %42 = vadd.xlane.f32.xlu1 %v41_v8 }
  0x92   :  { %v29_v9 = vpop.xlane.xlu0 %28 }
  0x93   :  { %v34_v10 = vmul.f32 0.03125, %v29_v9  ;;  %v107_v9 = vrot.slane %v472_v28, %v106_v5 }
  0x94   :  { %v40_v11 = vpop.xlane.xlu1 %39 }
  0x95   :  { %v46_v12 = vmul.f32 %v34_v10, %v34_v10  ;;  %v44_v13 = vmul.f32 0.03125, %v40_v11  ;;  %v52_v30 = vsub.f32 %v452_v1, %v34_v10  ;;  %v112_v10 = vsub.s32 3, %v466_v25 }
  0x96   :  { %v32_v14 = vpop.xlane.xlu0 %31 }
  0x97   :  { %v48_v15 = vsub.f32 %v44_v13, %v46_v12  ;;  %v35_v16 = vmul.f32 0.03125, %v32_v14 }
  0x98   :  { %v43_v17 = vpop.xlane.xlu1 %42 }
  0x99   :  { %v50_v18 = vmax.f32 %v48_v15, 0.0  ;;  %v47_v19 = vmul.f32 %v35_v16, %v35_v16  ;;  %v45_v20 = vmul.f32 0.03125, %v43_v17  ;;  %v53_v35 = vsub.f32 %v454_v2, %v35_v16 }
  0x9a   :  { %v113_v15 = vrot.slane %v472_v28, %v112_v10 }
  0x9b   :  { %v54_v22 = vadd.f32 1e-05, %v50_v18  ;;  %v49_v23 = vsub.f32 %v45_v20, %v47_v19  ;;  %v393_v20 = vld [vmem:[%s546_s4] sm:$0xff]  }
  0x9c   :  { %370 = vmatpush3.bf16.msra.mxu1 %v393_v20 }
  0x9d   :  { %401 = vrsqrt.f32 %v54_v22  ;;  %v51_v24 = vmax.f32 %v49_v23, 0.0  ;;  %371 = vmatprep.subr.bf16.mxu1 %v417_v48  ;;  %v395_v22 = vld [vmem:[%s546_s4 + $0x10] sm:$0xff]   ;;  %v396_v23 = vld [vmem:[%s546_s4 + $0x18] sm:$0xff]  }
  0x9f   :  { %v55_v26 = vadd.f32 1e-05, %v51_v24  ;;  %v397_v24 = vld [vmem:[%s546_s4 + $0x20] sm:$0xff]  }
  0xa0   :  { %372 = vmatpush3.bf16.msra.mxu1 %v394_v21 }
  0xa1   :  { %403 = vrsqrt.f32 %v55_v26  ;;  %373 = vmatprep.subr.bf16.mxu1 %v417_v48  ;;  %v398_v26 = vld [vmem:[%s546_s4 + $0x28] sm:$0xff]  }
  0xa4   :  { %374 = vmatpush3.bf16.msra.mxu1 %v395_v22 }
  0xa5   :  { %375 = vmatprep.subr.bf16.mxu1 %v417_v48 }
  0xa7   :  { %v402_v32 = vpop.eup %401 }
  0xa8   :  { %v58_v33 = vmul.f32 %v402_v32, %v52_v30  ;;  %376 = vmatpush3.bf16.msra.mxu1 %v396_v23  ;;  %v327_v30 = vld [vmem:[%s547_s3] ss:$0 sm:$0xff] }
  0xa9   :  { %377 = vmatprep.subr.bf16.mxu1 %v417_v48 }
  0xaa   :  { %v64_v36 = vmul.f32 %v63_v31, %v58_v33 }
  0xab   :  { %v404_v37 = vpop.eup %403 }
  0xac   :  { %v70_v38 = vadd.f32 %v69_v34, %v64_v36  ;;  %v59_v39 = vmul.f32 %v404_v37, %v53_v35  ;;  %378 = vmatpush3.bf16.msra.mxu1 %v397_v24 }
  0xad   :  { %379 = vmatprep.subr.bf16.mxu1 %v417_v48 }
  0xae   :  { %v72_v40 = vsel %vm26_vm0, %v70_v38, 0.0  ;;  %v80_v41 = vmul.f32 %v70_v38, %v70_v38  ;;  %v65_v42 = vmul.f32 %v63_v31, %v59_v39 }
  0xaf   :  { %73 = vadd.xlane.f32.xlu0 %v72_v40 }
  0xb0   :  { %v71_v43 = vadd.f32 %v69_v34, %v65_v42  ;;  %v82_v44 = vsel %vm26_vm0, %v80_v41, 0.0  ;;  %380 = vmatpush3.bf16.msra.mxu1 %v398_v26 }
  0xb1   :  { %381 = vmatprep.subr.bf16.mxu1 %v417_v48 }
  0xb2   :  { %v75_v45 = vsel %vm26_vm0, %v71_v43, 0.0  ;;  %v81_v46 = vmul.f32 %v71_v43, %v71_v43 }
  0xb3   :  { %83 = vadd.xlane.f32.xlu0 %v82_v44  ;;  %76 = vadd.xlane.f32.xlu1 %v75_v45 }
  0xb4   :  { %v85_v47 = vsel %vm26_vm0, %v81_v46, 0.0  ;;  %382 = vmatpush3.bf16.msra.mxu1 %v399_v27 }
  0xb5   :  { %383 = vmatprep.subr.bf16.mxu1 %v417_v48  ;;  %v217_v48 = vsub.s32 4, %v466_v25 }
  0xb7   :  { %86 = vadd.xlane.f32.xlu1 %v85_v47  ;;  %v218_v49 = vrot.slane %v472_v28, %v217_v48 }
  0xb8   :  { %384 = vmatpush3.bf16.msra.mxu1 %v400_v29 }
 0x13c   :  { %v74_v51 = vpop.xlane.xlu0 %73 }
 0x13d   :  { %v78_v52 = vmul.f32 0.03125, %v74_v51 }
 0x13f   :  { %v90_v55 = vmul.f32 %v78_v52, %v78_v52  ;;  %v96_v6 = vsub.f32 %v70_v38, %v78_v52 }
 0x140   :  { %v77_v53 = vpop.xlane.xlu1 %76  ;;  %v84_v54 = vpop.xlane.xlu0 %83 }
 0x141   :  { %v79_v56 = vmul.f32 0.03125, %v77_v53  ;;  %v88_v57 = vmul.f32 0.03125, %v84_v54 }
 0x143   :  { %v92_v58 = vsub.f32 %v88_v57, %v90_v55  ;;  %v91_v60 = vmul.f32 %v79_v56, %v79_v56  ;;  %v97_v11 = vsub.f32 %v71_v43, %v79_v56 }
 0x144   :  { %v87_v59 = vpop.xlane.xlu1 %86 }
 0x145   :  { %v94_v61 = vmax.f32 %v92_v58, 0.0  ;;  %v89_v62 = vmul.f32 0.03125, %v87_v59 }
 0x147   :  { %v98_v63 = vadd.f32 1e-05, %v94_v61  ;;  %v93_v0 = vsub.f32 %v89_v62, %v91_v60 }
 0x149   :  { %405 = vrsqrt.f32 %v98_v63  ;;  %v95_v3 = vmax.f32 %v93_v0, 0.0 }
 0x14b   :  { %v99_v4 = vadd.f32 1e-05, %v95_v3 }
 0x14d   :  { %407 = vrsqrt.f32 %v99_v4 }
 0x153   :  { %v406_v7 = vpop.eup %405 }
 0x154   :  { %v102_v8 = vmul.f32 %v406_v7, %v96_v6 }
 0x156   :  { %v108_v14 = vmul.f32 %v107_v9, %v102_v8 }
 0x157   :  { %v408_v12 = vpop.eup %407 }
 0x158   :  { %v103_v13 = vmul.f32 %v408_v12, %v97_v11  ;;  %v114_v17 = vadd.f32 %v113_v15, %v108_v14 }
 0x15a   :  { %v109_v16 = vmul.f32 %v107_v9, %v103_v13 }
 0x15c   :  { %v115_v18 = vadd.f32 %v113_v15, %v109_v16 }
 0x15e   :  { %v120_v19 = vpack.c.bf16 %v115_v18, %v114_v17 }
 0x160   :  { %366 = vmatmul.mubr.msk.bf16.vlgmr.msra.gmra.mrb[0].mxu0 %vm26_vm0, %v120_v19 }
 0x233   :  { %v177_v31 = vpop.f32.mrb[0].mxu0 }
 0x234   :  { %v178_v32 = vadd.f32 %v327_v30, %v177_v31  ;;  %v367_v33 = vpop.f32.mrb[1].mxu0 }
 0x235   :  { %v180_v34 = vpop.f32.mrb[2].mxu0 }
 0x236   :  { %v331_v35 = vmul.f32 -1.442695, %v178_v32  ;;  %v181_v36 = vadd.f32 %v327_v30, %v180_v34  ;;  %v368_v37 = vpop.f32.mrb[3].mxu0 }
 0x238   :  { %409 = vpow2.f32 %v331_v35  ;;  %v332_v38 = vmul.f32 -1.442695, %v181_v36 }
 0x23a   :  { %411 = vpow2.f32 %v332_v38 }
 0x242   :  { %v410_v39 = vpop.eup %409 }
 0x243   :  { %v190_v40 = vadd.f32 1.0, %v410_v39 }
 0x244   :  { %v412_v41 = vpop.eup %411 }
 0x245   :  { %413 = vrcp.f32 %v190_v40  ;;  %v191_v42 = vadd.f32 1.0, %v412_v41 }
 0x247   :  { %415 = vrcp.f32 %v191_v42 }
 0x24f   :  { %v414_v43 = vpop.eup %413 }
 0x250   :  { %v196_v45 = vmul.f32 %v414_v43, %v178_v32 }
 0x251   :  { %v416_v44 = vpop.eup %415 }
 0x252   :  { %v197_v46 = vmul.f32 %v416_v44, %v181_v36 }
 0x254   :  { %v214_v47 = vpack.c.bf16 %v197_v46, %v196_v45 }
 0x256   :  { %386 = vmatmul.mubr.bf16.vlgmr.msra.gmra.mrb[0].mxu1 %v214_v47 }
 0x329   :  { %v301_v50 = vpop.f32.mrb[0].mxu1 }
 0x32a   :  { %v302_v51 = vadd.f32 %v301_v50, %v218_v49  ;;  %v387_v52 = vpop.f32.mrb[1].mxu1 }
 0x32b   :  { %v304_v53 = vpop.f32.mrb[2].mxu1 }
 0x32c   :  { %v308_v54 = vmul.f32 0.5, %v302_v51  ;;  %v305_v55 = vadd.f32 %v304_v53, %v218_v49  ;;  %v388_v56 = vpop.f32.mrb[3].mxu1 }
 0x32e   :  { %v310_v57 = vadd.f32 %v452_v1, %v308_v54  ;;  %v309_v58 = vmul.f32 0.5, %v305_v55 }
 0x330   :  { %v343_v59 = vpack.c.bf16 %v310_v57, %v310_v57  ;;  %v311_v60 = vadd.f32 %v454_v2, %v309_v58 }
 0x332   :  { %321 = vst.msk [vmem:[%s548_s5] sm:$0xf] %vm320_vm2, %v343_v59  ;;  %v344_v25 = vpack.c.bf16 %v311_v60, %v311_v60 }
 0x334   :  { %322 = vst.msk [vmem:[%s548_s5 + $0x4] sm:$0xf] %vm320_vm2, %v344_v25 }

// kernel: conformer_forward.14
= control target key start
LH: loop header
LB: loop body
LE: loop exit
PB: predicated region body
PF: predicated region fallthrough
CT: control target
= control target key end

     0   :  { %s911_s21 = smov 0   ;;  %s913_s22 = smov 0   ;;  %s1015_s0 = inlined_call_operand.vmem [shape: bf16[2,4,8,8], index: 0, kind: input, shape index: {}]   ;;  %s1016_s1 = inlined_call_operand.vmem [shape: bf16[2,4,8,8], index: 1, kind: input, shape index: {}]   ;;  %s1017_s2 = inlined_call_operand.vmem [shape: bf16[2,4,8,8], index: 2, kind: input, shape index: {}]   ;;  %s1018_s3 = inlined_call_operand.vmem [shape: bf16[2,8,32], index: 3, kind: input, shape index: {}]   ;;  %s1019_s4 = inlined_call_operand.vmem [shape: bf16[4,8,32], index: 4, kind: input, shape index: {}]   ;;  %s1020_s5 = inlined_call_operand.vmem [shape: f32[1,32], index: 5, kind: input, shape index: {}]   ;;  %s1021_s6 = inlined_call_operand.vmem [shape: bf16[2,8,32], index: 6, kind: output, shape index: {}]  }
   0x1   :  { %1022 = sst [smem:[#allocation3_spill]] %s1018_s3  ;;  %s915_s23 = smov 0  }
   0x2   :  { %s917_s24 = smov 0   ;;  %s919_s25 = smov 0  }
   0x3 LB: > { %s28_s26 = sadd.s32 1, %s864_s23  ;;  %s35_s27 = sadd.s32 1, %s868_s24  ;;  %s872_s25 = sphi %s919_s25, %s16_s25   ;;  %s868_s24 = sphi %s917_s24, %s1027_s24   ;;  %s864_s23 = sphi %s915_s23, %s1026_s23   ;;  %s860_s22 = sphi %s913_s22, %s1025_s22   ;;  %s856_s21 = sphi %s911_s21, %s1024_s21  }
   0x4   : > { %p29_p0 = scmp.ge.s32.totalorder %s28_s26, 4  ;;  %p746_p1 = scmp.ge.s32.totalorder %s872_s25, 1 }
   0x5   : > { %p296_p2 = scmp.lt.s32.totalorder %s872_s25, 9 }
   0x6   : > { %s1029_s26 = smov (%p29_p0, %s28_s26), 0  ;;  %s1031_s27 = smov (!%p29_p0, %s35_s27), %s868_s24 }
   0x7   : > { %p297_p3 = pnand %p746_p1, %p296_p2  ;;  %p37_p4 = scmp.ge.s32.totalorder %s1031_s27, 2 }
   0x8   : > { %p361_p5 = scmp.lt.s32.totalorder (!%p297_p3), %s860_s22, 1  ;;  %p363_p6 = scmp.lt.s32.totalorder (!%p297_p3), %s856_s21, 3 }
   0x9   : > { %s1033_s27 = smov (%p37_p4, %s1031_s27), 0  ;;  %300 = sbr.rel (%p297_p3) target bundleno = 1004 (0x3ec), region = 44 }
   0xa   : > { %s1023_s3 = sld [smem:[#allocation3_spill]] (!%p297_p3)  ;;  %p756_p7 = scmp.ne.s32.totalorder (!%p297_p3), %s856_s21, 0 }
  0x10   : > { %s1035_s22 = smov (!%p361_p5, %s860_s22), 1  ;;  %v757_v1 = vld [vmem:[%s1020_s5] ss:$0 sm:$0xff] (!%p756_p7)  ;;  %vm421_vm0 = vcmask (!%p756_p7), 261120  }
  0x11   : > { %s364_s28 = scalar_select %p363_p6, %s856_s21, 3 }
  0x12   : > { %s945_s29 = sshll.u32 %s1035_s22, 2  ;;  %410 = sbr.rel (%p756_p7) target bundleno = 26 (0x1a), region = 48 }
  0x13   : > { %s369_s30 = sadd.s32 %s945_s29, %s364_s28  ;;  %s394_s9 = scalar_lea.vmem %s1023_s3, %s945_s29 }
  0x14   : > { %s952_s10 = sshll.u32 %s369_s30, 2  ;;  %s754_s11 = sshll.u32 %s364_s28, 2  ;;  %v411_v0 = vld [vmem:[%s394_s9] sm:$0xf] (!%p756_p7) }
  0x15   : > { %s371_s14 = scalar_lea.vmem %s1015_s0, %s952_s10  ;;  %s379_s17 = scalar_lea.vmem %s1016_s1, %s952_s10  ;;  %v412_v2 = vunpack.c.l.bf16 (!%p756_p7), %v411_v0 }
  0x16   : > { %s387_s20 = scalar_lea.vmem %s1017_s2, %s952_s10  ;;  %s969_s30 = scalar_lea.vmem %s1019_s4, %s754_s11 }
  0x17   : > { %s405_s28 = scalar_lea.vmem %s1021_s6, %s945_s29  ;;  %v420_v3 = vadd.f32 (!%p756_p7), %v757_v1, %v412_v2 }
  0x19   : > { %422 = vst.msk [vmem:[#allocation2] sm:$0xff] %vm421_vm0, %v420_v3 }
  0x1a PF: > { %v424_v4 = vld [vmem:[%s379_s17] sm:$0xf]  ;;  %vm425_vm1 = vcmask 64512   ;;  %v874_v5 = vmov 0.0   ;;  %vm875_vm2 = vmmov 0   ;;  %vm489_vm3 = vcmask 1043456  }
  0x1b   : > { %770 = vmatprep.subr.bf16.mxu0 %v874_v5  ;;  %v430_v6 = vsel %vm425_vm1, %v424_v4, 0  ;;  %772 = vmatprep.mubr.msk.bf16.mxu0 %vm875_vm2, %v874_v5  ;;  %v423_v7 = vld [vmem:[%s371_s14] sm:$0xf]  ;;  %vm583_vm4 = vcmask 261120   ;;  %p761_p8 = scmp.ne.s32.totalorder %s856_s21, 3 }
  0x1c   : > { %771 = vmatpush3.bf16.xpose.msra.mxu0 %v430_v6  ;;  %776 = vmatprep.subr.bf16.mxu1 %v874_v5  ;;  %v484_v19 = vld [vmem:[%s387_s20] sm:$0xf]  ;;  %vm591_vm5 = vcmask (!%p761_p8), 257024  }
  0x1d   : > { %778 = vmatprep.mubr.msk.bf16.mxu1 %vm875_vm2, %v874_v5  ;;  %v491_v20 = vsel %vm489_vm3, %v484_v19, 0  ;;  %v534_v23 = vld [vmem:[%s969_s30] sm:$0xf] }
  0x1e   : > { %777 = vmatpush3.bf16.msra.mxu1 %v491_v20  ;;  %v540_v25 = vsel %vm489_vm3, %v534_v23, 0 }
  0x1f   : > { %782 = vmatprep.subr.bf16.mxu1 %v874_v5 }
  0x20   : > { %v533_v32 = vld [vmem:[#allocation2] sm:$0xff] }
  0x23   : > { %773 = vmatmul.mubr.msk.bf16.vlgmr.msra.gmra.mrb[0].mxu0 %vm425_vm1, %v423_v7 }
  0xf6   : > { %v466_v8 = vpop.f32.mrb[0].mxu0 }
  0xf7   : > { %v472_v9 = vmul.f32 0.35355338, %v466_v8  ;;  %v774_v10 = vpop.f32.mrb[1].mxu0 }
  0xf8   : > { %v469_v11 = vpop.f32.mrb[2].mxu0 }
  0xf9   : > { %v775_v12 = vpop.f32.mrb[3].mxu0  ;;  %v473_v13 = vsel %vm425_vm1, %v472_v9, -inf }
  0xfa   : > { %474 = vmax.xlane.f32.xlu0 %v473_v13 }
 0x187   : > { %v475_v14 = vpop.xlane.xlu0 %474 }
 0x188   : > { %v476_v15 = vsub.f32 %v472_v9, %v475_v14 }
 0x18a   : > { %v477_v16 = vmul.f32 1.442695, %v476_v15 }
 0x18c   : > { %830 = vpow2.f32 %v477_v16 }
 0x196   : > { %v831_v17 = vpop.eup %830 }
 0x197   : > { %v479_v18 = vsel %vm425_vm1, %v831_v17, 0.0 }
 0x198   : > { %480 = vadd.xlane.f32.xlu0 %v479_v18 }
 0x225   : > { %v481_v21 = vpop.xlane.xlu0 %480 }
 0x226   : > { %832 = vrcp.f32 %v481_v21 }
 0x230   : > { %v833_v22 = vpop.eup %832 }
 0x231   : > { %v483_v24 = vmul.f32 %v833_v22, %v831_v17 }
 0x233   : > { %v485_v26 = vpack.c.bf16 %v483_v24, %v483_v24 }
 0x235   : > { %779 = vmatmul.mubr.msk.bf16.vlgmr.msra.gmra.mrb[0].mxu1 %vm425_vm1, %v485_v26 }
 0x236   : > { %783 = vmatpush3.bf16.msra.mxu1 %v540_v25  ;;  %784 = vmatprep.mubr.msk.bf16.mxu1 %vm875_vm2, %v874_v5 }
 0x308   : > { %v527_v27 = vpop.f32.mrb[0].mxu1 }
 0x309   : > { %v535_v28 = vpack.c.bf16 %v527_v27, %v527_v27  ;;  %v780_v29 = vpop.f32.mrb[1].mxu1 }
 0x30a   : > { %v530_v30 = vpop.f32.mrb[2].mxu1 }
 0x30b   : > { %v781_v31 = vpop.f32.mrb[3].mxu1  ;;  %785 = vmatmul.mubr.msk.bf16.vlgmr.msra.gmra.mrb[4].mxu1 %vm425_vm1, %v535_v28 }
 0x3db   : > { %588 = sbr.rel (%p761_p8) target bundleno = 1004 (0x3ec), region = 52 }
 0x3de   : > { %v576_v33 = vpop.f32.mrb[4].mxu1 }
 0x3df   : > { %v582_v34 = vadd.f32 %v576_v33, %v533_v32  ;;  %v786_v35 = vpop.f32.mrb[5].mxu1 }
 0x3e0   : > { %v579_v36 = vpop.f32.mrb[6].mxu1 }
 0x3e1   : > { %584 = vst.msk [vmem:[#allocation2] sm:$0xff] %vm583_vm4, %v582_v34  ;;  %v787_v37 = vpop.f32.mrb[7].mxu1 }
 0x3e8   : > { %v589_v38 = vld [vmem:[#allocation2] sm:$0xff] }
 0x3e9   : > { %v590_v39 = vpack.c.bf16 %v589_v38, %v589_v38 }
 0x3eb   : > { %592 = vst.msk [vmem:[%s405_s28] sm:$0xf] %vm591_vm5, %v590_v39 }
 0x3ec PF: > { %s16_s25 = sadd.s32 1, %s872_s25   ;;  %s1024_s21 = smov %s864_s23 }
 0x3ed   : > { %p13_p9 = scmp.ge.s32.totalorder %s16_s25, 10   ;;  %s1025_s22 = smov %s868_s24 }
 0x3ee   : > { %s1026_s23 = smov %s1029_s26  ;;  %s1027_s24 = smov %s1033_s27 }
 0x3ef   :  { %15 = sbr.rel (!%p13_p9) target bundleno = 3 (0x3), region = 94 }

// kernel: conformer_forward.16
= control target key start
LH: loop header
LB: loop body
LE: loop exit
PB: predicated region body
PF: predicated region fallthrough
CT: control target
= control target key end

     0   :  { %vm26_vm0 = vcmask 261120   ;;  %v60_v21 = vlaneseq  ;;  %v465_v48 = vmov 0.0   ;;  %vm466_vm1 = vmmov 0   ;;  %s599_s0 = inlined_call_operand.vmem [shape: bf16[16,32], index: 0, kind: input, shape index: {}]   ;;  %s600_s1 = inlined_call_operand.vmem [shape: f32[7,32], index: 1, kind: input, shape index: {}]   ;;  %s601_s2 = inlined_call_operand.vmem [shape: bf16[32,128], index: 2, kind: input, shape index: {}]   ;;  %s602_s4 = inlined_call_operand.vmem [shape: bf16[128,32], index: 4, kind: input, shape index: {}]   ;;  %s603_s3 = inlined_call_operand.vmem [shape: f32[1,128], index: 3, kind: input, shape index: {}]   ;;  %s604_s5 = inlined_call_operand.vmem [shape: bf16[16,32], index: 5, kind: output, shape index: {}]  }
   0x1   :  { %v390_v0 = vld [vmem:[%s599_s0] sm:$0xff]   ;;  %405 = vmatprep.subr.bf16.mxu0 %v465_v48  ;;  %409 = vmatprep.mubr.msk.bf16.mxu0 %vm466_vm1, %v465_v48  ;;  %v436_v50 = vld [vmem:[%s601_s2 + $0x8] sm:$0xff]   ;;  %vm364_vm2 = vcmask 257024  }
   0x2   :  { %v500_v1 = vunpack.c.l.bf16 %v390_v0  ;;  %v502_v2 = vunpack.c.h.bf16 %v390_v0  ;;  %v514_v25 = vshrl.u32 %v60_v21, 7  ;;  %v520_v28 = vld [vmem:[%s600_s1] sm:$0x7f]  ;;  %413 = vmatprep.subr.bf16.mxu1 %v465_v48  ;;  %429 = vmatprep.mubr.msk.bf16.mxu1 %vm466_vm1, %v465_v48  ;;  %v438_v21 = vld [vmem:[%s602_s4 + $0x8] sm:$0xff]  }
   0x3   :  { %v435_v49 = vld [vmem:[%s601_s2] sm:$0xff]  }
   0x4   :  { %v27_v3 = vsel %vm26_vm0, %v500_v1, 0.0  ;;  %v36_v4 = vmul.f32 %v500_v1, %v500_v1  ;;  %v37_v5 = vmul.f32 %v502_v2, %v502_v2  ;;  %v30_v7 = vsel %vm26_vm0, %v502_v2, 0.0  ;;  %406 = vmatpush3.bf16.msra.mxu0 %v435_v49 }
   0x5   :  { %28 = vadd.xlane.f32.xlu0 %v27_v3  ;;  %v62_v27 = vsub.s32 0, %v514_v25  ;;  %v68_v29 = vsub.s32 1, %v514_v25  ;;  %407 = vmatprep.subr.bf16.mxu0 %v465_v48 }
   0x6   :  { %v38_v6 = vsel %vm26_vm0, %v36_v4, 0.0  ;;  %v41_v8 = vsel %vm26_vm0, %v37_v5, 0.0  ;;  %v106_v5 = vsub.s32 2, %v514_v25 }
   0x7   :  { %39 = vadd.xlane.f32.xlu1 %v38_v6  ;;  %v63_v31 = vrot.slane %v520_v28, %v62_v27  ;;  %v69_v34 = vrot.slane %v520_v28, %v68_v29  ;;  %v443_v27 = vld [vmem:[%s602_s4 + $0x30] sm:$0xff]   ;;  %v444_v29 = vld [vmem:[%s602_s4 + $0x38] sm:$0xff]  }
   0x8   :  { %408 = vmatpush3.bf16.msra.mxu0 %v436_v50 }
   0x9   :  { %31 = vadd.xlane.f32.xlu0 %v30_v7 }
   0xb   :  { %42 = vadd.xlane.f32.xlu1 %v41_v8 }
  0x92   :  { %v29_v9 = vpop.xlane.xlu0 %28 }
  0x93   :  { %v34_v10 = vmul.f32 0.03125, %v29_v9  ;;  %v107_v9 = vrot.slane %v520_v28, %v106_v5 }
  0x94   :  { %v40_v11 = vpop.xlane.xlu1 %39 }
  0x95   :  { %v46_v12 = vmul.f32 %v34_v10, %v34_v10  ;;  %v44_v13 = vmul.f32 0.03125, %v40_v11  ;;  %v52_v30 = vsub.f32 %v500_v1, %v34_v10  ;;  %v112_v10 = vsub.s32 3, %v514_v25 }
  0x96   :  { %v32_v14 = vpop.xlane.xlu0 %31 }
  0x97   :  { %v48_v15 = vsub.f32 %v44_v13, %v46_v12  ;;  %v35_v16 = vmul.f32 0.03125, %v32_v14 }
  0x98   :  { %v43_v17 = vpop.xlane.xlu1 %42 }
  0x99   :  { %v50_v18 = vmax.f32 %v48_v15, 0.0  ;;  %v47_v19 = vmul.f32 %v35_v16, %v35_v16  ;;  %v45_v20 = vmul.f32 0.03125, %v43_v17  ;;  %v53_v35 = vsub.f32 %v502_v2, %v35_v16 }
  0x9a   :  { %v113_v15 = vrot.slane %v520_v28, %v112_v10 }
  0x9b   :  { %v54_v22 = vadd.f32 1e-05, %v50_v18  ;;  %v49_v23 = vsub.f32 %v45_v20, %v47_v19  ;;  %v437_v20 = vld [vmem:[%s602_s4] sm:$0xff]  }
  0x9c   :  { %414 = vmatpush3.bf16.msra.mxu1 %v437_v20 }
  0x9d   :  { %445 = vrsqrt.f32 %v54_v22  ;;  %v51_v24 = vmax.f32 %v49_v23, 0.0  ;;  %415 = vmatprep.subr.bf16.mxu1 %v465_v48  ;;  %v439_v22 = vld [vmem:[%s602_s4 + $0x10] sm:$0xff]   ;;  %v440_v23 = vld [vmem:[%s602_s4 + $0x18] sm:$0xff]  }
  0x9f   :  { %v55_v26 = vadd.f32 1e-05, %v51_v24  ;;  %v441_v24 = vld [vmem:[%s602_s4 + $0x20] sm:$0xff]  }
  0xa0   :  { %416 = vmatpush3.bf16.msra.mxu1 %v438_v21 }
  0xa1   :  { %447 = vrsqrt.f32 %v55_v26  ;;  %417 = vmatprep.subr.bf16.mxu1 %v465_v48  ;;  %v442_v26 = vld [vmem:[%s602_s4 + $0x28] sm:$0xff]  }
  0xa4   :  { %418 = vmatpush3.bf16.msra.mxu1 %v439_v22 }
  0xa5   :  { %419 = vmatprep.subr.bf16.mxu1 %v465_v48 }
  0xa7   :  { %v446_v32 = vpop.eup %445 }
  0xa8   :  { %v58_v33 = vmul.f32 %v446_v32, %v52_v30  ;;  %420 = vmatpush3.bf16.msra.mxu1 %v440_v23  ;;  %v371_v30 = vld [vmem:[%s603_s3] ss:$0 sm:$0xff] }
  0xa9   :  { %421 = vmatprep.subr.bf16.mxu1 %v465_v48 }
  0xaa   :  { %v64_v36 = vmul.f32 %v63_v31, %v58_v33 }
  0xab   :  { %v448_v37 = vpop.eup %447 }
  0xac   :  { %v70_v38 = vadd.f32 %v69_v34, %v64_v36  ;;  %v59_v39 = vmul.f32 %v448_v37, %v53_v35  ;;  %422 = vmatpush3.bf16.msra.mxu1 %v441_v24 }
  0xad   :  { %423 = vmatprep.subr.bf16.mxu1 %v465_v48 }
  0xae   :  { %v72_v40 = vsel %vm26_vm0, %v70_v38, 0.0  ;;  %v80_v41 = vmul.f32 %v70_v38, %v70_v38  ;;  %v65_v42 = vmul.f32 %v63_v31, %v59_v39 }
  0xaf   :  { %73 = vadd.xlane.f32.xlu0 %v72_v40 }
  0xb0   :  { %v71_v43 = vadd.f32 %v69_v34, %v65_v42  ;;  %v82_v44 = vsel %vm26_vm0, %v80_v41, 0.0  ;;  %424 = vmatpush3.bf16.msra.mxu1 %v442_v26 }
  0xb1   :  { %425 = vmatprep.subr.bf16.mxu1 %v465_v48 }
  0xb2   :  { %v75_v45 = vsel %vm26_vm0, %v71_v43, 0.0  ;;  %v81_v46 = vmul.f32 %v71_v43, %v71_v43 }
  0xb3   :  { %83 = vadd.xlane.f32.xlu0 %v82_v44  ;;  %76 = vadd.xlane.f32.xlu1 %v75_v45 }
  0xb4   :  { %v85_v47 = vsel %vm26_vm0, %v81_v46, 0.0  ;;  %426 = vmatpush3.bf16.msra.mxu1 %v443_v27 }
  0xb5   :  { %427 = vmatprep.subr.bf16.mxu1 %v465_v48  ;;  %v217_v48 = vsub.s32 4, %v514_v25 }
  0xb7   :  { %86 = vadd.xlane.f32.xlu1 %v85_v47  ;;  %v218_v49 = vrot.slane %v520_v28, %v217_v48 }
  0xb8   :  { %428 = vmatpush3.bf16.msra.mxu1 %v444_v29 }
 0x13c   :  { %v74_v51 = vpop.xlane.xlu0 %73 }
 0x13d   :  { %v78_v52 = vmul.f32 0.03125, %v74_v51 }
 0x13f   :  { %v90_v55 = vmul.f32 %v78_v52, %v78_v52  ;;  %v96_v6 = vsub.f32 %v70_v38, %v78_v52 }
 0x140   :  { %v77_v53 = vpop.xlane.xlu1 %76  ;;  %v84_v54 = vpop.xlane.xlu0 %83 }
 0x141   :  { %v79_v56 = vmul.f32 0.03125, %v77_v53  ;;  %v88_v57 = vmul.f32 0.03125, %v84_v54 }
 0x143   :  { %v92_v58 = vsub.f32 %v88_v57, %v90_v55  ;;  %v91_v60 = vmul.f32 %v79_v56, %v79_v56  ;;  %v97_v11 = vsub.f32 %v71_v43, %v79_v56 }
 0x144   :  { %v87_v59 = vpop.xlane.xlu1 %86 }
 0x145   :  { %v94_v61 = vmax.f32 %v92_v58, 0.0  ;;  %v89_v62 = vmul.f32 0.03125, %v87_v59 }
 0x147   :  { %v98_v63 = vadd.f32 1e-05, %v94_v61  ;;  %v93_v0 = vsub.f32 %v89_v62, %v91_v60 }
 0x149   :  { %449 = vrsqrt.f32 %v98_v63  ;;  %v95_v3 = vmax.f32 %v93_v0, 0.0 }
 0x14b   :  { %v99_v4 = vadd.f32 1e-05, %v95_v3 }
 0x14d   :  { %451 = vrsqrt.f32 %v99_v4 }
 0x153   :  { %v450_v7 = vpop.eup %449 }
 0x154   :  { %v102_v8 = vmul.f32 %v450_v7, %v96_v6 }
 0x156   :  { %v108_v14 = vmul.f32 %v107_v9, %v102_v8 }
 0x157   :  { %v452_v12 = vpop.eup %451 }
 0x158   :  { %v103_v13 = vmul.f32 %v452_v12, %v97_v11  ;;  %v114_v17 = vadd.f32 %v113_v15, %v108_v14 }
 0x15a   :  { %v109_v16 = vmul.f32 %v107_v9, %v103_v13 }
 0x15c   :  { %v115_v18 = vadd.f32 %v113_v15, %v109_v16 }
 0x15e   :  { %v120_v19 = vpack.c.bf16 %v115_v18, %v114_v17  ;;  %v346_v18 = vsub.s32 5, %v514_v25 }
 0x160   :  { %410 = vmatmul.mubr.msk.bf16.vlgmr.msra.gmra.mrb[0].mxu0 %vm26_vm0, %v120_v19  ;;  %v352_v19 = vsub.s32 6, %v514_v25  ;;  %v347_v21 = vrot.slane %v520_v28, %v346_v18 }
 0x162   :  { %v353_v24 = vrot.slane %v520_v28, %v352_v19 }
 0x233   :  { %v177_v31 = vpop.f32.mrb[0].mxu0 }
 0x234   :  { %v178_v32 = vadd.f32 %v371_v30, %v177_v31  ;;  %v411_v33 = vpop.f32.mrb[1].mxu0 }
 0x235   :  { %v180_v34 = vpop.f32.mrb[2].mxu0 }
 0x236   :  { %v375_v35 = vmul.f32 -1.442695, %v178_v32  ;;  %v181_v36 = vadd.f32 %v371_v30, %v180_v34  ;;  %v412_v37 = vpop.f32.mrb[3].mxu0 }
 0x238   :  { %453 = vpow2.f32 %v375_v35  ;;  %v376_v38 = vmul.f32 -1.442695, %v181_v36 }
 0x23a   :  { %455 = vpow2.f32 %v376_v38 }
 0x242   :  { %v454_v39 = vpop.eup %453 }
 0x243   :  { %v190_v40 = vadd.f32 1.0, %v454_v39 }
 0x244   :  { %v456_v41 = vpop.eup %455 }
 0x245   :  { %457 = vrcp.f32 %v190_v40  ;;  %v191_v42 = vadd.f32 1.0, %v456_v41 }
 0x247   :  { %459 = vrcp.f32 %v191_v42 }
 0x24f   :  { %v458_v43 = vpop.eup %457 }
 0x250   :  { %v196_v45 = vmul.f32 %v458_v43, %v178_v32 }
 0x251   :  { %v460_v44 = vpop.eup %459 }
 0x252   :  { %v197_v46 = vmul.f32 %v460_v44, %v181_v36 }
 0x254   :  { %v214_v47 = vpack.c.bf16 %v197_v46, %v196_v45 }
 0x256   :  { %430 = vmatmul.mubr.bf16.vlgmr.msra.gmra.mrb[0].mxu1 %v214_v47 }
 0x329   :  { %v301_v50 = vpop.f32.mrb[0].mxu1 }
 0x32a   :  { %v302_v51 = vadd.f32 %v301_v50, %v218_v49  ;;  %v431_v52 = vpop.f32.mrb[1].mxu1 }
 0x32b   :  { %v304_v53 = vpop.f32.mrb[2].mxu1 }
 0x32c   :  { %v308_v54 = vmul.f32 0.5, %v302_v51  ;;  %v305_v55 = vadd.f32 %v304_v53, %v218_v49  ;;  %v432_v56 = vpop.f32.mrb[3].mxu1 }
 0x32e   :  { %v310_v57 = vadd.f32 %v500_v1, %v308_v54  ;;  %v309_v58 = vmul.f32 0.5, %v305_v55 }
 0x330   :  { %v311_v59 = vadd.f32 %v502_v2, %v309_v58  ;;  %v312_v60 = vsel %vm26_vm0, %v310_v57, 0.0  ;;  %v320_v61 = vmul.f32 %v310_v57, %v310_v57 }
 0x331   :  { %313 = vadd.xlane.f32.xlu0 %v312_v60 }
 0x332   :  { %v315_v62 = vsel %vm26_vm0, %v311_v59, 0.0  ;;  %v321_v63 = vmul.f32 %v311_v59, %v311_v59  ;;  %v322_v0 = vsel %vm26_vm0, %v320_v61, 0.0 }
 0x333   :  { %316 = vadd.xlane.f32.xlu1 %v315_v62 }
 0x334   :  { %v325_v3 = vsel %vm26_vm0, %v321_v63, 0.0 }
 0x335   :  { %323 = vadd.xlane.f32.xlu0 %v322_v0 }
 0x337   :  { %326 = vadd.xlane.f32.xlu1 %v325_v3 }
 0x3be   :  { %v314_v4 = vpop.xlane.xlu0 %313 }
 0x3bf   :  { %v318_v5 = vmul.f32 0.03125, %v314_v4 }
 0x3c0   :  { %v317_v1 = vpop.xlane.xlu1 %316 }
 0x3c1   :  { %v319_v6 = vmul.f32 0.03125, %v317_v1  ;;  %v330_v2 = vmul.f32 %v318_v5, %v318_v5  ;;  %v336_v20 = vsub.f32 %v310_v57, %v318_v5 }
 0x3c2   :  { %v324_v7 = vpop.xlane.xlu0 %323 }
 0x3c3   :  { %v328_v8 = vmul.f32 0.03125, %v324_v7  ;;  %v331_v10 = vmul.f32 %v319_v6, %v319_v6  ;;  %v337_v23 = vsub.f32 %v311_v59, %v319_v6 }
 0x3c4   :  { %v327_v9 = vpop.xlane.xlu1 %326 }
 0x3c5   :  { %v332_v11 = vsub.f32 %v328_v8, %v330_v2  ;;  %v329_v12 = vmul.f32 0.03125, %v327_v9 }
 0x3c7   :  { %v334_v13 = vmax.f32 %v332_v11, 0.0  ;;  %v333_v14 = vsub.f32 %v329_v12, %v331_v10 }
 0x3c9   :  { %v338_v15 = vadd.f32 1e-05, %v334_v13  ;;  %v335_v16 = vmax.f32 %v333_v14, 0.0 }
 0x3cb   :  { %461 = vrsqrt.f32 %v338_v15  ;;  %v339_v17 = vadd.f32 1e-05, %v335_v16 }
 0x3cd   :  { %463 = vrsqrt.f32 %v339_v17 }
 0x3d5   :  { %v462_v22 = vpop.eup %461 }
 0x3d6   :  { %v342_v26 = vmul.f32 %v462_v22, %v336_v20 }
 0x3d7   :  { %v464_v27 = vpop.eup %463 }
 0x3d8   :  { %v348_v29 = vmul.f32 %v347_v21, %v342_v26  ;;  %v343_v30 = vmul.f32 %v464_v27, %v337_v23 }
 0x3da   :  { %v354_v31 = vadd.f32 %v353_v24, %v348_v29  ;;  %v349_v32 = vmul.f32 %v347_v21, %v343_v30 }
 0x3dc   :  { %v387_v33 = vpack.c.bf16 %v354_v31, %v354_v31  ;;  %v355_v34 = vadd.f32 %v353_v24, %v349_v32 }
 0x3de   :  { %365 = vst.msk [vmem:[%s604_s5] sm:$0xf] %vm364_vm2, %v387_v33  ;;  %v388_v25 = vpack.c.bf16 %v355_v34, %v355_v34 }
 0x3e0   :  { %366 = vst.msk [vmem:[%s604_s5 + $0x4] sm:$0xf] %vm364_vm2, %v388_v25 }

// kernel: conformer_forward.15
= control target key start
LH: loop header
LB: loop body
LE: loop exit
PB: predicated region body
PF: predicated region fallthrough
CT: control target
= control target key end

     0   :  { %s843_s21 = smov 0   ;;  %s984_s0 = inlined_call_operand.vmem [shape: bf16[2,8,32], index: 0, kind: input, shape index: {}]   ;;  %s985_s1 = inlined_call_operand.vmem [shape: f32[3,32], index: 1, kind: input, shape index: {}]   ;;  %s986_s2 = inlined_call_operand.vmem [shape: f32[4,64], index: 2, kind: input, shape index: {}]   ;;  %s987_s3 = inlined_call_operand.vmem [shape: bf16[32,64], index: 3, kind: input, shape index: {}]   ;;  %s988_s4 = inlined_call_operand.vmem [shape: f32[31,64], index: 4, kind: input, shape index: {}]   ;;  %s989_s5 = inlined_call_operand.vmem [shape: bf16[64,32], index: 5, kind: input, shape index: {}]   ;;  %s990_s6 = inlined_call_operand.vmem [shape: bf16[2,8,32], index: 6, kind: output, shape index: {}]  }
   0x1 LB: > { %s730_s22 = sadd.s32 4294967295, %s804_s21   ;;  %p734_p0 = scmp.ge.s32.totalorder %s804_s21, 1  ;;  %s804_s21 = sphi %s843_s21, %s16_s21  }
   0x2   : > { %p211_p1 = scmp.lt.s32.totalorder %s804_s21, 3 }
   0x4   : > { %p212_p2 = pnand %p734_p0, %p211_p1 }
   0x5   : > { %p239_p3 = scmp.lt.s32.totalorder (!%p212_p2), %s730_s22, 1  ;;  %vm252_vm0 = vcmask (!%p212_p2), 261120   ;;  %v786_v5 = vld [vmem:[%s987_s3] sm:$0xff] (!%p212_p2)   ;;  %v806_v6 = vmov (!%p212_p2), 0.0   ;;  %vm807_vm1 = vmmov (!%p212_p2), 0   ;;  %v787_v7 = vld [vmem:[%s987_s3 + $0x8] sm:$0xff] (!%p212_p2)   ;;  %v270_v15 = vlaneseq (!%p212_p2) }
   0x6   : > { %215 = sbr.rel (%p212_p2) target bundleno = 716 (0x2cc), region = 44  ;;  %756 = vmatprep.subr.bf16.mxu0 (!%p212_p2), %v806_v6  ;;  %760 = vmatprep.mubr.msk.bf16.mxu0 (!%p212_p2), %vm807_vm1, %v806_v6  ;;  %v877_v19 = vld [vmem:[%s985_s1] sm:$0x7] (!%p212_p2)  ;;  %vm344_vm2 = vcmask (!%p212_p2), 523264   ;;  %v789_v30 = vld [vmem:[%s989_s5 + $0x8] sm:$0xff] (!%p212_p2)   ;;  %v790_v31 = vld [vmem:[%s989_s5 + $0x10] sm:$0xff] (!%p212_p2)  }
   0x7   : > { %757 = vmatpush3.bf16.msra.mxu0 (!%p212_p2), %v786_v5  ;;  %764 = vmatprep.subr.bf16.mxu1 (!%p212_p2), %v806_v6  ;;  %v271_v17 = vshrl.u32 (!%p212_p2), %v270_v15, 7  ;;  %345 = vst.msk [vmem:[#allocation2] sm:$0xff] (!%p212_p2), %vm344_vm2, %v806_v6  ;;  %346 = vst.msk [vmem:[#allocation2 + $0x8] sm:$0xff] (!%p212_p2), %vm344_vm2, %v806_v6  ;;  %v788_v29 = vld [vmem:[%s989_s5] sm:$0xff] (!%p212_p2)   ;;  %v791_v32 = vld [vmem:[%s989_s5 + $0x18] sm:$0xff] (!%p212_p2)   ;;  %vm675_vm3 = vcmask (!%p212_p2), 257024  }
   0x8   : > { %758 = vmatprep.subr.bf16.mxu0 (!%p212_p2), %v806_v6  ;;  %772 = vmatprep.mubr.msk.bf16.mxu1 (!%p212_p2), %vm807_vm1, %v806_v6  ;;  %347 = vst.msk [vmem:[#allocation2 + $0x18] sm:$0xff] (!%p212_p2), %vm344_vm2, %v806_v6  ;;  %348 = vst.msk [vmem:[#allocation2 + $0x20] sm:$0xff] (!%p212_p2), %vm344_vm2, %v806_v6  ;;  %v350_v33 = vld [vmem:[%s988_s4] sm:$0xff] (!%p212_p2) }
   0x9   : > { %v872_v18 = vsub.s32 (!%p212_p2), 0, %v271_v17  ;;  %v879_v20 = vsub.s32 (!%p212_p2), 1, %v271_v17  ;;  %765 = vmatpush3.bf16.msra.mxu1 (!%p212_p2), %v788_v29  ;;  %v910_v35 = vld [vmem:[%s986_s2] sm:$0xf] (!%p212_p2)  ;;  %v915_v40 = vsub.s32 (!%p212_p2), 2, %v271_v17  ;;  %v918_v45 = vsub.s32 (!%p212_p2), 3, %v271_v17 }
   0xa   : > { %766 = vmatprep.subr.bf16.mxu1 (!%p212_p2), %v806_v6  ;;  %v921_v50 = vsub.s32 (!%p212_p2), 4, %v271_v17  ;;  %v924_v55 = vsub.s32 (!%p212_p2), 5, %v271_v17  ;;  %v927_v60 = vsub.s32 (!%p212_p2), 6, %v271_v17 }
   0xb   : > { %759 = vmatpush3.bf16.msra.mxu0 (!%p212_p2), %v787_v7  ;;  %v273_v22 = vrot.slane (!%p212_p2), %v877_v19, %v872_v18  ;;  %v278_v25 = vrot.slane (!%p212_p2), %v877_v19, %v879_v20  ;;  %v363_v34 = vrot.slane (!%p212_p2), %v350_v33, %v872_v18  ;;  %v357_v37 = vrot.slane (!%p212_p2), %v910_v35, %v879_v20 }
   0xc   : > { %v370_v39 = vrot.slane (!%p212_p2), %v350_v33, %v879_v20  ;;  %v377_v44 = vrot.slane (!%p212_p2), %v350_v33, %v915_v40  ;;  %v384_v49 = vrot.slane (!%p212_p2), %v350_v33, %v918_v45  ;;  %v391_v54 = vrot.slane (!%p212_p2), %v350_v33, %v921_v50 }
   0xd   : > { %s992_s22 = smov (!%p239_p3, %s730_s22), 1  ;;  %767 = vmatpush3.bf16.msra.mxu1 %v789_v30  ;;  %v398_v59 = vrot.slane %v350_v33, %v924_v55  ;;  %v288_v62 = vrot.slane %v910_v35, %v872_v18 }
   0xe   : > { %s735_s23 = sshll.u32 %s992_s22, 2  ;;  %768 = vmatprep.subr.bf16.mxu1 %v806_v6  ;;  %v359_v36 = vld [vmem:[#allocation2 + $0x1] sm:$0xff] }
   0xf   : > { %s242_s26 = scalar_lea.vmem %s984_s0, %s735_s23  ;;  %v364_v38 = vmul.f32 %v363_v34, %v359_v36  ;;  %v366_v41 = vld [vmem:[#allocation2 + $0x2] sm:$0xff]  ;;  %s246_s8 = scalar_lea.vmem %s990_s6, %s735_s23 }
  0x10   : > { %v248_v0 = vld [vmem:[%s242_s26] sm:$0xf]  ;;  %v371_v43 = vmul.f32 %v370_v39, %v366_v41  ;;  %v380_v51 = vld [vmem:[#allocation2 + $0x4] sm:$0xff] }
  0x11   : > { %v859_v1 = vunpack.c.l.bf16 %v248_v0  ;;  %769 = vmatpush3.bf16.msra.mxu1 %v790_v31  ;;  %v365_v42 = vadd.f32 %v364_v38, %v357_v37  ;;  %v373_v46 = vld [vmem:[#allocation2 + $0x3] sm:$0xff]  ;;  %v385_v53 = vmul.f32 %v384_v49, %v380_v51 }
  0x12   : > { %770 = vmatprep.subr.bf16.mxu1 %v806_v6  ;;  %v378_v48 = vmul.f32 %v377_v44, %v373_v46  ;;  %v387_v56 = vld [vmem:[#allocation2 + $0x5] sm:$0xff]  ;;  %v352_v46 = vld [vmem:[%s988_s4 + $0x10] sm:$0xff] }
  0x13   : > { %v253_v2 = vsel %vm252_vm0, %v859_v1, 0.0  ;;  %v258_v3 = vmul.f32 %v859_v1, %v859_v1  ;;  %v372_v47 = vadd.f32 %v371_v43, %v365_v42  ;;  %v392_v58 = vmul.f32 %v391_v54, %v387_v56  ;;  %v394_v61 = vld [vmem:[#allocation2 + $0x6] sm:$0xff] }
  0x14   : > { %254 = vadd.xlane.f32.xlu0 %v253_v2  ;;  %v399_v0 = vmul.f32 %v398_v59, %v394_v61  ;;  %v405_v2 = vrot.slane %v350_v33, %v927_v60  ;;  %v475_v56 = vrot.slane %v352_v46, %v872_v18  ;;  %v482_v61 = vrot.slane %v352_v46, %v879_v20 }
  0x15   : > { %v259_v4 = vsel %vm252_vm0, %v258_v3, 0.0  ;;  %771 = vmatpush3.bf16.msra.mxu1 %v791_v32  ;;  %v379_v52 = vadd.f32 %v378_v48, %v372_v47  ;;  %v932_v3 = vsub.s32 7, %v271_v17 }
  0x17   : > { %v386_v57 = vadd.f32 %v385_v53, %v379_v52 }
  0x18   : > { %260 = vadd.xlane.f32.xlu0 %v259_v4  ;;  %v401_v4 = vld [vmem:[#allocation2 + $0x7] sm:$0xff] }
  0x19   : > { %v393_v63 = vadd.f32 %v392_v58, %v386_v57 }
  0x1b   : > { %v400_v7 = vadd.f32 %v399_v0, %v393_v63 }
  0xa1   : > { %v255_v8 = vpop.xlane.xlu0 %254 }
  0xa2   : > { %v257_v9 = vmul.f32 0.03125, %v255_v8  ;;  %v406_v8 = vmul.f32 %v405_v2, %v401_v4  ;;  %v489_v2 = vrot.slane %v352_v46, %v915_v40 }
  0xa4   : > { %v263_v11 = vmul.f32 %v257_v9, %v257_v9  ;;  %v266_v21 = vsub.f32 %v859_v1, %v257_v9  ;;  %v412_v9 = vrot.slane %v350_v33, %v932_v3  ;;  %v407_v15 = vadd.f32 %v406_v8, %v400_v7 }
  0xa5   : > { %v261_v10 = vpop.xlane.xlu0 %260  ;;  %v496_v7 = vrot.slane %v352_v46, %v918_v45 }
  0xa6   : > { %v262_v12 = vmul.f32 0.03125, %v261_v10 }
  0xa8   : > { %v264_v13 = vsub.f32 %v262_v12, %v263_v11  ;;  %v408_v11 = vld [vmem:[#allocation2 + $0x8] sm:$0xff] }
  0xaa   : > { %v265_v14 = vmax.f32 %v264_v13, 0.0 }
  0xac   : > { %v267_v16 = vadd.f32 1e-05, %v265_v14  ;;  %v351_v14 = vld [vmem:[%s988_s4 + $0x8] sm:$0xff] }
  0xad   : > { %v419_v17 = vrot.slane %v351_v14, %v872_v18  ;;  %v440_v30 = vrot.slane %v351_v14, %v918_v45  ;;  %v447_v34 = vrot.slane %v351_v14, %v921_v50  ;;  %v454_v39 = vrot.slane %v351_v14, %v924_v55 }
  0xae   : > { %792 = vrsqrt.f32 %v267_v16  ;;  %v413_v16 = vmul.f32 %v412_v9, %v408_v11  ;;  %v461_v44 = vrot.slane %v351_v14, %v927_v60  ;;  %v468_v51 = vrot.slane %v351_v14, %v932_v3 }
  0xaf   : > { %v503_v11 = vrot.slane %v352_v46, %v921_v50 }
  0xb8   : > { %v793_v23 = vpop.eup %792 }
  0xb9   : > { %v269_v24 = vmul.f32 %v793_v23, %v266_v21  ;;  %v414_v21 = vadd.f32 %v413_v16, %v407_v15  ;;  %v510_v15 = vrot.slane %v352_v46, %v924_v55 }
  0xbb   : > { %v274_v26 = vmul.f32 %v273_v22, %v269_v24  ;;  %v426_v22 = vrot.slane %v351_v14, %v879_v20 }
  0xbd   : > { %v279_v27 = vadd.f32 %v278_v25, %v274_v26  ;;  %v433_v26 = vrot.slane %v351_v14, %v915_v40 }
  0xbf   : > { %v284_v28 = vpack.c.bf16 %v279_v27, %v279_v27 }
  0xc1   : > { %761 = vmatmul.mubr.msk.bf16.vlgmr.msra.gmra.mrb[0].mxu0 %vm252_vm0, %v284_v28 }
 0x194   : > { %v338_v5 = vpop.f32.mrb[0].mxu0 }
 0x195   : > { %v339_v6 = vadd.f32 %v338_v5, %v288_v62  ;;  %v762_v10 = vpop.f32.mrb[1].mxu0 }
 0x196   : > { %v341_v12 = vpop.f32.mrb[2].mxu0 }
 0x197   : > { %349 = vst.msk [vmem:[#allocation2 + $0x10] sm:$0xff] %vm344_vm2, %v339_v6  ;;  %v763_v13 = vpop.f32.mrb[3].mxu0 }
 0x19e   : > { %v415_v23 = vld [vmem:[#allocation2 + $0x9] sm:$0xff]  ;;  %v471_v57 = vld [vmem:[#allocation2 + $0x11] sm:$0xff] }
 0x19f   : > { %v422_v24 = vld [vmem:[#allocation2 + $0xa] sm:$0xff]  ;;  %v420_v25 = vmul.f32 %v419_v17, %v415_v23  ;;  %v478_v62 = vld [vmem:[#allocation2 + $0x12] sm:$0xff]  ;;  %v476_v0 = vmul.f32 %v475_v56, %v471_v57  ;;  %v517_v23 = vrot.slane %v352_v46, %v927_v60  ;;  %v569_v57 = vld [vmem:[#allocation2 + $0x1f] sm:$0xff] }
 0x1a0   : > { %v429_v27 = vld [vmem:[#allocation2 + $0xb] sm:$0xff]  ;;  %v427_v29 = vmul.f32 %v426_v22, %v422_v24  ;;  %v485_v4 = vld [vmem:[#allocation2 + $0x13] sm:$0xff]  ;;  %v483_v6 = vmul.f32 %v482_v61, %v478_v62  ;;  %v524_v24 = vrot.slane %v352_v46, %v932_v3 }
 0x1a1   : > { %v421_v28 = vadd.f32 %v420_v25, %v414_v21  ;;  %v436_v31 = vld [vmem:[#allocation2 + $0xc] sm:$0xff]  ;;  %v434_v33 = vmul.f32 %v433_v26, %v429_v27  ;;  %v492_v8 = vld [vmem:[#allocation2 + $0x14] sm:$0xff]  ;;  %v490_v10 = vmul.f32 %v489_v2, %v485_v4 }
 0x1a2   : > { %v443_v36 = vld [vmem:[#allocation2 + $0xd] sm:$0xff]  ;;  %v441_v38 = vmul.f32 %v440_v30, %v436_v31  ;;  %v499_v12 = vld [vmem:[#allocation2 + $0x15] sm:$0xff]  ;;  %v497_v14 = vmul.f32 %v496_v7, %v492_v8 }
 0x1a3   : > { %v428_v32 = vadd.f32 %v427_v29, %v421_v28  ;;  %v450_v41 = vld [vmem:[#allocation2 + $0xe] sm:$0xff]  ;;  %v448_v43 = vmul.f32 %v447_v34, %v443_v36  ;;  %v506_v16 = vld [vmem:[#allocation2 + $0x16] sm:$0xff]  ;;  %v504_v21 = vmul.f32 %v503_v11, %v499_v12 }
 0x1a4   : > { %v457_v47 = vld [vmem:[#allocation2 + $0xf] sm:$0xff]  ;;  %v455_v49 = vmul.f32 %v454_v39, %v450_v41  ;;  %v353_v17 = vld [vmem:[%s988_s4 + $0x18] sm:$0x7f]  ;;  %v511_v28 = vmul.f32 %v510_v15, %v506_v16 }
 0x1a5   : > { %v435_v37 = vadd.f32 %v434_v33, %v428_v32  ;;  %v464_v52 = vld [vmem:[#allocation2 + $0x10] sm:$0xff]  ;;  %v462_v54 = vmul.f32 %v461_v44, %v457_v47  ;;  %v520_v26 = vld [vmem:[#allocation2 + $0x18] sm:$0xff]  ;;  %v531_v29 = vrot.slane %v353_v17, %v872_v18  ;;  %v538_v34 = vrot.slane %v353_v17, %v879_v20 }
 0x1a6   : > { %v469_v59 = vmul.f32 %v468_v51, %v464_v52  ;;  %v513_v25 = vld [vmem:[#allocation2 + $0x17] sm:$0xff]  ;;  %v525_v33 = vmul.f32 %v524_v24, %v520_v26  ;;  %v545_v39 = vrot.slane %v353_v17, %v915_v40  ;;  %v559_v18 = vrot.slane %v353_v17, %v921_v50 }
 0x1a7   : > { %v442_v42 = vadd.f32 %v441_v38, %v435_v37  ;;  %v527_v30 = vld [vmem:[#allocation2 + $0x19] sm:$0xff]  ;;  %v518_v32 = vmul.f32 %v517_v23, %v513_v25  ;;  %v566_v20 = vrot.slane %v353_v17, %v924_v55  ;;  %v573_v56 = vrot.slane %v353_v17, %v927_v60 }
 0x1a8   : > { %v534_v36 = vld [vmem:[#allocation2 + $0x1a] sm:$0xff]  ;;  %v532_v38 = vmul.f32 %v531_v29, %v527_v30  ;;  %v584_v50 = vrot.slane %v910_v35, %v918_v45 }
 0x1a9   : > { %v449_v48 = vadd.f32 %v448_v43, %v442_v42  ;;  %v541_v41 = vld [vmem:[#allocation2 + $0x1b] sm:$0xff]  ;;  %v539_v3 = vmul.f32 %v538_v34, %v534_v36  ;;  %v552_v43 = vrot.slane %v353_v17, %v918_v45  ;;  %v574_v62 = vmul.f32 %v573_v56, %v569_v57 }
 0x1aa   : > { %v548_v44 = vld [vmem:[#allocation2 + $0x1c] sm:$0xff]  ;;  %v546_v47 = vmul.f32 %v545_v39, %v541_v41 }
 0x1ab   : > { %v456_v53 = vadd.f32 %v455_v49, %v449_v48  ;;  %v555_v48 = vld [vmem:[#allocation2 + $0x1d] sm:$0xff]  ;;  %v553_v51 = vmul.f32 %v552_v43, %v548_v44 }
 0x1ac   : > { %v562_v52 = vld [vmem:[#allocation2 + $0x1e] sm:$0xff] }
 0x1ad   : > { %v463_v58 = vadd.f32 %v462_v54, %v456_v53  ;;  %v560_v54 = vmul.f32 %v559_v18, %v555_v48 }
 0x1af   : > { %v470_v63 = vadd.f32 %v469_v59, %v463_v58  ;;  %v567_v59 = vmul.f32 %v566_v20, %v562_v52 }
 0x1b1   : > { %v477_v5 = vadd.f32 %v476_v0, %v470_v63  ;;  %v579_v63 = vrot.slane %v910_v35, %v915_v40 }
 0x1b3   : > { %v484_v9 = vadd.f32 %v483_v6, %v477_v5 }
 0x1b5   : > { %v491_v13 = vadd.f32 %v490_v10, %v484_v9  ;;  %v605_v10 = vrot.slane %v877_v19, %v915_v40 }
 0x1b7   : > { %v498_v22 = vadd.f32 %v497_v14, %v491_v13 }
 0x1b9   : > { %v505_v27 = vadd.f32 %v504_v21, %v498_v22 }
 0x1bb   : > { %v512_v31 = vadd.f32 %v511_v28, %v505_v27 }
 0x1bd   : > { %v519_v37 = vadd.f32 %v518_v32, %v512_v31 }
 0x1bf   : > { %v526_v42 = vadd.f32 %v525_v33, %v519_v37 }
 0x1c1   : > { %v533_v46 = vadd.f32 %v532_v38, %v526_v42 }
 0x1c3   : > { %v540_v49 = vadd.f32 %v539_v3, %v533_v46 }
 0x1c5   : > { %v547_v53 = vadd.f32 %v546_v47, %v540_v49 }
 0x1c7   : > { %v554_v58 = vadd.f32 %v553_v51, %v547_v53 }
 0x1c9   : > { %v561_v61 = vadd.f32 %v560_v54, %v554_v58 }
 0x1cb   : > { %v568_v0 = vadd.f32 %v567_v59, %v561_v61 }
 0x1cd   : > { %v575_v2 = vadd.f32 %v574_v62, %v568_v0 }
 0x1cf   : > { %v580_v4 = vmul.f32 %v579_v63, %v575_v2 }
 0x1d1   : > { %v585_v55 = vadd.f32 %v584_v50, %v580_v4 }
 0x1d3   : > { %v740_v5 = vmul.f32 -1.442695, %v585_v55 }
 0x1d5   : > { %794 = vpow2.f32 %v740_v5 }
 0x1df   : > { %v795_v6 = vpop.eup %794 }
 0x1e0   : > { %v589_v60 = vadd.f32 1.0, %v795_v6 }
 0x1e2   : > { %796 = vrcp.f32 %v589_v60 }
 0x1ec   : > { %v797_v7 = vpop.eup %796 }
 0x1ed   : > { %v592_v8 = vmul.f32 %v797_v7, %v585_v55 }
 0x1ef   : > { %v601_v9 = vpack.c.bf16 %v592_v8, %v592_v8 }
 0x1f1   : > { %773 = vmatmul.mubr.msk.bf16.vlgmr.msra.gmra.mrb[0].mxu1 %vm344_vm2, %v601_v9 }
 0x2c4   : > { %v667_v11 = vpop.f32.mrb[0].mxu1 }
 0x2c5   : > { %v668_v12 = vadd.f32 %v667_v11, %v605_v10  ;;  %v774_v35 = vpop.f32.mrb[1].mxu1 }
 0x2c6   : > { %v670_v45 = vpop.f32.mrb[2].mxu1 }
 0x2c7   : > { %v673_v13 = vadd.f32 %v668_v12, %v859_v1  ;;  %v775_v14 = vpop.f32.mrb[3].mxu1 }
 0x2c9   : > { %v674_v15 = vpack.c.bf16 %v673_v13, %v673_v13 }
 0x2cb   : > { %676 = vst.msk [vmem:[%s246_s8] sm:$0xf] %vm675_vm3, %v674_v15 }
 0x2cc PF: > { %s16_s21 = sadd.s32 1, %s804_s21  }
 0x2cd   : > { %p13_p4 = scmp.ge.s32.totalorder %s16_s21, 4  }
 0x2cf   :  { %15 = sbr.rel (!%p13_p4) target bundleno = 1 (0x1), region = 74 }

// kernel: conformer_forward.21
= control target key start
LH: loop header
LB: loop body
LE: loop exit
PB: predicated region body
PF: predicated region fallthrough
CT: control target
= control target key end

     0   :  { %vm27_vm0 = vcmask 261120   ;;  %s637_s0 = inlined_call_operand.vmem [shape: bf16[16,32], index: 0, kind: input, shape index: {}]   ;;  %s638_s1 = inlined_call_operand.vmem [shape: f32[7,32], index: 1, kind: input, shape index: {}]   ;;  %s639_s2 = inlined_call_operand.vmem [shape: bf16[32,128], index: 2, kind: input, shape index: {}]   ;;  %s640_s3 = inlined_call_operand.vmem [shape: f32[1,128], index: 3, kind: input, shape index: {}]   ;;  %s641_s4 = inlined_call_operand.vmem [shape: bf16[128,32], index: 4, kind: input, shape index: {}]   ;;  %s642_s5 = inlined_call_operand.hbm [shape: f32[16,32], index: 5, kind: output, shape index: {}]  }
   0x1   :  { %v390_v0 = vld [vmem:[%s637_s0] sm:$0xff]  }
   0x2   :  { %v530_v1 = vunpack.c.l.bf16 %v390_v0  ;;  %v532_v2 = vunpack.c.h.bf16 %v390_v0 }
   0x4   :  { %v28_v3 = vsel %vm27_vm0, %v530_v1, 0.0  ;;  %v37_v4 = vmul.f32 %v530_v1, %v530_v1  ;;  %v31_v5 = vsel %vm27_vm0, %v532_v2, 0.0  ;;  %v38_v6 = vmul.f32 %v532_v2, %v532_v2 }
   0x5   :  { %29 = vadd.xlane.f32.xlu0 %v28_v3 }
   0x6   :  { %v39_v7 = vsel %vm27_vm0, %v37_v4, 0.0  ;;  %v42_v8 = vsel %vm27_vm0, %v38_v6, 0.0 }
   0x7   :  { %40 = vadd.xlane.f32.xlu1 %v39_v7 }
   0x8   :  { %10 = vsyncpa [#allocation3], 0  ;;  %v61_v21 = vlaneseq  ;;  %v550_v28 = vld [vmem:[%s638_s1] sm:$0x7f]  ;;  %v492_v49 = vmov 0.0   ;;  %vm493_vm1 = vmmov 0  }
   0x9   :  { %32 = vadd.xlane.f32.xlu0 %v31_v5  ;;  %v438_v48 = vld [vmem:[%s639_s2] sm:$0xff]   ;;  %405 = vmatprep.subr.bf16.mxu0 %v492_v49  ;;  %v439_v50 = vld [vmem:[%s639_s2 + $0x8] sm:$0xff]  }
   0xa   :  { %v544_v25 = vshrl.u32 %v61_v21, 7  ;;  %409 = vmatprep.mubr.msk.bf16.mxu0 %vm493_vm1, %v492_v49  ;;  %406 = vmatpush3.bf16.msra.mxu0 %v438_v48  ;;  %v441_v21 = vld [vmem:[%s641_s4 + $0x8] sm:$0xff]  }
   0xb   :  { %43 = vadd.xlane.f32.xlu1 %v42_v8  ;;  %413 = vmatprep.subr.bf16.mxu1 %v492_v49 }
   0xc   :  { %v63_v27 = vsub.s32 0, %v544_v25  ;;  %v69_v29 = vsub.s32 1, %v544_v25  ;;  %407 = vmatprep.subr.bf16.mxu0 %v492_v49  ;;  %429 = vmatprep.mubr.msk.bf16.mxu1 %vm493_vm1, %v492_v49  ;;  %v107_v5 = vsub.s32 2, %v544_v25  ;;  %v218_v48 = vsub.s32 4, %v544_v25 }
   0xe   :  { %v64_v31 = vrot.slane %v550_v28, %v63_v27  ;;  %v70_v34 = vrot.slane %v550_v28, %v69_v29  ;;  %408 = vmatpush3.bf16.msra.mxu0 %v439_v50  ;;  %v446_v27 = vld [vmem:[%s641_s4 + $0x30] sm:$0xff]   ;;  %v447_v29 = vld [vmem:[%s641_s4 + $0x38] sm:$0xff]  }
  0x92   :  { %v30_v9 = vpop.xlane.xlu0 %29 }
  0x93   :  { %v35_v10 = vmul.f32 0.03125, %v30_v9  ;;  %v108_v9 = vrot.slane %v550_v28, %v107_v5 }
  0x94   :  { %v41_v11 = vpop.xlane.xlu1 %40 }
  0x95   :  { %v47_v12 = vmul.f32 %v35_v10, %v35_v10  ;;  %v45_v13 = vmul.f32 0.03125, %v41_v11  ;;  %v53_v30 = vsub.f32 %v530_v1, %v35_v10  ;;  %v113_v10 = vsub.s32 3, %v544_v25 }
  0x96   :  { %v33_v14 = vpop.xlane.xlu0 %32 }
  0x97   :  { %v49_v15 = vsub.f32 %v45_v13, %v47_v12  ;;  %v36_v16 = vmul.f32 0.03125, %v33_v14 }
  0x98   :  { %v44_v17 = vpop.xlane.xlu1 %43 }
  0x99   :  { %v51_v18 = vmax.f32 %v49_v15, 0.0  ;;  %v48_v19 = vmul.f32 %v36_v16, %v36_v16  ;;  %v46_v20 = vmul.f32 0.03125, %v44_v17  ;;  %v54_v35 = vsub.f32 %v532_v2, %v36_v16 }
  0x9a   :  { %v114_v15 = vrot.slane %v550_v28, %v113_v10 }
  0x9b   :  { %v55_v22 = vadd.f32 1e-05, %v51_v18  ;;  %v50_v23 = vsub.f32 %v46_v20, %v48_v19  ;;  %v440_v20 = vld [vmem:[%s641_s4] sm:$0xff]  }
  0x9c   :  { %414 = vmatpush3.bf16.msra.mxu1 %v440_v20 }
  0x9d   :  { %448 = vrsqrt.f32 %v55_v22  ;;  %v52_v24 = vmax.f32 %v50_v23, 0.0  ;;  %415 = vmatprep.subr.bf16.mxu1 %v492_v49  ;;  %v442_v22 = vld [vmem:[%s641_s4 + $0x10] sm:$0xff]   ;;  %v443_v23 = vld [vmem:[%s641_s4 + $0x18] sm:$0xff]  }
  0x9f   :  { %v56_v26 = vadd.f32 1e-05, %v52_v24  ;;  %v444_v24 = vld [vmem:[%s641_s4 + $0x20] sm:$0xff]  }
  0xa0   :  { %416 = vmatpush3.bf16.msra.mxu1 %v441_v21 }
  0xa1   :  { %450 = vrsqrt.f32 %v56_v26  ;;  %417 = vmatprep.subr.bf16.mxu1 %v492_v49  ;;  %v445_v26 = vld [vmem:[%s641_s4 + $0x28] sm:$0xff]  }
  0xa4   :  { %418 = vmatpush3.bf16.msra.mxu1 %v442_v22 }
  0xa5   :  { %419 = vmatprep.subr.bf16.mxu1 %v492_v49 }
  0xa7   :  { %v449_v32 = vpop.eup %448 }
  0xa8   :  { %v59_v33 = vmul.f32 %v449_v32, %v53_v30  ;;  %420 = vmatpush3.bf16.msra.mxu1 %v443_v23  ;;  %v375_v30 = vld [vmem:[%s640_s3] ss:$0 sm:$0xff]  ;;  %s494_s3 = smov [#allocation2]  }
  0xa9   :  { %421 = vmatprep.subr.bf16.mxu1 %v492_v49  ;;  %s364_s4 = sshll.u32 %s494_s3, 4  ;;  %s365_s4 = int_to_ptr.vmem [resolvable:$true] %s364_s4 }
  0xaa   :  { %v65_v36 = vmul.f32 %v64_v31, %v59_v33  ;;  %s468_s16 = scalar_lea.vmem %s365_s4, 256  ;;  %p473_p1 = scmp.lt.s32.totalorder %s365_s4, %s365_s4 }
  0xab   :  { %v451_v37 = vpop.eup %450  ;;  %p469_p0 = scmp.ne.s32.totalorder %s365_s4, %s468_s16  ;;  %p474_p2 = scmp.lt.s32.totalorder %s468_s16, %s468_s16 }
  0xac   :  { %v71_v38 = vadd.f32 %v70_v34, %v65_v36  ;;  %v60_v39 = vmul.f32 %v451_v37, %v54_v35  ;;  %422 = vmatpush3.bf16.msra.mxu1 %v444_v24 }
  0xad   :  { %423 = vmatprep.subr.bf16.mxu1 %v492_v49  ;;  %p475_p3 = por %p474_p2, %p473_p1 }
  0xae   :  { %v73_v40 = vsel %vm27_vm0, %v71_v38, 0.0  ;;  %v81_v41 = vmul.f32 %v71_v38, %v71_v38  ;;  %v66_v42 = vmul.f32 %v64_v31, %v60_v39 }
  0xaf   :  { %74 = vadd.xlane.f32.xlu0 %v73_v40  ;;  %p476_p4 = pnand %p475_p3, %p469_p0 }
  0xb0   :  { %v72_v43 = vadd.f32 %v70_v34, %v66_v42  ;;  %v83_v44 = vsel %vm27_vm0, %v81_v41, 0.0  ;;  %424 = vmatpush3.bf16.msra.mxu1 %v445_v26 }
  0xb1   :  { %425 = vmatprep.subr.bf16.mxu1 %v492_v49 }
  0xb2   :  { %v76_v45 = vsel %vm27_vm0, %v72_v43, 0.0  ;;  %v82_v46 = vmul.f32 %v72_v43, %v72_v43 }
  0xb3   :  { %84 = vadd.xlane.f32.xlu0 %v83_v44  ;;  %77 = vadd.xlane.f32.xlu1 %v76_v45 }
  0xb4   :  { %v86_v47 = vsel %vm27_vm0, %v82_v46, 0.0  ;;  %426 = vmatpush3.bf16.msra.mxu1 %v446_v27 }
  0xb5   :  { %427 = vmatprep.subr.bf16.mxu1 %v492_v49  ;;  %v219_v49 = vrot.slane %v550_v28, %v218_v48 }
  0xb7   :  { %87 = vadd.xlane.f32.xlu1 %v86_v47 }
  0xb8   :  { %428 = vmatpush3.bf16.msra.mxu1 %v447_v29 }
 0x13c   :  { %v75_v51 = vpop.xlane.xlu0 %74 }
 0x13d   :  { %v79_v52 = vmul.f32 0.03125, %v75_v51 }
 0x13f   :  { %v91_v55 = vmul.f32 %v79_v52, %v79_v52  ;;  %v97_v6 = vsub.f32 %v71_v38, %v79_v52 }
 0x140   :  { %v78_v53 = vpop.xlane.xlu1 %77  ;;  %v85_v54 = vpop.xlane.xlu0 %84 }
 0x141   :  { %v80_v56 = vmul.f32 0.03125, %v78_v53  ;;  %v89_v57 = vmul.f32 0.03125, %v85_v54 }
 0x143   :  { %v93_v58 = vsub.f32 %v89_v57, %v91_v55  ;;  %v92_v60 = vmul.f32 %v80_v56, %v80_v56  ;;  %v98_v11 = vsub.f32 %v72_v43, %v80_v56 }
 0x144   :  { %v88_v59 = vpop.xlane.xlu1 %87 }
 0x145   :  { %v95_v61 = vmax.f32 %v93_v58, 0.0  ;;  %v90_v62 = vmul.f32 0.03125, %v88_v59 }
 0x147   :  { %v99_v63 = vadd.f32 1e-05, %v95_v61  ;;  %v94_v0 = vsub.f32 %v90_v62, %v92_v60 }
 0x149   :  { %452 = vrsqrt.f32 %v99_v63  ;;  %v96_v3 = vmax.f32 %v94_v0, 0.0 }
 0x14b   :  { %v100_v4 = vadd.f32 1e-05, %v96_v3 }
 0x14d   :  { %454 = vrsqrt.f32 %v100_v4 }
 0x153   :  { %v453_v7 = vpop.eup %452 }
 0x154   :  { %v103_v8 = vmul.f32 %v453_v7, %v97_v6 }
 0x156   :  { %v109_v14 = vmul.f32 %v108_v9, %v103_v8 }
 0x157   :  { %v455_v12 = vpop.eup %454 }
 0x158   :  { %v104_v13 = vmul.f32 %v455_v12, %v98_v11  ;;  %v115_v17 = vadd.f32 %v114_v15, %v109_v14 }
 0x15a   :  { %v110_v16 = vmul.f32 %v108_v9, %v104_v13 }
 0x15c   :  { %v116_v18 = vadd.f32 %v114_v15, %v110_v16 }
 0x15e   :  { %v121_v19 = vpack.c.bf16 %v116_v18, %v115_v17  ;;  %v347_v18 = vsub.s32 5, %v544_v25 }
 0x160   :  { %410 = vmatmul.mubr.msk.bf16.vlgmr.msra.gmra.mrb[0].mxu0 %vm27_vm0, %v121_v19  ;;  %v353_v19 = vsub.s32 6, %v544_v25  ;;  %v348_v21 = vrot.slane %v550_v28, %v347_v18 }
 0x162   :  { %v354_v26 = vrot.slane %v550_v28, %v353_v19 }
 0x233   :  { %v178_v31 = vpop.f32.mrb[0].mxu0 }
 0x234   :  { %v179_v32 = vadd.f32 %v375_v30, %v178_v31  ;;  %v411_v33 = vpop.f32.mrb[1].mxu0 }
 0x235   :  { %v181_v34 = vpop.f32.mrb[2].mxu0 }
 0x236   :  { %v379_v35 = vmul.f32 -1.442695, %v179_v32  ;;  %v182_v36 = vadd.f32 %v375_v30, %v181_v34  ;;  %v412_v37 = vpop.f32.mrb[3].mxu0 }
 0x238   :  { %456 = vpow2.f32 %v379_v35  ;;  %v380_v38 = vmul.f32 -1.442695, %v182_v36 }
 0x23a   :  { %458 = vpow2.f32 %v380_v38 }
 0x242   :  { %v457_v39 = vpop.eup %456 }
 0x243   :  { %v191_v40 = vadd.f32 1.0, %v457_v39 }
 0x244   :  { %v459_v41 = vpop.eup %458 }
 0x245   :  { %460 = vrcp.f32 %v191_v40  ;;  %v192_v42 = vadd.f32 1.0, %v459_v41 }
 0x247   :  { %462 = vrcp.f32 %v192_v42 }
 0x24f   :  { %v461_v43 = vpop.eup %460 }
 0x250   :  { %v197_v45 = vmul.f32 %v461_v43, %v179_v32 }
 0x251   :  { %v463_v44 = vpop.eup %462 }
 0x252   :  { %v198_v46 = vmul.f32 %v463_v44, %v182_v36 }
 0x254   :  { %v215_v47 = vpack.c.bf16 %v198_v46, %v197_v45 }
 0x256   :  { %430 = vmatmul.mubr.bf16.vlgmr.msra.gmra.mrb[0].mxu1 %v215_v47 }
 0x329   :  { %v302_v50 = vpop.f32.mrb[0].mxu1 }
 0x32a   :  { %v303_v51 = vadd.f32 %v302_v50, %v219_v49  ;;  %v431_v52 = vpop.f32.mrb[1].mxu1 }
 0x32b   :  { %v305_v53 = vpop.f32.mrb[2].mxu1 }
 0x32c   :  { %v309_v54 = vmul.f32 0.5, %v303_v51  ;;  %v306_v55 = vadd.f32 %v305_v53, %v219_v49  ;;  %v432_v56 = vpop.f32.mrb[3].mxu1 }
 0x32e   :  { %v311_v57 = vadd.f32 %v530_v1, %v309_v54  ;;  %v310_v58 = vmul.f32 0.5, %v306_v55 }
 0x330   :  { %v312_v59 = vadd.f32 %v532_v2, %v310_v58  ;;  %v313_v60 = vsel %vm27_vm0, %v311_v57, 0.0  ;;  %v321_v61 = vmul.f32 %v311_v57, %v311_v57 }
 0x331   :  { %314 = vadd.xlane.f32.xlu0 %v313_v60 }
 0x332   :  { %v316_v62 = vsel %vm27_vm0, %v312_v59, 0.0  ;;  %v322_v63 = vmul.f32 %v312_v59, %v312_v59  ;;  %v323_v0 = vsel %vm27_vm0, %v321_v61, 0.0 }
 0x333   :  { %317 = vadd.xlane.f32.xlu1 %v316_v62 }
 0x334   :  { %v326_v3 = vsel %vm27_vm0, %v322_v63, 0.0 }
 0x335   :  { %324 = vadd.xlane.f32.xlu0 %v323_v0 }
 0x337   :  { %327 = vadd.xlane.f32.xlu1 %v326_v3 }
 0x3be   :  { %v315_v4 = vpop.xlane.xlu0 %314 }
 0x3bf   :  { %v319_v5 = vmul.f32 0.03125, %v315_v4 }
 0x3c0   :  { %v318_v1 = vpop.xlane.xlu1 %317 }
 0x3c1   :  { %v320_v6 = vmul.f32 0.03125, %v318_v1  ;;  %v331_v2 = vmul.f32 %v319_v5, %v319_v5  ;;  %v337_v20 = vsub.f32 %v311_v57, %v319_v5 }
 0x3c2   :  { %v325_v7 = vpop.xlane.xlu0 %324 }
 0x3c3   :  { %v329_v8 = vmul.f32 0.03125, %v325_v7  ;;  %v332_v10 = vmul.f32 %v320_v6, %v320_v6  ;;  %v338_v23 = vsub.f32 %v312_v59, %v320_v6 }
 0x3c4   :  { %v328_v9 = vpop.xlane.xlu1 %327 }
 0x3c5   :  { %v333_v11 = vsub.f32 %v329_v8, %v331_v2  ;;  %v330_v12 = vmul.f32 0.03125, %v328_v9 }
 0x3c7   :  { %v335_v13 = vmax.f32 %v333_v11, 0.0  ;;  %v334_v14 = vsub.f32 %v330_v12, %v332_v10 }
 0x3c9   :  { %v339_v15 = vadd.f32 1e-05, %v335_v13  ;;  %v336_v16 = vmax.f32 %v334_v14, 0.0 }
 0x3cb   :  { %464 = vrsqrt.f32 %v339_v15  ;;  %v340_v17 = vadd.f32 1e-05, %v336_v16 }
 0x3cd   :  { %466 = vrsqrt.f32 %v340_v17 }
 0x3d5   :  { %v465_v22 = vpop.eup %464 }
 0x3d6   :  { %v343_v24 = vmul.f32 %v465_v22, %v337_v20 }
 0x3d7   :  { %v467_v27 = vpop.eup %466 }
 0x3d8   :  { %v344_v29 = vmul.f32 %v467_v27, %v338_v23  ;;  %v349_v30 = vmul.f32 %v348_v21, %v343_v24 }
 0x3da   :  { %v350_v31 = vmul.f32 %v348_v21, %v344_v29  ;;  %v355_v32 = vadd.f32 %v354_v26, %v349_v30 }
 0x3dc   :  { %v356_v33 = vadd.f32 %v354_v26, %v350_v31  ;;  %357 = vst.msk [vmem:[#allocation2] sm:$0xff] %vm27_vm0, %v355_v32 }
 0x3de   :  { %358 = vst.msk [vmem:[#allocation2 + $0x8] sm:$0xff] %vm27_vm0, %v356_v33 }
 0x3df   :  { %479 = shalt.err (!%p476_p4)
}
 0x3e0   :  { %s480_s19 = scalar_lea.hbm %s642_s5, 256 }
 0x3e1   :  { %p481_p5 = scmp.ne.s32.totalorder %s642_s5, %s480_s19  ;;  %p484_p6 = scmp.lt.u32.totalorder %s480_s19, %s642_s5 }
 0x3e3   :  { %p486_p7 = pnand %p484_p6, %p481_p5 }
 0x3e5   :  { %489 = shalt.err (!%p486_p7)
}
 0x3e6   :  { %s495_s22 = smov 128   ;;  %s496_s23 = smov 8  }
 0x3e7   :  { %370 = dma.vmem_to_hbm [thread:$0]  %s365_s4, 256, %s642_s5, [#allocation3], %s495_s22, %s495_s22, %s496_s23  }
 0x3e8   :  { %490 = dma.done.wait [#allocation3], 256  }
 0x3e9   :  { %491 = vsyncadd [#allocation3], 4294967040 }
 0x3ea   :  { %374 = vsyncpa [#allocation3], 1 }

</bundles_post_ra>
